<compile_context>
chip_gen: v6e
topology: v6e:2x2x1
jax: 0.10.0
libtpu: 0.0.40
codegen_flags: <defaults>
</compile_context>

<pallas_src>
import functools

import numpy as np

import jax
import jax.numpy as jnp
from jax import lax
from jax.experimental import pallas as pl
from jax.experimental.pallas import tpu as pltpu

HIDDEN = 16


def _mnet_fused_kernel(inp_ref, tri_ref, w1_ref, b1_ref, w2_ref, b2_ref,
                       w3_ref, b3_ref, o_ref, s0, s1, s2, *, H, W, P, hidden):
    """Fused M_net forward for one image.

    inp_ref : (1, 3, H, W)     RGB image (NCHW block)
    tri_ref : (1, 3, H, W)     trimap (bg, fg, unsure)
    w*_ref  : (Cout, 9*Cin)    im2col conv weights (tap-major, k = dy*3 + dx)
    b*_ref  : (Cout, 1)        biases
    o_ref   : (1, 1, H*P)      alpha_p, flat lane-dense row-pitch-P layout
    s0/s1/s2: (C, (H+2)*P)     flat padded activation scratch (VMEM)
    """
    Hp = H + 2
    NT = Hp * P
    HP = H * P

    # ---- stage the 6-channel NCHW input into the lane-aligned flat layout --
    # Image row h lives at lanes [(h+1)*P, (h+1)*P + W) of the interior.  The
    # halo rows / pad lanes / 2 Cin-padding channels are never written and are
    # suppressed by the jnp.where masks below, so no zero-fill is needed.
    def stage_row(h, carry):
        dst = pl.multiple_of((h + 1) * P, 128)
        s0[0:3, pl.ds(dst, W)] = inp_ref[0, :, pl.ds(h, 1), :][:, 0, :]
        s0[3:6, pl.ds(dst, W)] = tri_ref[0, :, pl.ds(h, 1), :][:, 0, :]
        return carry

    lax.fori_loop(0, H, stage_row, 0)

    # ---- validity masks, built in-kernel from a lane iota (P is 2**k) ------
    idx = lax.broadcasted_iota(jnp.int32, (1, NT), 1)
    col = jnp.bitwise_and(idx, P - 1)
    interior = (col < W) & (idx >= P) & (idx < (H + 1) * P)          # (1, NT)
    chan_ok = lax.broadcasted_iota(jnp.int32, (8, 1), 0) < 6         # (8, 1)
    mask_c1 = jnp.logical_and(interior, chan_ok)                     # (8, NT)
    mask_ch = jnp.broadcast_to(interior, (hidden, NT))               # (hid,NT)

    # ---- 3x3 conv as ONE im2col MXU matmul per layer -----------------------
    def conv3x3(src_ref, mask, w_ref, b_ref, relu):
        xf = jnp.where(mask, src_ref[...], 0.0)          # (C, NT), NaN-safe
        x_m = pltpu.roll(xf, 1, axis=1)                  # out[i] = xf[i - 1]
        x_p = pltpu.roll(xf, NT - 1, axis=1)             # out[i] = xf[i + 1]
        pieces = []
        for dy in range(3):                              # tap k = dy*3 + dx
            base = dy * P                                # 128-aligned view
            for shifted in (x_m, xf, x_p):               # dx = 0, 1, 2
                pieces.append(shifted[:, base:base + HP])
        patches = jnp.concatenate(pieces, axis=0)        # (9*Cin, HP)
        acc = jnp.dot(w_ref[...], patches,
                      preferred_element_type=jnp.float32) + b_ref[...]
        return jnp.maximum(acc, 0.0) if relu else acc

    s1[:, P:P + HP] = conv3x3(s0, mask_c1, w1_ref, b1_ref, True)
    s2[:, P:P + HP] = conv3x3(s1, mask_ch, w2_ref, b2_ref, True)
    alpha_r = conv3x3(s2, mask_ch, w3_ref, b3_ref, False)            # (1, HP)

    # ---- compose: alpha_p = fg + unsure * alpha_r (one full-width store) ---
    fg = s0[4:5, P:P + HP]
    unsure = s0[5:6, P:P + HP]
    o_ref[0, :, :] = fg + unsure * alpha_r


def _prep_weight(w_hwio, cin_pad=None):
    """HWIO (3,3,Cin,Cout) -> (Cout, 9*Cin) im2col weight (tap-major order)."""
    kh, kw, cin, cout = w_hwio.shape
    w = w_hwio.reshape(kh * kw, cin, cout)
    if cin_pad is not None and cin_pad > cin:
        w = jnp.pad(w, ((0, 0), (0, cin_pad - cin), (0, 0)))
        cin = cin_pad
    return jnp.transpose(w, (2, 0, 1)).reshape(cout, kh * kw * cin)


def init_params(key, hidden=HIDDEN):
    k1, k2, k3 = jax.random.split(key, 3)
    return {
        "w1": 0.1 * jax.random.normal(k1, (3, 3, 6, hidden), jnp.float32),
        "b1": jnp.zeros((hidden, 1), jnp.float32),
        "w2": 0.1 * jax.random.normal(k2, (3, 3, hidden, hidden), jnp.float32),
        "b2": jnp.zeros((hidden, 1), jnp.float32),
        "w3": 0.1 * jax.random.normal(k3, (3, 3, hidden, 1), jnp.float32),
        "b3": jnp.zeros((1, 1), jnp.float32),
    }


@jax.jit
def net_m_forward(params, inp_nchw, trimap_nchw):
    """Pallas implementation of net_M.forward(input, trimap).

    inp_nchw:    (N, 3, H, W)  RGB image
    trimap_nchw: (N, 3, H, W)  trimap channels = (bg, fg, unsure)
    returns:     (N, 1, H, W)  alpha_p
    """
    N, _, H, W = inp_nchw.shape
    hidden = params["w1"].shape[-1]

    # Power-of-two row pitch >= W + 1 (>= 128): keeps every dy tap offset
    # 128-lane aligned and lets the interior mask use bitwise ops only.
    P = 128
    while P < W + 1:
        P *= 2
    NT = (H + 2) * P
    HP = H * P

    w1 = _prep_weight(params["w1"], cin_pad=8)     # (hidden, 72)
    w2 = _prep_weight(params["w2"])                # (hidden, 144)
    w3 = _prep_weight(params["w3"])                # (1, 144)

    kernel = functools.partial(
        _mnet_fused_kernel, H=H, W=W, P=P, hidden=hidden)

    out_flat = pl.pallas_call(
        kernel,
        out_shape=jax.ShapeDtypeStruct((N, 1, HP), jnp.float32),
        grid=(N,),
        in_specs=[
            pl.BlockSpec((1, 3, H, W), lambda n: (n, 0, 0, 0)),
            pl.BlockSpec((1, 3, H, W), lambda n: (n, 0, 0, 0)),
            pl.BlockSpec((hidden, 9 * 8), lambda n: (0, 0)),
            pl.BlockSpec((hidden, 1), lambda n: (0, 0)),
            pl.BlockSpec((hidden, 9 * hidden), lambda n: (0, 0)),
            pl.BlockSpec((hidden, 1), lambda n: (0, 0)),
            pl.BlockSpec((1, 9 * hidden), lambda n: (0, 0)),
            pl.BlockSpec((1, 1), lambda n: (0, 0)),
        ],
        out_specs=pl.BlockSpec((1, 1, HP), lambda n: (n, 0, 0)),
        scratch_shapes=[
            pltpu.VMEM((8, NT), jnp.float32),
            pltpu.VMEM((hidden, NT), jnp.float32),
            pltpu.VMEM((hidden, NT), jnp.float32),
        ],
        compiler_params=pltpu.CompilerParams(
            dimension_semantics=("parallel",),
            vmem_limit_bytes=32 * 1024 * 1024),
    )(inp_nchw, trimap_nchw, w1, params["b1"], w2, params["b2"],
      w3, params["b3"])

    alpha_p = out_flat.reshape(N, H, P)[:, :, :W]      # drop pad lanes
    return alpha_p[:, None, :, :]                      # (N, 1, H, W)


def _reference_forward(params, inp, trimap):
    """Pure-JAX (XLA) reference for numerical validation."""
    def conv(x, w, b, relu):
        y = jax.lax.conv_general_dilated(
            x, w, window_strides=(1, 1), padding="SAME",
            dimension_numbers=("NCHW", "HWIO", "NCHW"),
            precision=jax.lax.Precision.HIGHEST)
        y = y + b[:, 0].reshape(1, -1, 1, 1)
        return jnp.maximum(y, 0.0) if relu else y

    x = jnp.concatenate([inp, trimap], axis=1)
    h = conv(x, params["w1"], params["b1"], True)
    h = conv(h, params["w2"], params["b2"], True)
    alpha_r = conv(h, params["w3"], params["b3"], False)
    fg = trimap[:, 1:2]
    unsure = trimap[:, 2:3]
    return fg + unsure * alpha_r


if __name__ == "__main__":
    key = jax.random.PRNGKey(0)
    k_img, k_tri, k_par = jax.random.split(key, 3)

    N, H, W = 2, 16, 16
    inp = jax.random.normal(k_img, (N, 3, H, W), jnp.float32)
    # trimap-like: 3 channels (bg, fg, unsure), softmaxed over channel axis
    trimap = jax.nn.softmax(
        jax.random.normal(k_tri, (N, 3, H, W), jnp.float32), axis=1)

    params = init_params(k_par, hidden=HIDDEN)

    alpha_p = net_m_forward(params, inp, trimap)
    alpha_p = jax.block_until_ready(alpha_p)
    assert alpha_p.shape == (N, 1, H, W), alpha_p.shape

    ref = _reference_forward(params, inp, trimap)
    np.testing.assert_allclose(np.asarray(alpha_p), np.asarray(ref),
                               atol=3e-2, rtol=3e-2)
    print("KERNEL_OK")
</pallas_src>

<mosaic_0001>
module attributes {stable_mosaic.version = 11 : i64} {
  func.func @_mnet_fused_kernel(%arg0: i32, %arg1: memref<1x3x16x16xf32, #tpu.memory_space<vmem>>, %arg2: memref<1x3x16x16xf32, #tpu.memory_space<vmem>>, %arg3: memref<16x72xf32, #tpu.memory_space<vmem>>, %arg4: memref<16x1xf32, #tpu.memory_space<vmem>>, %arg5: memref<16x144xf32, #tpu.memory_space<vmem>>, %arg6: memref<16x1xf32, #tpu.memory_space<vmem>>, %arg7: memref<1x144xf32, #tpu.memory_space<vmem>>, %arg8: memref<1x1xf32, #tpu.memory_space<vmem>>, %arg9: memref<1x1x2048xf32, #tpu.memory_space<vmem>>, %arg10: memref<8x2304xf32, #tpu.memory_space<vmem>>, %arg11: memref<16x2304xf32, #tpu.memory_space<vmem>>, %arg12: memref<16x2304xf32, #tpu.memory_space<vmem>>) attributes {dimension_semantics = [#tpu.dimension_semantics<parallel>], iteration_bounds = array<i64: 2>, scalar_prefetch = 0 : i64, scratch_operands = 3 : i64, tpu.core_type = #tpu.core_type<tc>, window_params = [{transform_indices = @transform_0, window_bounds = array<i64: 1, 3, 16, 16>}, {transform_indices = @transform_1, window_bounds = array<i64: 1, 3, 16, 16>}, {pipeline_mode = #tpu.pipeline_mode<synchronous>, transform_indices = @transform_2, window_bounds = array<i64: 16, 72>}, {pipeline_mode = #tpu.pipeline_mode<synchronous>, transform_indices = @transform_3, window_bounds = array<i64: 16, 1>}, {pipeline_mode = #tpu.pipeline_mode<synchronous>, transform_indices = @transform_4, window_bounds = array<i64: 16, 144>}, {pipeline_mode = #tpu.pipeline_mode<synchronous>, transform_indices = @transform_5, window_bounds = array<i64: 16, 1>}, {pipeline_mode = #tpu.pipeline_mode<synchronous>, transform_indices = @transform_6, window_bounds = array<i64: 1, 144>}, {pipeline_mode = #tpu.pipeline_mode<synchronous>, transform_indices = @transform_7, window_bounds = array<i64: 1, 1>}, {transform_indices = @transform_8, window_bounds = array<i64: 1, 1, 2048>}]} {
    %c0_i32 = arith.constant 0 : i32
    %c16_i32 = arith.constant 16 : i32
    %0 = arith.addi %c0_i32, %c16_i32 : i32
    %c1_i32 = arith.constant 1 : i32
    scf.for %arg13 = %c0_i32 to %0 step %c1_i32  : i32 {
      %c1_i32_39 = arith.constant 1 : i32
      %93 = arith.addi %arg13, %c1_i32_39 : i32
      %c128_i32_40 = arith.constant 128 : i32
      %94 = arith.muli %93, %c128_i32_40 : i32
      %95 = tpu.assume_multiple %94, 128 : i32
      %c0_41 = arith.constant 0 : index
      %c0_42 = arith.constant 0 : index
      %96 = arith.index_cast %arg13 : i32 to index
      %c0_43 = arith.constant 0 : index
      %97 = vector.load %arg1[%c0_41, %c0_42, %96, %c0_43] : memref<1x3x16x16xf32, #tpu.memory_space<vmem>>, vector<1x3x1x16xf32>
      %98 = vector.shape_cast %97 : vector<1x3x1x16xf32> to vector<3x1x16xf32>
      %99 = vector.shape_cast %98 : vector<3x1x16xf32> to vector<3x16xf32>
      %c0_44 = arith.constant 0 : index
      %100 = arith.index_cast %95 : i32 to index
      %101 = vector.load %arg10[%c0_44, %100] : memref<8x2304xf32, #tpu.memory_space<vmem>>, vector<3x16xf32>
      tpu.vector_store %arg10[%c0_44, %100], %99 {strides = array<i32>} : memref<8x2304xf32, #tpu.memory_space<vmem>>, vector<3x16xf32>,
      %c0_45 = arith.constant 0 : index
      %c0_46 = arith.constant 0 : index
      %102 = arith.index_cast %arg13 : i32 to index
      %c0_47 = arith.constant 0 : index
      %103 = vector.load %arg2[%c0_45, %c0_46, %102, %c0_47] : memref<1x3x16x16xf32, #tpu.memory_space<vmem>>, vector<1x3x1x16xf32>
      %104 = vector.shape_cast %103 : vector<1x3x1x16xf32> to vector<3x1x16xf32>
      %105 = vector.shape_cast %104 : vector<3x1x16xf32> to vector<3x16xf32>
      %c3 = arith.constant 3 : index
      %106 = arith.index_cast %95 : i32 to index
      %107 = vector.load %arg10[%c3, %106] : memref<8x2304xf32, #tpu.memory_space<vmem>>, vector<3x16xf32>
      tpu.vector_store %arg10[%c3, %106], %105 {strides = array<i32>} : memref<8x2304xf32, #tpu.memory_space<vmem>>, vector<3x16xf32>,
    }
    %c16_i32_0 = arith.constant 16 : i32
    %1 = tpu.iota {dimensions = array<i32: 1>} : vector<1x2304xi32>
    %c127_i32 = arith.constant 127 : i32
    %2 = vector.broadcast %c127_i32 : i32 to vector<1x2304xi32>
    %3 = arith.andi %1, %2 : vector<1x2304xi32>
    %c16_i32_1 = arith.constant 16 : i32
    %4 = vector.broadcast %c16_i32_1 : i32 to vector<1x2304xi32>
    %5 = arith.cmpi slt, %3, %4 : vector<1x2304xi32>
    %c128_i32 = arith.constant 128 : i32
    %6 = vector.broadcast %c128_i32 : i32 to vector<1x2304xi32>
    %7 = arith.cmpi sge, %1, %6 : vector<1x2304xi32>
    %8 = arith.andi %5, %7 : vector<1x2304xi1>
    %c2176_i32 = arith.constant 2176 : i32
    %9 = vector.broadcast %c2176_i32 : i32 to vector<1x2304xi32>
    %10 = arith.cmpi slt, %1, %9 : vector<1x2304xi32>
    %11 = arith.andi %8, %10 : vector<1x2304xi1>
    %12 = tpu.iota {dimensions = array<i32: 0>} : vector<8x1xi32>
    %c6_i32 = arith.constant 6 : i32
    %13 = vector.broadcast %c6_i32 : i32 to vector<8x1xi32>
    %14 = arith.cmpi slt, %12, %13 : vector<8x1xi32>
    %15 = vector.broadcast %11 : vector<1x2304xi1> to vector<8x2304xi1>
    %16 = vector.broadcast %14 : vector<8x1xi1> to vector<8x2304xi1>
    %17 = arith.andi %15, %16 : vector<8x2304xi1>
    %18 = vector.shape_cast %11 : vector<1x2304xi1> to vector<1x2304xi1>
    %19 = vector.broadcast %18 : vector<1x2304xi1> to vector<16x2304xi1>
    %c0 = arith.constant 0 : index
    %c0_2 = arith.constant 0 : index
    %20 = vector.load %arg10[%c0, %c0_2] : memref<8x2304xf32, #tpu.memory_space<vmem>>, vector<8x2304xf32>
    %cst = arith.constant 0.000000e+00 : f32
    %21 = vector.broadcast %cst : f32 to vector<8x2304xf32>
    %22 = arith.select %17, %20, %21 : vector<8x2304xi1>, vector<8x2304xf32>
    %c1_i32_3 = arith.constant 1 : i32
    %23 = tpu.dynamic_rotate %22 by %c1_i32_3 dim 1 : vector<8x2304xf32>, i32 -> vector<8x2304xf32>
    %c2303_i32 = arith.constant 2303 : i32
    %24 = tpu.dynamic_rotate %22 by %c2303_i32 dim 1 : vector<8x2304xf32>, i32 -> vector<8x2304xf32>
    %25 = vector.extract_strided_slice %23 {offsets = [0, 0], sizes = [8, 2048], strides = [1, 1]} : vector<8x2304xf32> to vector<8x2048xf32>
    %26 = vector.extract_strided_slice %22 {offsets = [0, 0], sizes = [8, 2048], strides = [1, 1]} : vector<8x2304xf32> to vector<8x2048xf32>
    %27 = vector.extract_strided_slice %24 {offsets = [0, 0], sizes = [8, 2048], strides = [1, 1]} : vector<8x2304xf32> to vector<8x2048xf32>
    %28 = vector.extract_strided_slice %23 {offsets = [0, 128], sizes = [8, 2048], strides = [1, 1]} : vector<8x2304xf32> to vector<8x2048xf32>
    %29 = vector.extract_strided_slice %22 {offsets = [0, 128], sizes = [8, 2048], strides = [1, 1]} : vector<8x2304xf32> to vector<8x2048xf32>
    %30 = vector.extract_strided_slice %24 {offsets = [0, 128], sizes = [8, 2048], strides = [1, 1]} : vector<8x2304xf32> to vector<8x2048xf32>
    %31 = vector.extract_strided_slice %23 {offsets = [0, 256], sizes = [8, 2048], strides = [1, 1]} : vector<8x2304xf32> to vector<8x2048xf32>
    %32 = vector.extract_strided_slice %22 {offsets = [0, 256], sizes = [8, 2048], strides = [1, 1]} : vector<8x2304xf32> to vector<8x2048xf32>
    %33 = vector.extract_strided_slice %24 {offsets = [0, 256], sizes = [8, 2048], strides = [1, 1]} : vector<8x2304xf32> to vector<8x2048xf32>
    %34 = tpu.concatenate %25, %26, %27, %28, %29, %30, %31, %32, %33 in 0 : vector<8x2048xf32>, vector<8x2048xf32>, vector<8x2048xf32>, vector<8x2048xf32>, vector<8x2048xf32>, vector<8x2048xf32>, vector<8x2048xf32>, vector<8x2048xf32>, vector<8x2048xf32> -> vector<72x2048xf32>
    %c0_4 = arith.constant 0 : index
    %c0_5 = arith.constant 0 : index
    %35 = vector.load %arg3[%c0_4, %c0_5] : memref<16x72xf32, #tpu.memory_space<vmem>>, vector<16x72xf32>
    %cst_6 = arith.constant dense<0.000000e+00> : vector<16x2048xf32>
    %36 = tpu.matmul %35, %34, %cst_6 {dimension_numbers = #tpu.dot_dimension_numbers<[1], [0], [0], [1], [0, 0, 1, 1], [], []>} : vector<16x72xf32>, vector<72x2048xf32>, vector<16x2048xf32> -> vector<16x2048xf32>
    %c0_7 = arith.constant 0 : index
    %c0_8 = arith.constant 0 : index
    %37 = vector.load %arg4[%c0_7, %c0_8] : memref<16x1xf32, #tpu.memory_space<vmem>>, vector<16x1xf32>
    %38 = vector.broadcast %37 : vector<16x1xf32> to vector<16x2048xf32>
    %39 = arith.addf %36, %38 : vector<16x2048xf32>
    %cst_9 = arith.constant 0.000000e+00 : f32
    %40 = vector.broadcast %cst_9 : f32 to vector<16x2048xf32>
    %41 = arith.maximumf %39, %40 : vector<16x2048xf32>
    %c0_10 = arith.constant 0 : index
    %c128 = arith.constant 128 : index
    %42 = vector.load %arg11[%c0_10, %c128] : memref<16x2304xf32, #tpu.memory_space<vmem>>, vector<16x2048xf32>
    tpu.vector_store %arg11[%c0_10, %c128], %41 {strides = array<i32>} : memref<16x2304xf32, #tpu.memory_space<vmem>>, vector<16x2048xf32>,
    %c0_11 = arith.constant 0 : index
    %c0_12 = arith.constant 0 : index
    %43 = vector.load %arg11[%c0_11, %c0_12] : memref<16x2304xf32, #tpu.memory_space<vmem>>, vector<16x2304xf32>
    %cst_13 = arith.constant 0.000000e+00 : f32
    %44 = vector.broadcast %cst_13 : f32 to vector<16x2304xf32>
    %45 = arith.select %19, %43, %44 : vector<16x2304xi1>, vector<16x2304xf32>
    %c1_i32_14 = arith.constant 1 : i32
    %46 = tpu.dynamic_rotate %45 by %c1_i32_14 dim 1 : vector<16x2304xf32>, i32 -> vector<16x2304xf32>
    %c2303_i32_15 = arith.constant 2303 : i32
    %47 = tpu.dynamic_rotate %45 by %c2303_i32_15 dim 1 : vector<16x2304xf32>, i32 -> vector<16x2304xf32>
    %48 = vector.extract_strided_slice %46 {offsets = [0, 0], sizes = [16, 2048], strides = [1, 1]} : vector<16x2304xf32> to vector<16x2048xf32>
    %49 = vector.extract_strided_slice %45 {offsets = [0, 0], sizes = [16, 2048], strides = [1, 1]} : vector<16x2304xf32> to vector<16x2048xf32>
    %50 = vector.extract_strided_slice %47 {offsets = [0, 0], sizes = [16, 2048], strides = [1, 1]} : vector<16x2304xf32> to vector<16x2048xf32>
    %51 = vector.extract_strided_slice %46 {offsets = [0, 128], sizes = [16, 2048], strides = [1, 1]} : vector<16x2304xf32> to vector<16x2048xf32>
    %52 = vector.extract_strided_slice %45 {offsets = [0, 128], sizes = [16, 2048], strides = [1, 1]} : vector<16x2304xf32> to vector<16x2048xf32>
    %53 = vector.extract_strided_slice %47 {offsets = [0, 128], sizes = [16, 2048], strides = [1, 1]} : vector<16x2304xf32> to vector<16x2048xf32>
    %54 = vector.extract_strided_slice %46 {offsets = [0, 256], sizes = [16, 2048], strides = [1, 1]} : vector<16x2304xf32> to vector<16x2048xf32>
    %55 = vector.extract_strided_slice %45 {offsets = [0, 256], sizes = [16, 2048], strides = [1, 1]} : vector<16x2304xf32> to vector<16x2048xf32>
    %56 = vector.extract_strided_slice %47 {offsets = [0, 256], sizes = [16, 2048], strides = [1, 1]} : vector<16x2304xf32> to vector<16x2048xf32>
    %57 = tpu.concatenate %48, %49, %50, %51, %52, %53, %54, %55, %56 in 0 : vector<16x2048xf32>, vector<16x2048xf32>, vector<16x2048xf32>, vector<16x2048xf32>, vector<16x2048xf32>, vector<16x2048xf32>, vector<16x2048xf32>, vector<16x2048xf32>, vector<16x2048xf32> -> vector<144x2048xf32>
    %c0_16 = arith.constant 0 : index
    %c0_17 = arith.constant 0 : index
    %58 = vector.load %arg5[%c0_16, %c0_17] : memref<16x144xf32, #tpu.memory_space<vmem>>, vector<16x144xf32>
    %cst_18 = arith.constant dense<0.000000e+00> : vector<16x2048xf32>
    %59 = tpu.matmul %58, %57, %cst_18 {dimension_numbers = #tpu.dot_dimension_numbers<[1], [0], [0], [1], [0, 0, 1, 1], [], []>} : vector<16x144xf32>, vector<144x2048xf32>, vector<16x2048xf32> -> vector<16x2048xf32>
    %c0_19 = arith.constant 0 : index
    %c0_20 = arith.constant 0 : index
    %60 = vector.load %arg6[%c0_19, %c0_20] : memref<16x1xf32, #tpu.memory_space<vmem>>, vector<16x1xf32>
    %61 = vector.broadcast %60 : vector<16x1xf32> to vector<16x2048xf32>
    %62 = arith.addf %59, %61 : vector<16x2048xf32>
    %cst_21 = arith.constant 0.000000e+00 : f32
    %63 = vector.broadcast %cst_21 : f32 to vector<16x2048xf32>
    %64 = arith.maximumf %62, %63 : vector<16x2048xf32>
    %c0_22 = arith.constant 0 : index
    %c128_23 = arith.constant 128 : index
    %65 = vector.load %arg12[%c0_22, %c128_23] : memref<16x2304xf32, #tpu.memory_space<vmem>>, vector<16x2048xf32>
    tpu.vector_store %arg12[%c0_22, %c128_23], %64 {strides = array<i32>} : memref<16x2304xf32, #tpu.memory_space<vmem>>, vector<16x2048xf32>,
    %c0_24 = arith.constant 0 : index
    %c0_25 = arith.constant 0 : index
    %66 = vector.load %arg12[%c0_24, %c0_25] : memref<16x2304xf32, #tpu.memory_space<vmem>>, vector<16x2304xf32>
    %cst_26 = arith.constant 0.000000e+00 : f32
    %67 = vector.broadcast %cst_26 : f32 to vector<16x2304xf32>
    %68 = arith.select %19, %66, %67 : vector<16x2304xi1>, vector<16x2304xf32>
    %c1_i32_27 = arith.constant 1 : i32
    %69 = tpu.dynamic_rotate %68 by %c1_i32_27 dim 1 : vector<16x2304xf32>, i32 -> vector<16x2304xf32>
    %c2303_i32_28 = arith.constant 2303 : i32
    %70 = tpu.dynamic_rotate %68 by %c2303_i32_28 dim 1 : vector<16x2304xf32>, i32 -> vector<16x2304xf32>
    %71 = vector.extract_strided_slice %69 {offsets = [0, 0], sizes = [16, 2048], strides = [1, 1]} : vector<16x2304xf32> to vector<16x2048xf32>
    %72 = vector.extract_strided_slice %68 {offsets = [0, 0], sizes = [16, 2048], strides = [1, 1]} : vector<16x2304xf32> to vector<16x2048xf32>
    %73 = vector.extract_strided_slice %70 {offsets = [0, 0], sizes = [16, 2048], strides = [1, 1]} : vector<16x2304xf32> to vector<16x2048xf32>
    %74 = vector.extract_strided_slice %69 {offsets = [0, 128], sizes = [16, 2048], strides = [1, 1]} : vector<16x2304xf32> to vector<16x2048xf32>
    %75 = vector.extract_strided_slice %68 {offsets = [0, 128], sizes = [16, 2048], strides = [1, 1]} : vector<16x2304xf32> to vector<16x2048xf32>
    %76 = vector.extract_strided_slice %70 {offsets = [0, 128], sizes = [16, 2048], strides = [1, 1]} : vector<16x2304xf32> to vector<16x2048xf32>
    %77 = vector.extract_strided_slice %69 {offsets = [0, 256], sizes = [16, 2048], strides = [1, 1]} : vector<16x2304xf32> to vector<16x2048xf32>
    %78 = vector.extract_strided_slice %68 {offsets = [0, 256], sizes = [16, 2048], strides = [1, 1]} : vector<16x2304xf32> to vector<16x2048xf32>
    %79 = vector.extract_strided_slice %70 {offsets = [0, 256], sizes = [16, 2048], strides = [1, 1]} : vector<16x2304xf32> to vector<16x2048xf32>
    %80 = tpu.concatenate %71, %72, %73, %74, %75, %76, %77, %78, %79 in 0 : vector<16x2048xf32>, vector<16x2048xf32>, vector<16x2048xf32>, vector<16x2048xf32>, vector<16x2048xf32>, vector<16x2048xf32>, vector<16x2048xf32>, vector<16x2048xf32>, vector<16x2048xf32> -> vector<144x2048xf32>
    %c0_29 = arith.constant 0 : index
    %c0_30 = arith.constant 0 : index
    %81 = vector.load %arg7[%c0_29, %c0_30] : memref<1x144xf32, #tpu.memory_space<vmem>>, vector<1x144xf32>
    %cst_31 = arith.constant dense<0.000000e+00> : vector<1x2048xf32>
    %82 = tpu.matmul %81, %80, %cst_31 {dimension_numbers = #tpu.dot_dimension_numbers<[1], [0], [0], [1], [0, 0, 1, 1], [], []>} : vector<1x144xf32>, vector<144x2048xf32>, vector<1x2048xf32> -> vector<1x2048xf32>
    %c0_32 = arith.constant 0 : index
    %c0_33 = arith.constant 0 : index
    %83 = vector.load %arg8[%c0_32, %c0_33] : memref<1x1xf32, #tpu.memory_space<vmem>>, vector<1x1xf32>
    %84 = vector.broadcast %83 : vector<1x1xf32> to vector<1x2048xf32>
    %85 = arith.addf %82, %84 : vector<1x2048xf32>
    %c4 = arith.constant 4 : index
    %c128_34 = arith.constant 128 : index
    %86 = vector.load %arg10[%c4, %c128_34] : memref<8x2304xf32, #tpu.memory_space<vmem>>, vector<1x2048xf32>
    %c5 = arith.constant 5 : index
    %c128_35 = arith.constant 128 : index
    %87 = vector.load %arg10[%c5, %c128_35] : memref<8x2304xf32, #tpu.memory_space<vmem>>, vector<1x2048xf32>
    %88 = arith.mulf %87, %85 : vector<1x2048xf32>
    %89 = arith.addf %86, %88 : vector<1x2048xf32>
    %c0_36 = arith.constant 0 : index
    %c0_37 = arith.constant 0 : index
    %c0_38 = arith.constant 0 : index
    %90 = vector.load %arg9[%c0_36, %c0_37, %c0_38] : memref<1x1x2048xf32, #tpu.memory_space<vmem>>, vector<1x1x2048xf32>
    %91 = vector.shape_cast %90 : vector<1x1x2048xf32> to vector<1x2048xf32>
    %92 = vector.shape_cast %89 : vector<1x2048xf32> to vector<1x1x2048xf32>
    tpu.vector_store %arg9[%c0_36, %c0_37, %c0_38], %92 {strides = array<i32>} : memref<1x1x2048xf32, #tpu.memory_space<vmem>>, vector<1x1x2048xf32>,
    return
  }
  func.func @transform_0(%arg0: i32) -> (i32, i32, i32, i32) {
    %c0_i32 = arith.constant 0 : i32
    %c0_i32_0 = arith.constant 0 : i32
    %c0_i32_1 = arith.constant 0 : i32
    %c0_i32_2 = arith.constant 0 : i32
    return %arg0, %c0_i32, %c0_i32_0, %c0_i32_1 : i32, i32, i32, i32
  }
  func.func @transform_1(%arg0: i32) -> (i32, i32, i32, i32) {
    %c0_i32 = arith.constant 0 : i32
    %c0_i32_0 = arith.constant 0 : i32
    %c0_i32_1 = arith.constant 0 : i32
    %c0_i32_2 = arith.constant 0 : i32
    return %arg0, %c0_i32, %c0_i32_0, %c0_i32_1 : i32, i32, i32, i32
  }
  func.func @transform_2(%arg0: i32) -> (i32, i32) {
    %c0_i32 = arith.constant 0 : i32
    %c0_i32_0 = arith.constant 0 : i32
    %c0_i32_1 = arith.constant 0 : i32
    return %c0_i32, %c0_i32_0 : i32, i32
  }
  func.func @transform_3(%arg0: i32) -> (i32, i32) {
    %c0_i32 = arith.constant 0 : i32
    %c0_i32_0 = arith.constant 0 : i32
    %c0_i32_1 = arith.constant 0 : i32
    return %c0_i32, %c0_i32_0 : i32, i32
  }
  func.func @transform_4(%arg0: i32) -> (i32, i32) {
    %c0_i32 = arith.constant 0 : i32
    %c0_i32_0 = arith.constant 0 : i32
    %c0_i32_1 = arith.constant 0 : i32
    return %c0_i32, %c0_i32_0 : i32, i32
  }
  func.func @transform_5(%arg0: i32) -> (i32, i32) {
    %c0_i32 = arith.constant 0 : i32
    %c0_i32_0 = arith.constant 0 : i32
    %c0_i32_1 = arith.constant 0 : i32
    return %c0_i32, %c0_i32_0 : i32, i32
  }
  func.func @transform_6(%arg0: i32) -> (i32, i32) {
    %c0_i32 = arith.constant 0 : i32
    %c0_i32_0 = arith.constant 0 : i32
    %c0_i32_1 = arith.constant 0 : i32
    return %c0_i32, %c0_i32_0 : i32, i32
  }
  func.func @transform_7(%arg0: i32) -> (i32, i32) {
    %c0_i32 = arith.constant 0 : i32
    %c0_i32_0 = arith.constant 0 : i32
    %c0_i32_1 = arith.constant 0 : i32
    return %c0_i32, %c0_i32_0 : i32, i32
  }
  func.func @transform_8(%arg0: i32) -> (i32, i32, i32) {
    %c0_i32 = arith.constant 0 : i32
    %c0_i32_0 = arith.constant 0 : i32
    %c0_i32_1 = arith.constant 0 : i32
    return %arg0, %c0_i32, %c0_i32_0 : i32, i32, i32
  }
}

</mosaic_0001>

<bundles_post_ra>
// kernel: net_m_forward.1
= control target key start
LH: loop header
LB: loop body
LE: loop exit
PB: predicated region body
PF: predicated region fallthrough
CT: control target
= control target key end

     0   :  { %s3894_s29 = smov 0   ;;  %s6901_s0 = inlined_call_operand.vmem [shape: f32[2,3,16,16], index: 0, kind: input, shape index: {}]   ;;  %s6902_s1 = inlined_call_operand.vmem [shape: f32[2,3,16,16], index: 1, kind: input, shape index: {}]   ;;  %s6903_s2 = inlined_call_operand.vmem [shape: f32[16,72], index: 2, kind: input, shape index: {}]   ;;  %s6904_s3 = inlined_call_operand.vmem [shape: f32[16,1], index: 3, kind: input, shape index: {}]   ;;  %s6905_s4 = inlined_call_operand.vmem [shape: f32[16,144], index: 4, kind: input, shape index: {}]   ;;  %s6906_s5 = inlined_call_operand.vmem [shape: f32[16,1], index: 5, kind: input, shape index: {}]   ;;  %s6907_s6 = inlined_call_operand.vmem [shape: f32[1,144], index: 6, kind: input, shape index: {}]   ;;  %s6908_s7 = inlined_call_operand.<no memory space> [shape: f32[1,1], index: 7, kind: input, shape index: {}]   ;;  %s6909_s8 = inlined_call_operand.vmem [shape: f32[2,1,2048], index: 8, kind: output, shape index: {}]  }
   0x1   :  { %v13_v0 = vstv %s6908_s7 }
   0x2   :  { %14 = vst [vmem:[#allocation5] sm:$0x1] %v13_v0 }
   0x3 LB: > { %s3486_s30 = sadd.s32 4294967295, %s3835_s29   ;;  %p3490_p0 = scmp.ge.s32.totalorder %s3835_s29, 1  ;;  %s3835_s29 = sphi %s3894_s29, %s20_s29  }
   0x4   : > { %p274_p1 = scmp.lt.s32.totalorder %s3835_s29, 3 }
   0x6   : > { %p275_p2 = pnand %p3490_p0, %p274_p1 }
   0x8   : > { %278 = sbr.rel (%p275_p2) target bundleno = 1272 (0x4f8), region = 52 }
   0xd   : > { %p312_p3 = scmp.lt.s32.totalorder %s3486_s30, 1  ;;  %s3917_s19 = smov 0  }
   0xf   : > { %s7412_s30 = smov (!%p312_p3, %s3486_s30), 1 }
  0x10   : > { %s3770_s9 = smul.u32 48, %s7412_s30  ;;  %s3493_s7 = sshll.u32 %s7412_s30, 4 }
  0x11   : > { %s3905_s12 = scalar_lea.vmem %s6909_s8, %s3493_s7 }
  0x12   : > { %s3910_s15 = scalar_lea.vmem %s6901_s0, %s3770_s9  ;;  %s3915_s18 = scalar_lea.vmem %s6902_s1, %s3770_s9 }
  0x13 LB: >> { %s3768_s20 = sshll.u32 %s3839_s19, 7  ;;  %s334_s21 = scalar_lea.vmem %s3910_s15, %s3839_s19  ;;  %vm342_vm0 = vcmask 1041409   ;;  %vm345_vm1 = vcmask 1042434   ;;  %vm352_vm2 = vcmask 124928   ;;  %vm363_vm3 = vcmask 1044484   ;;  %s3839_s19 = sphi %s3917_s19, %s331_s19  }
  0x14   : >> { %s3769_s22 = sadd.s32 128, %s3768_s20  ;;  %v335_v1 = vld [vmem:[%s334_s21] sm:$0x1]  ;;  %v336_v2 = vld [vmem:[%s334_s21 + $0x10] sm:$0x1]  ;;  %s354_s23 = scalar_lea.vmem %s3915_s18, %s3839_s19  ;;  %vm366_vm4 = vcmask 1045509  }
  0x15   : >> { %v337_v3 = vld [vmem:[%s334_s21 + $0x20] sm:$0x1]  ;;  %v341_v4 = vrot.slane %v336_v2, 7  ;;  %s348_s24 = sshra.s32 %s3769_s22, 7  ;;  %v356_v7 = vld [vmem:[%s354_s23 + $0x10] sm:$0x1] }
  0x16   : >> { %v355_v5 = vld [vmem:[%s354_s23] sm:$0x1]  ;;  %v344_v6 = vrot.slane %v337_v3, 6  ;;  %s3495_s25 = sshll.u32 %s348_s24, 3  ;;  %v362_v11 = vrot.slane %v356_v7, 4  ;;  %vm369_vm5 = vcmask 128003  }
  0x17   : >> { %v357_v8 = vld [vmem:[%s354_s23 + $0x20] sm:$0x1]  ;;  %v343_v9 = vsel %vm342_vm0, %v341_v4, %v335_v1  ;;  %v361_v10 = vrot.slane %v355_v5, 5  ;;  %s351_s26 = scalar_lea.vmem [#allocation2], %s3495_s25  ;;  %s331_s19 = sadd.s32 1, %s3839_s19  }
  0x18   : >> { %v365_v12 = vrot.slane %v357_v8, 3  ;;  %v346_v13 = vsel %vm345_vm1, %v344_v6, %v343_v9  ;;  %p328_p4 = scmp.ge.s32.totalorder %s331_s19, 16  }
  0x19   : >> { %353 = vst.msk [vmem:[%s351_s26] sm:$0x7] %vm352_vm2, %v346_v13  ;;  %v364_v14 = vsel %vm363_vm3, %v362_v11, %v361_v10  ;;  %v371_v16 = vlaneseq (%p328_p4)  ;;  %v6947_v17 = vmov (%p328_p4), 0.0   ;;  %v7059_v32 = vmov (%p328_p4), 0  ;;  %s3842_s27 = smov (%p328_p4), 127   ;;  %s3843_s28 = smov (%p328_p4), 1  }
  0x1a   : >> { %v367_v15 = vsel %vm366_vm4, %v365_v12, %v364_v14  ;;  %330 = sbr.rel (!%p328_p4) target bundleno = 19 (0x13), region = 99  ;;  %865 = vmatprep.mubr.f32.mxu1 (%p328_p4), %v6947_v17  ;;  %788 = vmatprep.mubr.f32.mxu0 (%p328_p4), %v6947_v17  ;;  %v7063_v35 = vmov (%p328_p4), 0  ;;  %v7065_v36 = vmov (%p328_p4), 0  ;;  %v7067_v38 = vmov (%p328_p4), 0 }
  0x1b   : >> { %370 = vst.msk [vmem:[%s351_s26] sm:$0x38] %vm369_vm5, %v367_v15  ;;  %v3937_v18 = vand.u32 (%p328_p4), 127, %v371_v16  ;;  %v3939_v19 = vshrl.u32 (%p328_p4), %v371_v16, 7  ;;  %v7071_v42 = vmov (%p328_p4), 0  ;;  %v7079_v51 = vmov (%p328_p4), 0 }
  0x1c   : > { %v7084_v62 = vmov (%p328_p4), 0  ;;  %v7086_v0 = vmov (%p328_p4), 0  ;;  %v7090_v4 = vmov (%p328_p4), 0  ;;  %v7092_v6 = vmov (%p328_p4), 0 }
  0x1d   : > { %7058 = vst [vmem:[#allocation6_spill] sm:$0xff] (%p328_p4), %v3939_v19  ;;  %v375_v20 = vadd.s32 (%p328_p4), 384, %v3937_v18  ;;  %v374_v21 = vadd.s32 (%p328_p4), 256, %v3937_v18  ;;  %v376_v22 = vadd.s32 (%p328_p4), 512, %v3937_v18  ;;  %v377_v23 = vadd.s32 (%p328_p4), 640, %v3937_v18 }
  0x1e   : > { %v378_v24 = vadd.s32 (%p328_p4), 768, %v3937_v18  ;;  %vm6920_vm6 = vcmp.lt.s32.totalorder (%p328_p4), %v3939_v19, 6  ;;  %v373_v26 = vadd.s32 (%p328_p4), 128, %v3937_v18  ;;  %v379_v56 = vadd.s32 (%p328_p4), 896, %v3937_v18 }
  0x1f   : > { %v393_v25 = vand.u32 127, %v375_v20  ;;  %v392_v28 = vand.u32 127, %v374_v21  ;;  %v394_v29 = vand.u32 127, %v376_v22  ;;  %v395_v30 = vand.u32 127, %v377_v23 }
  0x20   : > { %v396_v31 = vand.u32 127, %v378_v24  ;;  %v391_v45 = vand.u32 127, %v373_v26  ;;  %v380_v57 = vadd.s32 1024, %v3937_v18  ;;  %v397_v58 = vand.u32 127, %v379_v56 }
  0x21   : > { %vm3950_vm7 = vcmp.lt.s32.totalorder %v393_v25, 16  ;;  %vm3964_vm9 = vcmp.lt.s32.totalorder %v392_v28, 16  ;;  %vm3968_vm10 = vcmp.lt.s32.totalorder %v394_v29, 16  ;;  %vm3974_vm11 = vcmp.lt.s32.totalorder %v395_v30, 16 }
  0x22   : > { %v3948_v27 = vld [vmem:[#allocation2 + $0x18] sm:$0xff]  ;;  %v7060_v32 = vsel %vm3950_vm7, 4294967295, %v7059_v32  ;;  %v3954_v33 = vld [vmem:[#allocation2 + $0x10] sm:$0xff]  ;;  %vm3960_vm8 = vmand %vm3950_vm7, %vm6920_vm6  ;;  %v7064_v35 = vsel %vm3964_vm9, 4294967295, %v7063_v35  ;;  %v7066_v36 = vsel %vm3968_vm10, 4294967295, %v7065_v36  ;;  %v7068_v38 = vsel %vm3974_vm11, 4294967295, %v7067_v38 }
  0x23   : > { %v3972_v37 = vld [vmem:[#allocation2 + $0x20] sm:$0xff]  ;;  %v578_v39 = vsel %vm3960_vm8, %v3948_v27, 0.0  ;;  %vm3985_vm12 = vmand %vm3964_vm9, %vm6920_vm6  ;;  %v3989_v41 = vld [vmem:[#allocation2 + $0x28] sm:$0xff]  ;;  %vm3991_vm13 = vcmp.lt.s32.totalorder %v396_v31, 16  ;;  %vm4033_vm1 = vcmp.lt.s32.totalorder %v391_v45, 16  ;;  %v381_v59 = vadd.s32 1152, %v3937_v18 }
  0x24   : > { %v7072_v42 = vsel %vm3991_vm13, 4294967295, %v7071_v42  ;;  %654 = vrot.lane.b32.xlu0 %v578_v39, %s3842_s27  ;;  %v577_v43 = vsel %vm3985_vm12, %v3954_v33, 0.0  ;;  %vm4003_vm14 = vmand %vm3968_vm10, %vm6920_vm6  ;;  %v4030_v50 = vld [vmem:[#allocation2 + $0x30] sm:$0xff]  ;;  %v7080_v51 = vsel %vm4033_vm1, 4294967295, %v7079_v51  ;;  %v4049_v54 = vld [vmem:[#allocation2 + $0x8] sm:$0xff]  ;;  %v398_v60 = vand.u32 127, %v380_v57 }
  0x25   : > { %652 = vrot.lane.b32.xlu1 %v577_v43, %s3842_s27  ;;  %v579_v46 = vsel %vm4003_vm14, %v3972_v37, 0.0  ;;  %vm4015_vm15 = vmand %vm3974_vm11, %vm6920_vm6  ;;  %7081 = vst [vmem:[#allocation7_spill] sm:$0xff] %v7080_v51  ;;  %v382_v61 = vadd.s32 1280, %v3937_v18  ;;  %vm4064_vm3 = vcmp.lt.s32.totalorder %v397_v58, 16  ;;  %v399_v63 = vand.u32 127, %v381_v59  ;;  %v4083_v3 = vld [vmem:[#allocation2 + $0x38] sm:$0xff] }
  0x26   : > { %v580_v48 = vsel %vm4015_vm15, %v3989_v41, 0.0  ;;  %vm4026_vm0 = vmand %vm3991_vm13, %vm6920_vm6  ;;  %v7085_v62 = vsel %vm4064_vm3, 4294967295, %v7084_v62  ;;  %vm4069_vm4 = vcmp.lt.s32.totalorder %v398_v60, 16  ;;  %v4093_v5 = vld [vmem:[#allocation2 + $0x40] sm:$0xff]  ;;  %v7094_v7 = vmov 0  ;;  %v4121_v11 = vld [vmem:[#allocation2 + $0x48] sm:$0xff] }
  0x27   : > { %v581_v52 = vsel %vm4026_vm0, %v4030_v50, 0.0  ;;  %vm4045_vm2 = vmand %vm4033_vm1, %vm6920_vm6  ;;  %v7087_v0 = vsel %vm4069_vm4, 4294967295, %v7086_v0  ;;  %v400_v1 = vand.u32 127, %v382_v61  ;;  %vm4095_vm10 = vcmp.lt.s32.totalorder %v399_v63, 16  ;;  %v4131_v13 = vld [vmem:[#allocation2 + $0x50] sm:$0xff]  ;;  %v4165_v31 = vld [vmem:[#allocation2 + $0x58] sm:$0xff] }
  0x28   : > { %656 = vrot.lane.b32.xlu0 %v579_v46, %s3842_s27  ;;  %v576_v55 = vsel %vm4045_vm2, %v4049_v54, 0.0  ;;  %vm4079_vm5 = vmand %vm4064_vm3, %vm6920_vm6  ;;  %v7093_v6 = vsel %vm4095_vm10, 4294967295, %v7092_v6  ;;  %v7099_v12 = vmov 0  ;;  %v383_v14 = vadd.s32 1408, %v3937_v18  ;;  %v4201_v56 = vld [vmem:[#allocation2 + $0x68] sm:$0xff]  ;;  %v4211_v58 = vld [vmem:[#allocation2 + $0x70] sm:$0xff] }
  0x29   : > { %658 = vrot.lane.b32.xlu1 %v580_v48, %s3842_s27  ;;  %vm4089_vm13 = vmand %vm4069_vm4, %vm6920_vm6  ;;  %vm4101_vm3 = vcmp.lt.s32.totalorder %v400_v1, 16  ;;  %v582_v8 = vsel %vm4079_vm5, %v4083_v3, 0.0  ;;  %v384_v15 = vadd.s32 1536, %v3937_v18  ;;  %v385_v22 = vadd.s32 1664, %v3937_v18 }
  0x2a   : > { %v7091_v4 = vsel %vm4089_vm13, 4294967295, %v7090_v4  ;;  %v7095_v7 = vsel %vm4101_vm3, 4294967295, %v7094_v7  ;;  %v583_v9 = vsel %vm4089_vm13, %v4093_v5, 0.0  ;;  %vm4117_vm4 = vmand %vm4095_vm10, %vm6920_vm6  ;;  %v401_v21 = vand.u32 127, %v383_v14 }
  0x2b   : > { %7096 = vst [vmem:[#allocation8_spill] sm:$0xff] %v7095_v7  ;;  %vm4127_vm11 = vmand %vm4101_vm3, %vm6920_vm6  ;;  %v584_v16 = vsel %vm4117_vm4, %v4121_v11, 0.0  ;;  %v402_v23 = vand.u32 127, %v384_v15  ;;  %v386_v24 = vadd.s32 1792, %v3937_v18  ;;  %v7101_v25 = vmov 0 }
  0x2c   : > { %660 = vrot.lane.b32.xlu0 %v581_v52, %s3842_s27  ;;  %v7100_v12 = vsel %vm4127_vm11, 4294967295, %v7099_v12  ;;  %v585_v20 = vsel %vm4127_vm11, %v4131_v13, 0.0  ;;  %vm4147_vm6 = vcmp.lt.s32.totalorder %v401_v21, 16  ;;  %v403_v26 = vand.u32 127, %v385_v22  ;;  %v4253_v21 = vld [vmem:[#allocation2 + $0x80] sm:$0xff] }
  0x2d   : > { %597 = vrot.lane.b32.xlu1 %v577_v43, %s3843_s28  ;;  %v7102_v25 = vsel %vm4147_vm6, 4294967295, %v7101_v25  ;;  %vm4152_vm3 = vcmp.lt.s32.totalorder %v402_v23, 16  ;;  %v7104_v28 = vmov 0  ;;  %v404_v29 = vand.u32 127, %v386_v24  ;;  %v4175_v43 = vld [vmem:[#allocation2 + $0x60] sm:$0xff] }
  0x2e   : > { %7103 = vst [vmem:[#allocation9_spill] sm:$0xff] %v7102_v25  ;;  %v7105_v28 = vsel %vm4152_vm3, 4294967295, %v7104_v28  ;;  %vm7107_vm10 = vcmp.lt.s32.totalorder %v3939_v19, 6  ;;  %vm4177_vm11 = vcmp.lt.s32.totalorder %v403_v26, 16  ;;  %v7113_v45 = vmov 0  ;;  %v705_v24 = vld [vmem:[%s6904_s3] sm:$0xff] }
  0x2f   : > { %7106 = vst [vmem:[#allocation10_spill] sm:$0xff] %v7105_v28  ;;  %vm4161_vm9 = vmand %vm4147_vm6, %vm7107_vm10  ;;  %v7114_v45 = vsel %vm4177_vm11, 4294967295, %v7113_v45  ;;  %v7122_v57 = vmov 0  ;;  %v387_v59 = vadd.s32 1920, %v3937_v18  ;;  %v388_v60 = vadd.s32 2048, %v3937_v18  ;;  %v706_v26 = vld [vmem:[%s6904_s3 + $0x8] sm:$0xff] }
  0x30   : > { %599 = vrot.lane.b32.xlu0 %v578_v39, %s3843_s28  ;;  %vm7110_vm1 = vmmov %vm7107_vm10  ;;  %v7111_v39 = vmov 0  ;;  %7115 = vst [vmem:[#allocation11_spill] sm:$0xff] %v7114_v45  ;;  %vm4182_vm10 = vcmp.lt.s32.totalorder %v404_v29, 16  ;;  %v7127_v14 = vmov 0  ;;  %v3844_v29 = vmov 0  }
  0x31   : > { %595 = vrot.lane.b32.xlu1 %v576_v55, %s3843_s28  ;;  %vm4171_vm7 = vmand %vm4152_vm3, %vm7110_vm1  ;;  %v405_v1 = vand.u32 127, %v387_v59  ;;  %3792 = vset.pattern.permute.xlu0 %v3844_v29 }
  0x32   : > { %v7112_v39 = vsel %vm4171_vm7, 4294967295, %v7111_v39  ;;  %vm4197_vm3 = vmand %vm4177_vm11, %vm7110_vm1  ;;  %3793 = vset.pattern.permute.xlu1 %v3844_v29 }
  0x33   : > { %vm7121_vm6 = vmmov %vm7110_vm1  ;;  %v588_v61 = vsel %vm4197_vm3, %v4201_v56, 0.0 }
  0x34   : > { %601 = vrot.lane.b32.xlu0 %v579_v46, %s3843_s28  ;;  %v7116_v46 = vmov 0  ;;  %vm4207_vm13 = vmand %vm4182_vm10, %vm7121_vm6  ;;  %vm4225_vm6 = vcmp.lt.s32.totalorder %v405_v1, 16 }
  0x35   : > { %603 = vrot.lane.b32.xlu1 %v580_v48, %s3843_s28  ;;  %v7117_v46 = vsel %vm4182_vm10, 4294967295, %v7116_v46  ;;  %v586_v48 = vsel %vm4161_vm9, %v4165_v31, 0.0  ;;  %v7123_v57 = vsel %vm4207_vm13, 4294967295, %v7122_v57  ;;  %v589_v63 = vsel %vm4207_vm13, %v4211_v58, 0.0 }
  0x36   : > { %7118 = vst [vmem:[#allocation12_spill] sm:$0xff] %v7117_v46  ;;  %vm7130_vm10 = vcmp.lt.s32.totalorder %v3939_v19, 6 }
  0x37   : > { %vm4239_vm11 = vmand %vm4225_vm6, %vm7130_vm10 }
  0x38   : > { %650 = vrot.lane.b32.xlu0 %v576_v55, %s3842_s27  ;;  %vm7133_vm13 = vmmov %vm7130_vm10  ;;  %vm6963_vm10 = vcmp.lt.s32.totalorder %v3937_v18, 1 }
  0x39   : > { %593 = vrot.lane.b32.xlu1 %v6947_v17, %s3843_s28 }
  0x3c   : > { %648 = vrot.lane.b32.xlu0 %v6947_v17, %s3842_s27 }
  0x3d   : > { %627 = vrot.lane.b32.xlu1 %v6947_v17, %s3843_s28 }
  0x40   : > { %662 = vrot.lane.b32.xlu0 %v582_v8, %s3842_s27 }
  0x41   : > { %664 = vrot.lane.b32.xlu1 %v583_v9, %s3842_s27 }
  0x44   : > { %666 = vrot.lane.b32.xlu0 %v584_v16, %s3842_s27 }
  0x45   : > { %668 = vrot.lane.b32.xlu1 %v585_v20, %s3842_s27 }
  0x48   : > { %605 = vrot.lane.b32.xlu0 %v581_v52, %s3843_s28  ;;  %v587_v52 = vsel %vm4171_vm7, %v4175_v43, 0.0 }
  0x49   : > { %607 = vrot.lane.b32.xlu1 %v582_v8, %s3843_s28  ;;  %v406_v8 = vand.u32 127, %v388_v60 }
  0x4b   : > { %vm4230_vm1 = vcmp.lt.s32.totalorder %v406_v8, 16 }
  0x4c   : > { %609 = vrot.lane.b32.xlu0 %v583_v9, %s3843_s28  ;;  %v7124_v9 = vmov 0  ;;  %v7128_v14 = vsel %vm4230_vm1, 4294967295, %v7127_v14  ;;  %vm4249_vm7 = vmand %vm4230_vm1, %vm7133_vm13  ;;  %vm6961_vm13 = vcmp.lt.s32.totalorder %v3937_v18, 127 }
  0x4d   : > { %611 = vrot.lane.b32.xlu1 %v584_v16, %s3843_s28  ;;  %v7125_v9 = vsel %vm4225_vm6, 4294967295, %v7124_v9  ;;  %7129 = vst [vmem:[#allocation14_spill] sm:$0xff] %v7128_v14  ;;  %v4243_v16 = vld [vmem:[#allocation2 + $0x78] sm:$0xff]  ;;  %v591_v23 = vsel %vm4249_vm7, %v4253_v21, 0.0 }
  0x4e   : > { %7126 = vst [vmem:[#allocation13_spill] sm:$0xff] %v7125_v9  ;;  %v590_v22 = vsel %vm4239_vm11, %v4243_v16, 0.0 }
  0x50   : > { %670 = vrot.lane.b32.xlu0 %v586_v48, %s3842_s27 }
  0x51   : > { %672 = vrot.lane.b32.xlu1 %v587_v52, %s3842_s27 }
  0x54   : > { %674 = vrot.lane.b32.xlu0 %v588_v61, %s3842_s27 }
  0x55   : > { %676 = vrot.lane.b32.xlu1 %v589_v63, %s3842_s27 }
  0x58   : > { %613 = vrot.lane.b32.xlu0 %v585_v20, %s3843_s28 }
  0x59   : > { %615 = vrot.lane.b32.xlu1 %v586_v48, %s3843_s28 }
  0x5c   : > { %617 = vrot.lane.b32.xlu0 %v587_v52, %s3843_s28 }
  0x5d   : > { %619 = vrot.lane.b32.xlu1 %v588_v61, %s3843_s28 }
  0x60   : > { %678 = vrot.lane.b32.xlu0 %v590_v22, %s3842_s27 }
  0x61   : > { %680 = vrot.lane.b32.xlu1 %v591_v23, %s3842_s27 }
  0x64   : > { %682 = vrot.lane.b32.xlu0 %v6947_v17, %s3842_s27 }
  0x65   : > { %621 = vrot.lane.b32.xlu1 %v589_v63, %s3843_s28 }
  0x68   : > { %623 = vrot.lane.b32.xlu0 %v590_v22, %s3843_s28 }
  0x69   : > { %625 = vrot.lane.b32.xlu1 %v591_v23, %s3843_s28 }
  0x6c   : > { %714 = vperm.xlu0 %3792, %v706_v26  }
  0x6d   : > { %709 = vperm.xlu1 %3793, %v705_v24  }
  0x96   : > { %v655_v48 = vpop.permute.xlu0 %654 }
  0x97   : > { %v653_v52 = vpop.permute.xlu1 %652 }
  0x98   : > { %v699_v63 = vsel %vm6961_vm13, %v653_v52, %v655_v48 }
  0x9a   : > { %v657_v59 = vpop.permute.xlu0 %656 }
  0x9b   : > { %v659_v60 = vpop.permute.xlu1 %658  ;;  %v698_v61 = vsel %vm6961_vm13, %v655_v48, %v657_v59 }
  0x9c   : > { %738 = vmatprep.subr.mxu0 %v698_v61  ;;  %v4298_v23 = vsel %vm6961_vm13, %v657_v59, %v659_v60 }
  0x9d   : > { %739 = vmatpush1.msra.mxu0 %v699_v63 }
  0x9e   : > { %v4281_v1 = vpop.permute.xlu0 %660  ;;  %3496 = vmatprep.subr.msk.mxu0 %vm3960_vm8, %v3948_v27 }
  0x9f   : > { %v598_v8 = vpop.permute.xlu1 %597  ;;  %v4289_v22 = vsel %vm6961_vm13, %v659_v60, %v4281_v1  ;;  %3497 = vmatpush1.msk.msra.mxu0 %vm3985_vm12, %v3954_v33 }
  0xa0   : > { %815 = vmatprep.subr.mxu1 %v4289_v22 }
  0xa1   : > { %816 = vmatpush1.msra.mxu1 %v4298_v23 }
  0xa2   : > { %v600_v24 = vpop.permute.xlu0 %599  ;;  %3503 = vmatprep.subr.msk.mxu1 %vm4015_vm15, %v3989_v41 }
  0xa3   : > { %v596_v26 = vpop.permute.xlu1 %595  ;;  %v644_v29 = vsel %vm6963_vm10, %v598_v8, %v600_v24  ;;  %3504 = vmatpush1.msk.msra.mxu1 %vm4003_vm14, %v3972_v37 }
  0xa4   : > { %742 = vmatprep.subr.mxu0 %v644_v29  ;;  %v645_v48 = vsel %vm6963_vm10, %v596_v26, %v598_v8 }
  0xa5   : > { %743 = vmatpush1.msra.mxu0 %v645_v48 }
  0xa6   : > { %v602_v59 = vpop.permute.xlu0 %601  ;;  %744 = vmatprep.subr.mxu0 %v699_v63 }
  0xa7   : > { %v604_v60 = vpop.permute.xlu1 %603  ;;  %v4313_v17 = vsel %vm6963_vm10, %v600_v24, %v602_v59 }
  0xa8   : > { %v4317_v19 = vsel %vm6963_vm10, %v602_v59, %v604_v60 }
  0xa9   : > { %819 = vmatprep.subr.mxu1 %v4317_v19 }
  0xaa   : > { %820 = vmatpush1.msra.mxu1 %v4313_v17  ;;  %v651_v14 = vpop.permute.xlu0 %650 }
  0xab   : > { %821 = vmatprep.subr.mxu1 %v4298_v23  ;;  %v594_v8 = vpop.permute.xlu1 %593  ;;  %v700_v46 = vsel %vm6961_vm13, %v651_v14, %v653_v52 }
  0xac   : > { %822 = vmatpush1.msra.mxu1 %v698_v61  ;;  %745 = vmatpush1.msra.mxu0 %v700_v46  ;;  %v646_v59 = vsel %vm6963_vm10, %v594_v8, %v596_v26 }
  0xad   : > { %3505 = vmatprep.subr.msk.mxu1 %vm4003_vm14, %v3972_v37  ;;  %3498 = vmatprep.subr.msk.mxu0 %vm3985_vm12, %v3954_v33 }
  0xae   : > { %3506 = vmatpush1.msk.msra.mxu1 %vm3960_vm8, %v3948_v27  ;;  %v4333_v24 = vpop.permute.xlu0 %648  ;;  %3499 = vmatpush1.msk.msra.mxu0 %vm4045_vm2, %v4049_v54 }
  0xaf   : > { %825 = vmatprep.subr.mxu1 %v4313_v17  ;;  %v4339_v52 = vpop.permute.xlu1 %627  ;;  %748 = vmatprep.subr.mxu0 %v645_v48  ;;  %v701_v9 = vsel %vm6961_vm13, %v4333_v24, %v651_v14  ;;  %v4359_v14 = vld [vmem:[%s6903_s2] sm:$0xff]  ;;  %vm717_vm13 = vcmask 588800  }
  0xb0   : > { %826 = vmatpush1.msra.mxu1 %v644_v29  ;;  %749 = vmatpush1.msra.mxu0 %v646_v59 }
  0xb1   : > { %827 = vmatprep.subr.mxu1 %v698_v61  ;;  %750 = vmatprep.subr.mxu0 %v700_v46  ;;  %v7136_v46 = vmov 0.0  }
  0xb2   : > { %828 = vmatpush1.msra.mxu1 %v699_v63  ;;  %v663_v45 = vpop.permute.xlu0 %662  ;;  %751 = vmatpush1.msra.mxu0 %v701_v9 }
  0xb3   : > { %3507 = vmatprep.subr.msk.mxu1 %vm3960_vm8, %v3948_v27  ;;  %v665_v28 = vpop.permute.xlu1 %664  ;;  %3500 = vmatprep.subr.msk.mxu0 %vm4045_vm2, %v4049_v54  ;;  %v647_v27 = vsel %vm6963_vm10, %v4339_v52, %v594_v8  ;;  %vm7137_vm8 = vcmp.lt.s32.totalorder %v3937_v18, 127  ;;  %v4379_v54 = vld [vmem:[%s6903_s2 + $0x8] sm:$0xff] }
  0xb4   : > { %3508 = vmatpush1.msk.msra.mxu1 %vm3985_vm12, %v3954_v33  ;;  %753 = vmatpush1.msra.mxu0 %v7136_v46  ;;  %v694_v34 = vsel %vm7137_vm8, %v663_v45, %v665_v28  ;;  %vm7138_vm12 = vmmov %vm7137_vm8 }
  0xb5   : > { %831 = vmatprep.subr.mxu1 %v644_v29  ;;  %754 = vmatprep.subr.mxu0 %v646_v59  ;;  %v695_v53 = vsel %vm7138_vm12, %v4281_v1, %v663_v45  ;;  %vm7139_vm2 = vmmov %vm7137_vm8  ;;  %vm7141_vm12 = vnez %v7091_v4 }
  0xb6   : > { %832 = vmatpush1.msra.mxu1 %v645_v48  ;;  %v667_v40 = vpop.permute.xlu0 %666  ;;  %755 = vmatpush1.msra.mxu0 %v647_v27  ;;  %vm7140_vm8 = vmmov %vm7139_vm2 }
  0xb7   : > { %3509 = vmatmul.mubr.msk.f32.vlgmr.msra.gmra.mxu1 %vm717_vm13, %v4359_v14  ;;  %v4368_v33 = vpop.permute.xlu1 %668  ;;  %3501 = vmatmul.mubr.msk.f32.vlgmr.msra.gmra.mxu0 %vm717_vm13, %v4359_v14  ;;  %v4389_v61 = vsel %vm7140_vm8, %v665_v28, %v667_v40  ;;  %vm7146_vm8 = vnez %v7112_v39 }
  0xb8   : > { %892 = vmatprep.subr.mxu0 %v694_v34  ;;  %794 = vmatprep.mubr.f32.mxu0 %v7136_v46  ;;  %v4384_v9 = vsel %vm7139_vm2, %v667_v40, %v4368_v33 }
  0xb9   : > { %893 = vmatpush1.msra.mxu0 %v695_v53  ;;  %871 = vmatprep.mubr.f32.mxu1 %v7136_v46 }
  0xba   : > { %v606_v45 = vpop.permute.xlu0 %605  ;;  %3511 = vmatprep.subr.msk.mxu0 %vm4079_vm5, %v4083_v3  ;;  %969 = vmatprep.subr.mxu1 %v4384_v9 }
  0xbb   : > { %v608_v63 = vpop.permute.xlu1 %607  ;;  %3502 = vmatmul.mubr.msk.f32.gmra.mxu0 %vm717_vm13, %v4379_v54  ;;  %3510 = vmatmul.mubr.msk.f32.gmra.mxu1 %vm717_vm13, %v4379_v54  ;;  %v641_v1 = vsel %vm6963_vm10, %v604_v60, %v606_v45 }
  0xbc   : > { %3512 = vmatpush1.msk.msra.mxu0 %vm4026_vm0, %v4030_v50  ;;  %v640_v28 = vsel %vm6963_vm10, %v606_v45, %v608_v63  ;;  %970 = vmatpush1.msra.mxu1 %v4389_v61 }
  0xbd   : > { %896 = vmatprep.subr.mxu0 %v640_v28  ;;  %3519 = vmatprep.subr.msk.mxu1 %vm4117_vm4, %v4121_v11 }
  0xbe   : > { %897 = vmatpush1.msra.mxu0 %v641_v1  ;;  %v610_v26 = vpop.permute.xlu0 %609  ;;  %3520 = vmatpush1.msk.msra.mxu1 %vm7141_vm12, %v4093_v5 }
  0xbf   : > { %898 = vmatprep.subr.mxu0 %v695_v53  ;;  %v612_v29 = vpop.permute.xlu1 %611  ;;  %v4415_v48 = vsel %vm6963_vm10, %v608_v63, %v610_v26  ;;  %942 = vmatprep.mubr.f32.mxu0 %v7136_v46 }
  0xc0   : > { %899 = vmatpush1.msra.mxu0 %v4289_v22  ;;  %v4421_v60 = vsel %vm6963_vm10, %v610_v26, %v612_v29  ;;  %1019 = vmatprep.mubr.f32.mxu1 %v7136_v46 }
  0xc1   : > { %3513 = vmatprep.subr.msk.mxu0 %vm4026_vm0, %v4030_v50  ;;  %973 = vmatprep.subr.mxu1 %v4421_v60 }
  0xc2   : > { %3514 = vmatpush1.msk.msra.mxu0 %vm4015_vm15, %v3989_v41  ;;  %974 = vmatpush1.msra.mxu1 %v4415_v48  ;;  %v671_v8 = vpop.permute.xlu0 %670 }
  0xc3   : > { %902 = vmatprep.subr.mxu0 %v641_v1  ;;  %975 = vmatprep.subr.mxu1 %v4389_v61  ;;  %v673_v59 = vpop.permute.xlu1 %672 }
  0xc4   : > { %903 = vmatpush1.msra.mxu0 %v4317_v19  ;;  %976 = vmatpush1.msra.mxu1 %v694_v34 }
  0xc5   : > { %904 = vmatprep.subr.mxu0 %v4289_v22  ;;  %3521 = vmatprep.subr.msk.mxu1 %vm7141_vm12, %v4093_v5  ;;  %v690_v22 = vsel %vm7139_vm2, %v671_v8, %v673_v59 }
  0xc6   : > { %905 = vmatpush1.msra.mxu0 %v4298_v23  ;;  %3522 = vmatpush1.msk.msra.mxu1 %vm4079_vm5, %v4083_v3  ;;  %v675_v27 = vpop.permute.xlu0 %674 }
  0xc7   : > { %3515 = vmatprep.subr.msk.mxu0 %vm4015_vm15, %v3989_v41  ;;  %979 = vmatprep.subr.mxu1 %v4415_v48  ;;  %v4446_v40 = vpop.permute.xlu1 %676  ;;  %vm7143_vm15 = vmmov %vm7139_vm2 }
  0xc8   : > { %3516 = vmatpush1.msk.msra.mxu0 %vm4003_vm14, %v3972_v37  ;;  %980 = vmatpush1.msra.mxu1 %v640_v28  ;;  %vm7142_vm14 = vmmov %vm7139_vm2  ;;  %v4475_v41 = vsel %vm7143_vm15, %v675_v27, %v4446_v40  ;;  %vm7155_vm15 = vnez %v7066_v36 }
  0xc9   : > { %908 = vmatprep.subr.mxu0 %v4317_v19  ;;  %981 = vmatprep.subr.mxu1 %v694_v34  ;;  %v691_v19 = vsel %vm7142_vm14, %v4368_v33, %v671_v8  ;;  %vm7150_vm14 = vmmov %vm7139_vm2 }
  0xca   : > { %909 = vmatpush1.msra.mxu0 %v4313_v17  ;;  %982 = vmatpush1.msra.mxu1 %v695_v53  ;;  %v614_v47 = vpop.permute.xlu0 %613 }
  0xcb   : > { %3517 = vmatmul.mubr.msk.f32.vlgmr.msra.gmra.mxu0 %vm717_vm13, %v4359_v14  ;;  %3523 = vmatprep.subr.msk.mxu1 %vm4079_vm5, %v4083_v3  ;;  %v616_v37 = vpop.permute.xlu1 %615  ;;  %v637_v44 = vsel %vm6963_vm10, %v612_v29, %v614_v47  ;;  %vm7145_vm5 = vmmov %vm7139_vm2 }
  0xcc   : > { %1046 = vmatprep.subr.mxu0 %v690_v22  ;;  %3524 = vmatpush1.msk.msra.mxu1 %vm4026_vm0, %v4030_v50  ;;  %v636_v17 = vsel %vm6963_vm10, %v614_v47, %v616_v37  ;;  %vm7144_vm0 = vnez %v7100_v12  ;;  %v4484_v49 = vsel %vm7145_vm5, %v673_v59, %v675_v27  ;;  %vm7156_vm5 = vnez %v7085_v62 }
  0xcd   : > { %1047 = vmatpush1.msra.mxu0 %v691_v19  ;;  %985 = vmatprep.subr.mxu1 %v640_v28 }
  0xce   : > { %3527 = vmatprep.subr.msk.mxu0 %vm4161_vm9, %v4165_v31  ;;  %948 = vmatprep.mubr.f32.mxu0 %v7136_v46  ;;  %v618_v50 = vpop.permute.xlu0 %617 }
  0xcf   : > { %986 = vmatpush1.msra.mxu1 %v641_v1  ;;  %3528 = vmatpush1.msk.msra.mxu0 %vm7144_vm0, %v4131_v13  ;;  %v620_v2 = vpop.permute.xlu1 %619  ;;  %v4503_v23 = vsel %vm6963_vm10, %v616_v37, %v618_v50 }
  0xd0   : > { %3518 = vmatmul.mubr.msk.f32.gmra.mxu0 %vm717_vm13, %v4379_v54  ;;  %3525 = vmatmul.mubr.msk.f32.vlgmr.msra.gmra.mxu1 %vm717_vm13, %v4359_v14  ;;  %v4497_v3 = vsel %vm6963_vm10, %v618_v50, %v620_v2 }
  0xd1   : > { %1050 = vmatprep.subr.mxu0 %v636_v17  ;;  %1123 = vmatprep.subr.mxu1 %v4475_v41 }
  0xd2   : > { %1051 = vmatpush1.msra.mxu0 %v637_v44  ;;  %1124 = vmatpush1.msra.mxu1 %v4484_v49  ;;  %v679_v34 = vpop.permute.xlu0 %678 }
  0xd3   : > { %1052 = vmatprep.subr.mxu0 %v691_v19  ;;  %3535 = vmatprep.subr.msk.mxu1 %vm4197_vm3, %v4201_v56  ;;  %v681_v33 = vpop.permute.xlu1 %680 }
  0xd4   : > { %1025 = vmatprep.mubr.f32.mxu1 %v7136_v46  ;;  %1053 = vmatpush1.msra.mxu0 %v4384_v9 }
  0xd5   : > { %3536 = vmatpush1.msk.msra.mxu1 %vm7146_vm8, %v4175_v43  ;;  %3529 = vmatprep.subr.msk.mxu0 %vm7144_vm0, %v4131_v13 }
  0xd6   : > { %3526 = vmatmul.mubr.msk.f32.gmra.mxu1 %vm717_vm13, %v4379_v54  ;;  %1127 = vmatprep.subr.mxu1 %v4497_v3  ;;  %v683_v53 = vpop.permute.xlu0 %682 }
  0xd7   : > { %3530 = vmatpush1.msk.msra.mxu0 %vm4117_vm4, %v4121_v11  ;;  %1128 = vmatpush1.msra.mxu1 %v4503_v23  ;;  %v702_v30 = vsel %vm7150_vm14, %v683_v53, %v4333_v24 }
  0xd8   : > { %1056 = vmatprep.subr.mxu0 %v637_v44  ;;  %1129 = vmatprep.subr.mxu1 %v4484_v49 }
  0xd9   : > { %1057 = vmatpush1.msra.mxu0 %v4421_v60  ;;  %1130 = vmatpush1.msra.mxu1 %v690_v22 }
  0xda   : > { %1058 = vmatprep.subr.mxu0 %v4384_v9  ;;  %3537 = vmatprep.subr.msk.mxu1 %vm7146_vm8, %v4175_v43  ;;  %v686_v9 = vsel %vm7139_vm2, %v679_v34, %v681_v33  ;;  %v624_v4 = vpop.permute.xlu0 %623 }
  0xdb   : > { %1059 = vmatpush1.msra.mxu0 %v4389_v61  ;;  %3538 = vmatpush1.msk.msra.mxu1 %vm4161_vm9, %v4165_v31 }
  0xdc   : > { %3531 = vmatprep.subr.msk.mxu0 %vm4117_vm4, %v4121_v11  ;;  %1133 = vmatprep.subr.mxu1 %v4503_v23  ;;  %vm7147_vm4 = vmmov %vm7139_vm2 }
  0xdd   : > { %3532 = vmatpush1.msk.msra.mxu0 %vm7141_vm12, %v4093_v5  ;;  %1134 = vmatpush1.msra.mxu1 %v636_v17  ;;  %v687_v10 = vsel %vm7147_vm4, %v4446_v40, %v679_v34  ;;  %v622_v5 = vpop.permute.xlu1 %621  ;;  %vm7149_vm12 = vmmov %vm7139_vm2  ;;  %vm7158_vm2 = vnez %v7087_v0  ;;  %vm7160_vm4 = vnez %v7093_v6 }
  0xde   : > { %1062 = vmatprep.subr.mxu0 %v4421_v60  ;;  %1135 = vmatprep.subr.mxu1 %v690_v22  ;;  %v632_v11 = vsel %vm6963_vm10, %v622_v5, %v624_v4  ;;  %v633_v12 = vsel %vm6963_vm10, %v620_v2, %v622_v5 }
  0xdf   : > { %1063 = vmatpush1.msra.mxu0 %v4415_v48  ;;  %1096 = vmatprep.mubr.f32.mxu0 %v7136_v46 }
  0xe0   : > { %1136 = vmatpush1.msra.mxu1 %v691_v19  ;;  %3533 = vmatmul.mubr.msk.f32.vlgmr.msra.gmra.mxu0 %vm717_vm13, %v4359_v14 }
  0xe1   : > { %3539 = vmatprep.subr.msk.mxu1 %vm4161_vm9, %v4165_v31  ;;  %1200 = vmatprep.subr.mxu0 %v686_v9  ;;  %vm7148_vm9 = vnez %v7123_v57  ;;  %v626_v31 = vpop.permute.xlu1 %625 }
  0xe2   : > { %3540 = vmatpush1.msk.msra.mxu1 %vm7144_vm0, %v4131_v13  ;;  %1201 = vmatpush1.msra.mxu0 %v687_v10  ;;  %v685_v13 = vsel %vm7149_vm12, %v681_v33, %v683_v53  ;;  %v631_v61 = vsel %vm6963_vm10, %v624_v4, %v626_v31  ;;  %v630_v24 = vsel %vm6963_vm10, %v626_v31, %v4339_v52  ;;  %vm6962_vm0 = vcmask 130048  }
  0xe3   : > { %1139 = vmatprep.subr.mxu1 %v636_v17  ;;  %3543 = vmatprep.subr.msk.mxu0 %vm4239_vm11, %v4243_v16  ;;  %vm7163_vm12 = vnez %v7095_v7 }
  0xe4   : > { %1102 = vmatprep.mubr.f32.mxu0 %v7136_v46  ;;  %1140 = vmatpush1.msra.mxu1 %v637_v44 }
  0xe5   : > { %1173 = vmatprep.mubr.f32.mxu1 %v7136_v46  ;;  %3544 = vmatpush1.msk.msra.mxu0 %vm7148_vm9, %v4211_v58 }
  0xe6   : > { %3534 = vmatmul.mubr.msk.f32.gmra.mxu0 %vm717_vm13, %v4379_v54  ;;  %3541 = vmatmul.mubr.msk.f32.vlgmr.msra.gmra.mxu1 %vm717_vm13, %v4359_v14 }
  0xe7   : > { %1204 = vmatprep.subr.mxu0 %v632_v11  ;;  %1277 = vmatprep.subr.mxu1 %v702_v30  ;;  %v4629_v57 = vpop.permute.xlu0 %714 }
  0xe8   : > { %1205 = vmatpush1.msra.mxu0 %v633_v12  ;;  %1278 = vmatpush1.msra.mxu1 %v685_v13  ;;  %v4626_v39 = vpop.permute.xlu1 %709 }
  0xe9   : > { %1206 = vmatprep.subr.mxu0 %v687_v10  ;;  %1279 = vmatprep.subr.mxu1 %v7136_v46 }
  0xea   : > { %1179 = vmatprep.mubr.f32.mxu1 %v7136_v46  ;;  %1207 = vmatpush1.msra.mxu0 %v4475_v41 }
  0xeb   : > { %3551 = vmatpush1.msk.msra.mxu1 %vm4249_vm7, %v4253_v21  ;;  %3545 = vmatprep.subr.msk.mxu0 %vm7148_vm9, %v4211_v58 }
  0xec   : > { %3542 = vmatmul.mubr.msk.f32.gmra.mxu1 %vm717_vm13, %v4379_v54  ;;  %1281 = vmatprep.subr.mxu1 %v630_v24 }
  0xed   : > { %3546 = vmatpush1.msk.msra.mxu0 %vm4197_vm3, %v4201_v56  ;;  %1282 = vmatpush1.msra.mxu1 %v631_v61 }
  0xee   : > { %1210 = vmatprep.subr.mxu0 %v633_v12  ;;  %1283 = vmatprep.subr.mxu1 %v685_v13 }
  0xef   : > { %1211 = vmatpush1.msra.mxu0 %v4497_v3  ;;  %1284 = vmatpush1.msra.mxu1 %v686_v9 }
  0xf0   : > { %1212 = vmatprep.subr.mxu0 %v4475_v41  ;;  %3552 = vmatprep.subr.msk.mxu1 %vm4249_vm7, %v4253_v21  ;;  %vm7151_vm7 = vnez %v7060_v32 }
  0xf1   : > { %1213 = vmatpush1.msra.mxu0 %v4484_v49  ;;  %3553 = vmatpush1.msk.msra.mxu1 %vm4239_vm11, %v4243_v16 }
  0xf2   : > { %3547 = vmatprep.subr.msk.mxu0 %vm4197_vm3, %v4201_v56  ;;  %1287 = vmatprep.subr.mxu1 %v631_v61  ;;  %vm7153_vm3 = vnez %v7064_v35 }
  0xf3   : > { %3548 = vmatpush1.msk.msra.mxu0 %vm7146_vm8, %v4175_v43  ;;  %1288 = vmatpush1.msra.mxu1 %v632_v11  ;;  %vm7157_vm8 = vnez %v7072_v42 }
  0xf4   : > { %1216 = vmatprep.subr.mxu0 %v4497_v3  ;;  %1289 = vmatprep.subr.mxu1 %v686_v9 }
  0xf5   : > { %1217 = vmatpush1.msra.mxu0 %v4503_v23  ;;  %1250 = vmatprep.mubr.f32.mxu0 %v7136_v46 }
  0xf6   : > { %1290 = vmatpush1.msra.mxu1 %v687_v10  ;;  %3549 = vmatmul.mubr.msk.f32.vlgmr.msra.gmra.mxu0 %vm717_vm13, %v4359_v14 }
  0xf7   : > { %3554 = vmatprep.subr.msk.mxu1 %vm4239_vm11, %v4243_v16  ;;  %1256 = vmatprep.mubr.f32.mxu0 %v7136_v46  ;;  %vm7152_vm11 = vnez %v7080_v51 }
  0xf8   : > { %3555 = vmatpush1.msk.msra.mxu1 %vm7148_vm9, %v4211_v58  ;;  %1327 = vmatprep.mubr.f32.mxu1 %v7136_v46  ;;  %vm7162_vm9 = vnez %v7102_v25 }
  0xf9   : > { %1293 = vmatprep.subr.mxu1 %v632_v11  ;;  %v4734_v11 = vld [vmem:[%s6905_s4 + $0x8] sm:$0xff] }
  0xfa   : > { %1294 = vmatpush1.msra.mxu1 %v633_v12  ;;  %3550 = vmatmul.mubr.msk.f32.gmra.mxu0 %vm717_vm13, %v4379_v54 }
  0xfb   : > { %3556 = vmatmul.mubr.msk.f32.vlgmr.msra.gmra.mxu1 %vm717_vm13, %v4359_v14  ;;  %3568 = vmatprep.mubr.msk.f32.mxu0 %vm6962_vm0, %v4734_v11 }
  0xfc   : > { %1333 = vmatprep.mubr.f32.mxu1 %v7136_v46 }
  0xff   : > { %3557 = vmatmul.mubr.msk.f32.gmra.mxu1 %vm717_vm13, %v4379_v54  ;;  %vm7154_vm13 = vnez %v7068_v38 }
 0x100   : > { %3582 = vmatprep.mubr.msk.f32.mxu1 %vm6962_vm0, %v4734_v11 }
 0x177   : > { %v867_v43 = vpop.f32.mrf.mxu1  ;;  %v790_v55 = vpop.f32.mrf.mxu0 }
 0x178   : > { %v791_v56 = vadd.f32 %v790_v55, %v4626_v39  ;;  %v868_v58 = vadd.f32 %v867_v43, %v4626_v39 }
 0x179   : > { %v869_v15 = vpop.f32.mrf.mxu1  ;;  %v792_v16 = vpop.f32.mrf.mxu0 }
 0x17a   : > { %v4632_v20 = vmax.f32 %v791_v56, 0.0  ;;  %v793_v21 = vadd.f32 %v792_v16, %v4626_v39  ;;  %v4635_v52 = vmax.f32 %v868_v58, 0.0  ;;  %v870_v49 = vadd.f32 %v869_v15, %v4626_v39 }
 0x17b   : > { %v796_v14 = vpop.f32.mrf.mxu0  ;;  %v873_v54 = vpop.f32.mrf.mxu1 }
 0x17c   : > { %v874_v45 = vadd.f32 %v873_v54, %v4629_v57  ;;  %v1443_v63 = vsel %vm7151_vm7, %v4635_v52, 0.0  ;;  %v4641_v1 = vmax.f32 %v793_v21, 0.0  ;;  %v1441_v26 = vsel %vm7152_vm11, %v4632_v20, 0.0 }
 0x17d   : > { %1488 = vrot.lane.b32.xlu1 %v1443_v63, %s3843_s28  ;;  %v798_v28 = vpop.f32.mrf.mxu0  ;;  %v797_v29 = vadd.f32 %v796_v14, %v4629_v57  ;;  %1480 = vrot.lane.b32.xlu0 %v1441_v26, %s3843_s28  ;;  %v875_v19 = vpop.f32.mrf.mxu1  ;;  %v4698_v34 = vmax.f32 %v870_v49, 0.0 }
 0x17e   : > { %v4648_v48 = vmax.f32 %v874_v45, 0.0  ;;  %v799_v60 = vadd.f32 %v798_v28, %v4629_v57  ;;  %v1442_v27 = vsel %vm7153_vm3, %v4641_v1, 0.0  ;;  %v876_v41 = vadd.f32 %v875_v19, %v4629_v57 }
 0x17f   : > { %v4652_v8 = vmax.f32 %v797_v29, 0.0  ;;  %v1444_v9 = vsel %vm7155_vm15, %v4698_v34, 0.0 }
 0x180   : > { %v4654_v59 = vmax.f32 %v799_v60, 0.0  ;;  %3558 = vmatprep.subr.msk.mxu0 %vm7151_vm7, %v4648_v48  ;;  %v1461_v22 = vsel %vm7151_vm7, %v4648_v48, 0.0  ;;  %v4696_v23 = vmax.f32 %v876_v41, 0.0 }
 0x181   : > { %1596 = vrot.lane.b32.xlu1 %v1443_v63, %s3842_s27  ;;  %1484 = vrot.lane.b32.xlu0 %v1442_v27, %s3843_s28  ;;  %v1459_v40 = vsel %vm7152_vm11, %v4652_v8, 0.0 }
 0x182   : > { %3559 = vmatpush1.msk.msra.mxu0 %vm7153_vm3, %v4654_v59  ;;  %v1460_v37 = vsel %vm7153_vm3, %v4654_v59, 0.0  ;;  %v1462_v5 = vsel %vm7155_vm15, %v4696_v23, 0.0 }
 0x183   : > { %3560 = vmatprep.subr.msk.mxu0 %vm7151_vm7, %v4635_v52 }
 0x184   : > { %3561 = vmatpush1.msk.msra.mxu0 %vm7153_vm3, %v4641_v1 }
 0x185   : > { %1482 = vrot.lane.b32.xlu1 %v1459_v40, %s3843_s28  ;;  %1592 = vrot.lane.b32.xlu0 %v1442_v27, %s3842_s27 }
 0x189   : > { %1590 = vrot.lane.b32.xlu1 %v1459_v40, %s3842_s27  ;;  %1490 = vrot.lane.b32.xlu0 %v1461_v22, %s3843_s28 }
 0x18b   : > { %v944_v47 = vpop.f32.mrf.mxu0 }
 0x18c   : > { %v945_v50 = vadd.f32 %v944_v47, %v4626_v39 }
 0x18d   : > { %v946_v17 = vpop.f32.mrf.mxu0  ;;  %1486 = vrot.lane.b32.xlu1 %v1460_v37, %s3843_s28  ;;  %1598 = vrot.lane.b32.xlu0 %v1461_v22, %s3842_s27 }
 0x18e   : > { %v4700_v33 = vmax.f32 %v945_v50, 0.0  ;;  %v947_v4 = vadd.f32 %v946_v17, %v4626_v39 }
 0x190   : > { %v950_v44 = vpop.f32.mrf.mxu0  ;;  %v1021_v53 = vpop.f32.mrf.mxu1  ;;  %v1445_v13 = vsel %vm7154_vm13, %v4700_v33, 0.0  ;;  %v4745_v30 = vmax.f32 %v947_v4, 0.0 }
 0x191   : > { %v951_v2 = vadd.f32 %v950_v44, %v4629_v57  ;;  %1594 = vrot.lane.b32.xlu1 %v1460_v37, %s3842_s27  ;;  %1588 = vrot.lane.b32.xlu0 %v1441_v26, %s3842_s27  ;;  %v1022_v10 = vadd.f32 %v1021_v53, %v4626_v39 }
 0x192   : > { %v1023_v31 = vpop.f32.mrf.mxu1  ;;  %v952_v61 = vpop.f32.mrf.mxu0  ;;  %v1446_v56 = vsel %vm7157_vm8, %v4745_v30, 0.0 }
 0x193   : > { %v4694_v3 = vmax.f32 %v951_v2, 0.0  ;;  %v4736_v12 = vmax.f32 %v1022_v10, 0.0  ;;  %v953_v43 = vadd.f32 %v952_v61, %v4629_v57  ;;  %v1024_v45 = vadd.f32 %v1023_v31, %v4626_v39 }
 0x195   : > { %3570 = vmatprep.subr.msk.mxu1 %vm7154_vm13, %v4694_v3  ;;  %3795 = vrot.lane.b32.xlu1 %v7136_v46, %s3843_s28  ;;  %v1447_v24 = vsel %vm7156_vm5, %v4736_v12, 0.0  ;;  %v4759_v15 = vmax.f32 %v953_v43, 0.0  ;;  %v1463_v16 = vsel %vm7154_vm13, %v4694_v3, 0.0  ;;  %v4779_v28 = vmax.f32 %v1024_v45, 0.0 }
 0x196   : > { %3571 = vmatpush1.msk.msra.mxu1 %vm7155_vm15, %v4696_v23  ;;  %3800 = vrot.lane.b32.xlu0 %v7136_v46, %s3842_s27  ;;  %v1027_v55 = vpop.f32.mrf.mxu1 }
 0x197   : > { %3572 = vmatprep.subr.msk.mxu1 %vm7154_vm13, %v4700_v33  ;;  %v1028_v58 = vadd.f32 %v1027_v55, %v4629_v57  ;;  %v1464_v14 = vsel %vm7157_vm8, %v4759_v15, 0.0  ;;  %v1448_v22 = vsel %vm7158_vm2, %v4779_v28, 0.0 }
 0x198   : > { %3573 = vmatpush1.msk.msra.mxu1 %vm7155_vm15, %v4698_v34  ;;  %v1029_v63 = vpop.f32.mrf.mxu1 }
 0x199   : > { %3805 = vrot.lane.b32.xlu1 %v7136_v46, %s3843_s28  ;;  %v4766_v21 = vmax.f32 %v1028_v58, 0.0  ;;  %v1030_v26 = vadd.f32 %v1029_v63, %v4629_v57 }
 0x19a   : > { %1492 = vrot.lane.b32.xlu0 %v1444_v9, %s3843_s28 }
 0x19b   : > { %v1465_v54 = vsel %vm7156_vm5, %v4766_v21, 0.0  ;;  %v4785_v27 = vmax.f32 %v1030_v26, 0.0 }
 0x19d   : > { %1600 = vrot.lane.b32.xlu1 %v1444_v9, %s3842_s27  ;;  %v1466_v41 = vsel %vm7158_vm2, %v4785_v27, 0.0 }
 0x19e   : > { %1602 = vrot.lane.b32.xlu0 %v1462_v5, %s3842_s27 }
 0x1a0   : > { %v1098_v29 = vpop.f32.mrf.mxu0 }
 0x1a1   : > { %1496 = vrot.lane.b32.xlu1 %v1445_v13, %s3843_s28  ;;  %v1099_v60 = vadd.f32 %v1098_v29, %v4626_v39 }
 0x1a2   : > { %1494 = vrot.lane.b32.xlu0 %v1462_v5, %s3843_s28  ;;  %v1100_v47 = vpop.f32.mrf.mxu0 }
 0x1a3   : > { %v4792_v37 = vmax.f32 %v1099_v60, 0.0  ;;  %v1101_v17 = vadd.f32 %v1100_v47, %v4626_v39 }
 0x1a5   : > { %1504 = vrot.lane.b32.xlu1 %v1447_v24, %s3843_s28  ;;  %v1449_v50 = vsel %vm7160_vm4, %v4792_v37, 0.0  ;;  %v4806_v2 = vmax.f32 %v1101_v17, 0.0 }
 0x1a6   : > { %1500 = vrot.lane.b32.xlu0 %v1446_v56, %s3843_s28  ;;  %v1175_v40 = vpop.f32.mrf.mxu1  ;;  %v1104_v44 = vpop.f32.mrf.mxu0 }
 0x1a7   : > { %v1176_v19 = vadd.f32 %v1175_v40, %v4626_v39  ;;  %7161 = vst [vmem:[#allocation16_spill] sm:$0xff] %v4806_v2  ;;  %v1105_v53 = vadd.f32 %v1104_v44, %v4629_v57  ;;  %v1450_v61 = vsel %vm7163_vm12, %v4806_v2, 0.0 }
 0x1a8   : > { %v1177_v9 = vpop.f32.mrf.mxu1  ;;  %v1106_v10 = vpop.f32.mrf.mxu0 }
 0x1a9   : > { %1604 = vrot.lane.b32.xlu1 %v1445_v13, %s3842_s27  ;;  %v4801_v49 = vmax.f32 %v1176_v19, 0.0  ;;  %v4814_v5 = vmax.f32 %v1105_v53, 0.0  ;;  %v1107_v13 = vadd.f32 %v1106_v10, %v4629_v57  ;;  %v7170_v10 = vld [vmem:[#allocation11_spill] sm:$0xff] }
 0x1aa   : > { %1606 = vrot.lane.b32.xlu0 %v1463_v16, %s3842_s27  ;;  %vm7171_vm0 = vnez %v7170_v10 }
 0x1ab   : > { %7159 = vst [vmem:[#allocation15_spill] sm:$0xff] %v4801_v49  ;;  %v1451_v4 = vsel %vm7162_vm9, %v4801_v49, 0.0  ;;  %v4823_v43 = vmax.f32 %v1107_v13, 0.0  ;;  %v1467_v55 = vsel %vm7160_vm4, %v4814_v5, 0.0 }
 0x1ac   : > { %v1181_v31 = vpop.f32.mrf.mxu1 }
 0x1ad   : > { %1498 = vrot.lane.b32.xlu1 %v1463_v16, %s3843_s28  ;;  %v1468_v58 = vsel %vm7163_vm12, %v4823_v43, 0.0 }
 0x1ae   : > { %1502 = vrot.lane.b32.xlu0 %v1464_v14, %s3843_s28 }
 0x1b1   : > { %1506 = vrot.lane.b32.xlu1 %v1465_v54, %s3843_s28 }
 0x1b2   : > { %1610 = vrot.lane.b32.xlu0 %v1464_v14, %s3842_s27  ;;  %v1178_v14 = vadd.f32 %v1177_v9, %v4626_v39 }
 0x1b4   : > { %v4843_v45 = vmax.f32 %v1178_v14, 0.0 }
 0x1b5   : > { %1614 = vrot.lane.b32.xlu1 %v1465_v54, %s3842_s27  ;;  %v1183_v54 = vpop.f32.mrf.mxu1 }
 0x1b6   : > { %1608 = vrot.lane.b32.xlu0 %v1446_v56, %s3842_s27  ;;  %7164 = vst [vmem:[#allocation17_spill] sm:$0xff] %v4843_v45  ;;  %v1184_v63 = vadd.f32 %v1183_v54, %v4629_v57  ;;  %v1252_v26 = vpop.f32.mrf.mxu0 }
 0x1b7   : > { %v1253_v29 = vadd.f32 %v1252_v26, %v4626_v39 }
 0x1b8   : > { %v4849_v60 = vmax.f32 %v1184_v63, 0.0  ;;  %v1254_v19 = vpop.f32.mrf.mxu0  ;;  %v7175_v63 = vld [vmem:[#allocation12_spill] sm:$0xff] }
 0x1b9   : > { %1612 = vrot.lane.b32.xlu1 %v1447_v24, %s3842_s27  ;;  %v1182_v24 = vadd.f32 %v1181_v31, %v4629_v57  ;;  %v4856_v17 = vmax.f32 %v1253_v29, 0.0  ;;  %v1255_v44 = vadd.f32 %v1254_v19, %v4626_v39  ;;  %vm7176_vm10 = vnez %v7175_v63  ;;  %v1696_v63 = vld [vmem:[%s6906_s5] sm:$0xff] }
 0x1ba   : > { %1508 = vrot.lane.b32.xlu0 %v1448_v22, %s3843_s28  ;;  %7165 = vst [vmem:[#allocation18_spill] sm:$0xff] %v4849_v60  ;;  %v1258_v53 = vpop.f32.mrf.mxu0 }
 0x1bb   : > { %v4830_v56 = vmax.f32 %v1182_v24, 0.0  ;;  %v1329_v40 = vpop.f32.mrf.mxu1  ;;  %7168 = vst [vmem:[#allocation19_spill] sm:$0xff] %v4856_v17  ;;  %v4870_v13 = vmax.f32 %v1255_v44, 0.0  ;;  %v1259_v31 = vadd.f32 %v1258_v53, %v4629_v57 }
 0x1bc   : > { %v1260_v24 = vpop.f32.mrf.mxu0 }
 0x1bd   : > { %1616 = vrot.lane.b32.xlu1 %v1448_v22, %s3842_s27  ;;  %v1469_v16 = vsel %vm7162_vm9, %v4830_v56, 0.0  ;;  %v7166_v22 = vld [vmem:[#allocation10_spill] sm:$0xff]  ;;  %7172 = vst [vmem:[#allocation21_spill] sm:$0xff] %v4870_v13  ;;  %v1261_v14 = vadd.f32 %v1260_v24, %v4629_v57  ;;  %v1454_v26 = vsel %vm7176_vm10, %v4870_v13, 0.0 }
 0x1be   : > { %1618 = vrot.lane.b32.xlu0 %v1466_v41, %s3842_s27  ;;  %vm7167_vm14 = vnez %v7166_v22 }
 0x1bf   : > { %v1452_v47 = vsel %vm7167_vm14, %v4843_v45, 0.0 }
 0x1c1   : > { %1512 = vrot.lane.b32.xlu1 %v1449_v50, %s3843_s28 }
 0x1c2   : > { %1510 = vrot.lane.b32.xlu0 %v1466_v41, %s3843_s28  ;;  %v1330_v41 = vadd.f32 %v1329_v40, %v4626_v39  ;;  %v4887_v40 = vmax.f32 %v1261_v14, 0.0 }
 0x1c4   : > { %v4865_v9 = vmax.f32 %v1330_v41, 0.0  ;;  %7177 = vst [vmem:[#allocation23_spill] sm:$0xff] %v4887_v40  ;;  %v1472_v41 = vsel %vm7176_vm10, %v4887_v40, 0.0  ;;  %vm7182_vm10 = vcmp.lt.s32.totalorder %v3937_v18, 1 }
 0x1c5   : > { %1520 = vrot.lane.b32.xlu1 %v1451_v4, %s3843_s28 }
 0x1c6   : > { %1516 = vrot.lane.b32.xlu0 %v1450_v61, %s3843_s28  ;;  %7169 = vst [vmem:[#allocation20_spill] sm:$0xff] %v4865_v9 }
 0x1c9   : > { %1620 = vrot.lane.b32.xlu1 %v1449_v50, %s3842_s27  ;;  %v1470_v50 = vsel %vm7167_vm14, %v4849_v60, 0.0 }
 0x1ca   : > { %1622 = vrot.lane.b32.xlu0 %v1467_v55, %s3842_s27 }
 0x1cd   : > { %1514 = vrot.lane.b32.xlu1 %v1467_v55, %s3843_s28 }
 0x1ce   : > { %1518 = vrot.lane.b32.xlu0 %v1468_v58, %s3843_s28 }
 0x1d1   : > { %1522 = vrot.lane.b32.xlu1 %v1469_v16, %s3843_s28 }
 0x1d2   : > { %1626 = vrot.lane.b32.xlu0 %v1468_v58, %s3842_s27  ;;  %v1455_v58 = vsel %vm4225_vm6, %v4865_v9, 0.0 }
 0x1d5   : > { %1630 = vrot.lane.b32.xlu1 %v1469_v16, %s3842_s27  ;;  %v4878_v16 = vmax.f32 %v1259_v31, 0.0 }
 0x1d6   : > { %1624 = vrot.lane.b32.xlu0 %v1450_v61, %s3842_s27  ;;  %v1331_v61 = vpop.f32.mrf.mxu1 }
 0x1d7   : > { %7174 = vst [vmem:[#allocation22_spill] sm:$0xff] %v4878_v16  ;;  %v1332_v14 = vadd.f32 %v1331_v61, %v4626_v39 }
 0x1d8   : > { %v1335_v54 = vpop.f32.mrf.mxu1 }
 0x1d9   : > { %1628 = vrot.lane.b32.xlu1 %v1451_v4, %s3842_s27  ;;  %v1453_v4 = vsel %vm7171_vm0, %v4856_v17, 0.0  ;;  %v1336_v29 = vadd.f32 %v1335_v54, %v4629_v57  ;;  %v4918_v13 = vmax.f32 %v1332_v14, 0.0 }
 0x1da   : > { %1524 = vrot.lane.b32.xlu0 %v1452_v47, %s3843_s28  ;;  %v1337_v44 = vpop.f32.mrf.mxu1 }
 0x1db   : > { %v4894_v19 = vmax.f32 %v1336_v29, 0.0  ;;  %v1338_v31 = vadd.f32 %v1337_v44, %v4629_v57  ;;  %7180 = vst [vmem:[#allocation26_spill] sm:$0xff] %v4918_v13  ;;  %v1456_v44 = vsel %vm4230_vm1, %v4918_v13, 0.0 }
 0x1dd   : > { %1632 = vrot.lane.b32.xlu1 %v1452_v47, %s3842_s27  ;;  %v1471_v47 = vsel %vm7171_vm0, %v4878_v16, 0.0  ;;  %7178 = vst [vmem:[#allocation24_spill] sm:$0xff] %v4894_v19  ;;  %v4914_v29 = vmax.f32 %v1338_v31, 0.0 }
 0x1de   : > { %1634 = vrot.lane.b32.xlu0 %v1470_v50, %s3842_s27 }
 0x1df   : > { %7179 = vst [vmem:[#allocation25_spill] sm:$0xff] %v4914_v29 }
 0x1e1   : > { %1528 = vrot.lane.b32.xlu1 %v1453_v4, %s3843_s28 }
 0x1e2   : > { %1526 = vrot.lane.b32.xlu0 %v1470_v50, %s3843_s28 }
 0x1e5   : > { %1536 = vrot.lane.b32.xlu1 %v1455_v58, %s3843_s28 }
 0x1e6   : > { %1532 = vrot.lane.b32.xlu0 %v1454_v26, %s3843_s28 }
 0x1e9   : > { %1636 = vrot.lane.b32.xlu1 %v1453_v4, %s3842_s27  ;;  %v1473_v4 = vsel %vm4225_vm6, %v4894_v19, 0.0  ;;  %vm7183_vm6 = vmmov %vm7182_vm10 }
 0x1ea   : > { %1638 = vrot.lane.b32.xlu0 %v1471_v47, %s3842_s27 }
 0x1ed   : > { %1530 = vrot.lane.b32.xlu1 %v1471_v47, %s3843_s28 }
 0x1ee   : > { %1534 = vrot.lane.b32.xlu0 %v1472_v41, %s3843_s28 }
 0x1ef   : > { %v4901_v50 = vpop.permute.xlu1 %1488  ;;  %v4903_v53 = vpop.permute.xlu0 %1480 }
 0x1f1   : > { %1538 = vrot.lane.b32.xlu1 %v1473_v4, %s3843_s28 }
 0x1f2   : > { %1642 = vrot.lane.b32.xlu0 %v1472_v41, %s3842_s27  ;;  %v1474_v41 = vsel %vm4230_vm1, %v4914_v29, 0.0  ;;  %vm7184_vm1 = vmmov %vm7183_vm6 }
 0x1f3   : > { %v4911_v24 = vpop.permute.xlu1 %1596  ;;  %v1485_v54 = vpop.permute.xlu0 %1484 }
 0x1f4   : > { %v4951_v14 = vsel %vm7184_vm1, %v1485_v54, %v4901_v50 }
 0x1f5   : > { %1646 = vrot.lane.b32.xlu1 %v1473_v4, %s3842_s27 }
 0x1f6   : > { %1640 = vrot.lane.b32.xlu0 %v1454_v26, %s3842_s27 }
 0x1f7   : > { %v1483_v47 = vpop.permute.xlu1 %1482  ;;  %v1593_v9 = vpop.permute.xlu0 %1592 }
 0x1f9   : > { %1644 = vrot.lane.b32.xlu1 %v1455_v58, %s3842_s27 }
 0x1fa   : > { %1650 = vrot.lane.b32.xlu0 %v1474_v41, %s3842_s27 }
 0x1fb   : > { %v1591_v39 = vpop.permute.xlu1 %1590  ;;  %v4925_v61 = vpop.permute.xlu0 %1490 }
 0x1fd   : > { %1648 = vrot.lane.b32.xlu1 %v1456_v44, %s3842_s27 }
 0x1fe   : > { %1542 = vrot.lane.b32.xlu0 %v1474_v41, %s3843_s28 }
 0x1ff   : > { %v1487_v26 = vpop.permute.xlu1 %1486  ;;  %v4932_v4 = vpop.permute.xlu0 %1598 }
 0x200   : > { %v4937_v58 = vsel %vm7182_vm10, %v1487_v26, %v4925_v61  ;;  %v4941_v31 = vsel %vm7183_vm6, %v1483_v47, %v1487_v26  ;;  %vm7185_vm6 = vmmov %vm7184_vm1  ;;  %vm7186_vm10 = vcmp.lt.s32.totalorder %v3937_v18, 127 }
 0x201   : > { %1540 = vrot.lane.b32.xlu1 %v1456_v44, %s3843_s28  ;;  %1719 = vmatprep.subr.mxu0 %v4937_v58  ;;  %v4957_v26 = vsel %vm7185_vm6, %v4903_v53, %v1485_v54  ;;  %v1697_v44 = vld [vmem:[%s6906_s5 + $0x8] sm:$0xff]  ;;  %vm7187_vm1 = vmmov %vm7186_vm10 }
 0x202   : > { %1654 = vrot.lane.b32.xlu0 %v7136_v46, %s3842_s27  ;;  %1720 = vmatpush1.msra.mxu0 %v4941_v31  ;;  %vm7188_vm6 = vmmov %vm7187_vm1 }
 0x203   : > { %v1595_v41 = vpop.permute.xlu1 %1594  ;;  %1721 = vmatprep.subr.mxu0 %v4951_v14  ;;  %v1589_v13 = vpop.permute.xlu0 %1588  ;;  %v4976_v54 = vsel %vm7188_vm6, %v1593_v9, %v4911_v24 }
 0x204   : > { %1722 = vmatpush1.msra.mxu0 %v4957_v26  ;;  %v4966_v57 = vsel %vm7186_vm10, %v1595_v41, %v4932_v4  ;;  %v1687_v29 = vsel %vm7187_vm1, %v1591_v39, %v1595_v41  ;;  %vm7189_vm10 = vmmov %vm7187_vm1  ;;  %vm7192_vm1 = vcmp.lt.s32.totalorder %v3937_v18, 1 }
 0x205   : > { %1652 = vrot.lane.b32.xlu1 %v7136_v46, %s3842_s27  ;;  %1723 = vmatprep.subr.mxu0 %v4966_v57  ;;  %v1686_v41 = vsel %vm7189_vm10, %v1589_v13, %v1593_v9  ;;  %vm7193_vm6 = vmmov %vm7192_vm1 }
 0x206   : > { %1705 = vperm.xlu0 %3792, %v1697_v44   ;;  %1724 = vmatpush1.msra.mxu0 %v1687_v29 }
 0x207   : > { %v3796_v40 = vpop.permute.xlu1 %3795  ;;  %1725 = vmatprep.subr.mxu0 %v4976_v54 }
 0x208   : > { %1726 = vmatpush1.msra.mxu0 %v1686_v41  ;;  %v4984_v55 = vpop.permute.xlu0 %3800  ;;  %v3797_v44 = vunpack.i.l.bf16 %v3796_v40  ;;  %v3798_v19 = vunpack.i.h.bf16 %v3796_v40 }
 0x209   : > { %7190 = vst [vmem:[#allocation27_spill] sm:$0xff] %v4984_v55  ;;  %1700 = vperm.xlu1 %3793, %v1696_v63   ;;  %3562 = vmatprep.subr.msk.mxu0 %vm7153_vm3, %v4654_v59  ;;  %v6999_v63 = vunpack.i.l.bf16 %v4984_v55  ;;  %v6998_v40 = vunpack.i.h.bf16 %v4984_v55 }
 0x20a   : > { %3563 = vmatpush1.msk.msra.mxu0 %vm7152_vm11, %v4652_v8  ;;  %v1581_v17 = vsel %vm7192_vm1, %v3797_v44, %v1483_v47  ;;  %v1580_v60 = vsel %vm7193_vm6, %v3798_v19, %v4903_v53  ;;  %vm7194_vm1 = vmmov %vm7189_vm10 }
 0x20b   : > { %v4992_v45 = vpop.permute.xlu1 %3805  ;;  %3564 = vmatprep.subr.msk.mxu0 %vm7153_vm3, %v4641_v1  ;;  %v1689_v16 = vsel %vm7189_vm10, %v6999_v63, %v1591_v39  ;;  %v1688_v2 = vsel %vm7194_vm1, %v6998_v40, %v1589_v13  ;;  %vm7195_vm10 = vmmov %vm7193_vm6  ;;  %v5100_v40 = vld [vmem:[%s6905_s4 + $0x10] sm:$0xff] }
 0x20c   : > { %7191 = vst [vmem:[#allocation28_spill] sm:$0xff] %v4992_v45  ;;  %3565 = vmatpush1.msk.msra.mxu0 %vm7152_vm11, %v4632_v20  ;;  %v1493_v9 = vpop.permute.xlu0 %1492  ;;  %v7001_v53 = vunpack.i.l.bf16 %v4992_v45 }
 0x20d   : > { %1731 = vmatprep.subr.mxu0 %v4941_v31 }
 0x20e   : > { %1732 = vmatpush1.msra.mxu0 %v1581_v17 }
 0x20f   : > { %v5005_v22 = vpop.permute.xlu1 %1600  ;;  %1733 = vmatprep.subr.mxu0 %v4957_v26 }
 0x210   : > { %1734 = vmatpush1.msra.mxu0 %v1580_v60  ;;  %v1603_v10 = vpop.permute.xlu0 %1602 }
 0x211   : > { %1735 = vmatprep.subr.mxu0 %v1687_v29 }
 0x212   : > { %1736 = vmatpush1.msra.mxu0 %v1689_v16  ;;  %v7000_v16 = vunpack.i.h.bf16 %v4992_v45 }
 0x213   : > { %v5015_v47 = vpop.permute.xlu1 %1496  ;;  %1737 = vmatprep.subr.mxu0 %v1686_v41 }
 0x214   : > { %v1495_v49 = vpop.permute.xlu0 %1494  ;;  %1738 = vmatpush1.msra.mxu0 %v1688_v2  ;;  %v1583_v2 = vsel %vm7193_vm6, %v7001_v53, %v3797_v44  ;;  %v1582_v13 = vsel %vm7195_vm10, %v7000_v16, %v3798_v19  ;;  %vm7196_vm6 = vmmov %vm7194_vm1 }
 0x215   : > { %3566 = vmatprep.subr.msk.mxu0 %vm7152_vm11, %v4652_v8 }
 0x216   : > { %1740 = vmatpush1.msra.mxu0 %v7136_v46 }
 0x217   : > { %v5027_v29 = vpop.permute.xlu1 %1504  ;;  %3567 = vmatprep.subr.msk.mxu0 %vm7152_vm11, %v4632_v20  ;;  %v5044_v20 = vsel %vm7194_vm1, %v4932_v4, %v1603_v10  ;;  %vm7197_vm1 = vmmov %vm7195_vm10 }
 0x218   : > { %v1501_v39 = vpop.permute.xlu0 %1500  ;;  %1742 = vmatpush1.msra.mxu0 %v7136_v46 }
 0x219   : > { %1743 = vmatprep.subr.mxu0 %v1581_v17  ;;  %v5057_v17 = vld [vmem:[%s6905_s4] sm:$0xff] }
 0x21a   : > { %1744 = vmatpush1.msra.mxu0 %v1583_v2 }
 0x21b   : > { %v1605_v8 = vpop.permute.xlu1 %1604  ;;  %1745 = vmatprep.subr.mxu0 %v1580_v60  ;;  %v5052_v60 = vsel %vm7196_vm6, %v4911_v24, %v5005_v22  ;;  %v5070_v24 = vsel %vm7197_vm1, %v4925_v61, %v1495_v49  ;;  %vm7198_vm6 = vmmov %vm7197_vm1 }
 0x21c   : > { %v1607_v41 = vpop.permute.xlu0 %1606  ;;  %1746 = vmatpush1.msra.mxu0 %v1582_v13  ;;  %v5079_v2 = vsel %vm7198_vm6, %v1493_v9, %v5015_v47  ;;  %v5084_v13 = vld [vmem:[%s6905_s4 + $0x18] sm:$0xff]  ;;  %vm7200_vm6 = vcmask 130048  }
 0x21d   : > { %1775 = vmatprep.subr.mxu0 %v5044_v20 }
 0x21e   : > { %1776 = vmatpush2.msra.mxu0 %v4966_v57 }
 0x21f   : > { %v1499_v19 = vpop.permute.xlu1 %1498  ;;  %1777 = vmatprep.subr.mxu0 %v5052_v60 }
 0x220   : > { %v1503_v4 = vpop.permute.xlu0 %1502  ;;  %1778 = vmatpush2.msra.mxu0 %v4976_v54  ;;  %v5063_v44 = vsel %vm7195_vm10, %v1495_v49, %v1499_v19  ;;  %vm7199_vm10 = vmmov %vm7197_vm1 }
 0x221   : > { %1780 = vmatmul.mubr.f32.vlgmr.msra.gmra.mxu0 %v5057_v17  ;;  %1796 = vmatprep.subr.mxu1 %v5063_v44  ;;  %v5095_v61 = vsel %vm7199_vm10, %v4901_v50, %v1493_v9  ;;  %vm7201_vm10 = vcmp.lt.s32.totalorder %v3937_v18, 127  ;;  %v5126_v9 = vsel %vm7197_vm1, %v1499_v19, %v1503_v4 }
 0x222   : > { %3584 = vmatprep.subr.msk.mxu0 %vm7156_vm5, %v4766_v21  ;;  %1797 = vmatpush1.msra.mxu1 %v5070_v24  ;;  %v5118_v50 = vsel %vm7201_vm10, %v1603_v10, %v1607_v41 }
 0x223   : > { %3585 = vmatpush1.msk.msra.mxu0 %vm7157_vm8, %v4759_v15  ;;  %v5089_v49 = vpop.permute.xlu1 %1506  ;;  %1798 = vmatprep.subr.mxu1 %v5079_v2 }
 0x224   : > { %3586 = vmatprep.subr.msk.mxu0 %vm7156_vm5, %v4736_v12  ;;  %1799 = vmatpush1.msra.mxu1 %v5095_v61  ;;  %v1611_v63 = vpop.permute.xlu0 %1610  ;;  %v5109_v16 = vsel %vm7197_vm1, %v1503_v4, %v5089_v49 }
 0x225   : > { %3569 = vmatprep.mubr.msk.f32.mxu0 %vm7200_vm6, %v5084_v13  ;;  %3587 = vmatpush1.msk.msra.mxu0 %vm7157_vm8, %v4745_v30  ;;  %vm7202_vm6 = vmmov %vm7201_vm10 }
 0x226   : > { %1786 = vmatmul.mubr.f32.gmra.mxu0 %v5100_v40  ;;  %1800 = vmatprep.subr.mxu1 %v5118_v50  ;;  %v5133_v51 = vsel %vm7202_vm6, %v5005_v22, %v1605_v8  ;;  %vm7203_vm10 = vmmov %vm7197_vm1 }
 0x227   : > { %1873 = vmatprep.subr.mxu0 %v5109_v16  ;;  %1801 = vmatpush1.msra.mxu1 %v5044_v20  ;;  %v5128_v53 = vpop.permute.xlu1 %1614  ;;  %v5140_v10 = vsel %vm7203_vm10, %v1501_v39, %v5027_v29  ;;  %vm7204_vm1 = vmmov %vm7202_vm6 }
 0x228   : > { %1874 = vmatpush1.msra.mxu0 %v5126_v9  ;;  %1802 = vmatprep.subr.mxu1 %v5133_v51  ;;  %v1609_v55 = vpop.permute.xlu0 %1608  ;;  %v5145_v19 = vsel %vm7204_vm1, %v1611_v63, %v5128_v53  ;;  %vm7205_vm6 = vmmov %vm7203_vm10 }
 0x229   : > { %1875 = vmatprep.subr.mxu0 %v5140_v10  ;;  %1803 = vmatpush1.msra.mxu1 %v5052_v60  ;;  %v5152_v22 = vsel %vm7205_vm6, %v5015_v47, %v1501_v39  ;;  %vm7206_vm10 = vmmov %vm7204_vm1 }
 0x22a   : > { %1876 = vmatpush1.msra.mxu0 %v5152_v22  ;;  %3574 = vmatprep.subr.msk.mxu1 %vm7155_vm15, %v4696_v23  ;;  %v1679_v4 = vsel %vm7206_vm10, %v1607_v41, %v1611_v63  ;;  %vm7207_vm6 = vmmov %vm7204_vm1 }
 0x22b   : > { %1877 = vmatprep.subr.mxu0 %v5145_v19  ;;  %3575 = vmatpush1.msk.msra.mxu1 %vm7151_vm7, %v4648_v48  ;;  %v5164_v45 = vpop.permute.xlu1 %1612  ;;  %v1678_v63 = vsel %vm7207_vm6, %v1605_v8, %v1609_v55  ;;  %vm7208_vm10 = vmmov %vm7204_vm1 }
 0x22c   : > { %1878 = vmatpush1.msra.mxu0 %v1679_v4  ;;  %3576 = vmatprep.subr.msk.mxu1 %vm7155_vm15, %v4698_v34  ;;  %v5169_v47 = vpop.permute.xlu0 %1508  ;;  %v5174_v39 = vsel %vm7204_vm1, %v1609_v55, %v5164_v45  ;;  %vm7209_vm1 = vcmask 130048  }
 0x22d   : > { %3577 = vmatpush1.msk.msra.mxu1 %vm7151_vm7, %v4635_v52  ;;  %1879 = vmatprep.subr.mxu0 %v5174_v39 }
 0x22e   : > { %1808 = vmatprep.subr.mxu1 %v5070_v24  ;;  %1880 = vmatpush1.msra.mxu0 %v1678_v63 }
 0x22f   : > { %1809 = vmatpush1.msra.mxu1 %v4937_v58  ;;  %v5184_v41 = vpop.permute.xlu1 %1616  ;;  %3588 = vmatprep.subr.msk.mxu0 %vm7157_vm8, %v4759_v15 }
 0x230   : > { %1810 = vmatprep.subr.mxu1 %v5095_v61  ;;  %v5190_v46 = vpop.permute.xlu0 %1618  ;;  %3589 = vmatpush1.msk.msra.mxu0 %vm7154_vm13, %v4694_v3 }
 0x231   : > { %1811 = vmatpush1.msra.mxu1 %v4951_v14  ;;  %3590 = vmatprep.subr.msk.mxu0 %vm7157_vm8, %v4745_v30 }
 0x232   : > { %1812 = vmatprep.subr.mxu1 %v5044_v20  ;;  %3591 = vmatpush1.msk.msra.mxu0 %vm7154_vm13, %v4700_v33 }
 0x233   : > { %1813 = vmatpush1.msra.mxu1 %v4966_v57  ;;  %v5204_v55 = vpop.permute.xlu1 %1512  ;;  %1885 = vmatprep.subr.mxu0 %v5126_v9 }
 0x234   : > { %1814 = vmatprep.subr.mxu1 %v5052_v60  ;;  %v1511_v8 = vpop.permute.xlu0 %1510  ;;  %1886 = vmatpush1.msra.mxu0 %v5063_v44  ;;  %v7215_v60 = vld [vmem:[#allocation15_spill] sm:$0xff] }
 0x235   : > { %1815 = vmatpush1.msra.mxu1 %v4976_v54  ;;  %1887 = vmatprep.subr.mxu0 %v5152_v22 }
 0x236   : > { %3578 = vmatprep.subr.msk.mxu1 %vm7151_vm7, %v4648_v48  ;;  %1888 = vmatpush1.msra.mxu0 %v5079_v2 }
 0x237   : > { %3579 = vmatpush1.msk.msra.mxu1 %vm7153_vm3, %v4654_v59  ;;  %v5218_v57 = vpop.permute.xlu1 %1520  ;;  %1889 = vmatprep.subr.mxu0 %v1679_v4 }
 0x238   : > { %3580 = vmatprep.subr.msk.mxu1 %vm7151_vm7, %v4635_v52  ;;  %v5223_v54 = vpop.permute.xlu0 %1516  ;;  %1890 = vmatpush1.msra.mxu0 %v5118_v50 }
 0x239   : > { %3581 = vmatpush1.msk.msra.mxu1 %vm7153_vm3, %v4641_v1  ;;  %1891 = vmatprep.subr.mxu0 %v1678_v63 }
 0x23a   : > { %1820 = vmatprep.subr.mxu1 %v4937_v58  ;;  %1892 = vmatpush1.msra.mxu0 %v5133_v51 }
 0x23b   : > { %1821 = vmatpush1.msra.mxu1 %v4941_v31  ;;  %v5232_v48 = vpop.permute.xlu1 %1620  ;;  %3592 = vmatprep.subr.msk.mxu0 %vm7154_vm13, %v4694_v3 }
 0x23c   : > { %1822 = vmatprep.subr.mxu1 %v4951_v14  ;;  %v5238_v52 = vpop.permute.xlu0 %1622  ;;  %3593 = vmatpush1.msk.msra.mxu0 %vm7155_vm15, %v4696_v23 }
 0x23d   : > { %1823 = vmatpush1.msra.mxu1 %v4957_v26  ;;  %3594 = vmatprep.subr.msk.mxu0 %vm7154_vm13, %v4700_v33 }
 0x23e   : > { %1852 = vmatprep.subr.mxu1 %v1679_v4  ;;  %3595 = vmatpush1.msk.msra.mxu0 %vm7155_vm15, %v4698_v34  ;;  %v1674_v34 = vsel %vm7207_vm6, %v5164_v45, %v5184_v41 }
 0x23f   : > { %1853 = vmatpush2.msra.mxu1 %v5118_v50  ;;  %v1515_v1 = vpop.permute.xlu1 %1514  ;;  %1897 = vmatprep.subr.mxu0 %v5063_v44 }
 0x240   : > { %1854 = vmatprep.subr.mxu1 %v1678_v63  ;;  %v1519_v59 = vpop.permute.xlu0 %1518  ;;  %1898 = vmatpush1.msra.mxu0 %v5070_v24 }
 0x241   : > { %1855 = vmatpush2.msra.mxu1 %v5133_v51  ;;  %1899 = vmatprep.subr.mxu0 %v5079_v2  ;;  %v5269_v51 = vsel %vm7208_vm10, %v5128_v53, %v5190_v46  ;;  %vm7210_vm10 = vcmp.lt.s32.totalorder %v3937_v18, 1 }
 0x242   : > { %1857 = vmatmul.mubr.f32.vlgmr.msra.gmra.mxu1 %v5057_v17  ;;  %3598 = vmatprep.subr.msk.mxu1 %vm7160_vm4, %v4814_v5  ;;  %v5288_v33 = vsel %vm7210_vm10, %v1511_v8, %v1515_v1  ;;  %vm7211_vm13 = vmmov %vm7210_vm10 }
 0x243   : > { %1900 = vmatpush1.msra.mxu0 %v5095_v61  ;;  %3599 = vmatpush1.msk.msra.mxu1 %vm7158_vm2, %v4785_v27  ;;  %v5263_v3 = vpop.permute.xlu1 %1522  ;;  %v5299_v31 = vsel %vm7211_vm13, %v5089_v49, %v1511_v8  ;;  %vm7212_vm6 = vmmov %vm7210_vm10  ;;  %vm7214_vm10 = vcmp.lt.s32.totalorder %v3937_v18, 127 }
 0x244   : > { %1929 = vmatprep.subr.mxu0 %v5269_v51  ;;  %3600 = vmatprep.subr.msk.mxu1 %vm7160_vm4, %v4792_v37  ;;  %v1627_v23 = vpop.permute.xlu0 %1626  ;;  %v5307_v45 = vsel %vm7212_vm6, %v5169_v47, %v5204_v55  ;;  %vm7213_vm13 = vmmov %vm7212_vm6  ;;  %v5327_v53 = vsel %vm7214_vm10, %v5190_v46, %v5238_v52  ;;  %v7217_v46 = vld [vmem:[#allocation16_spill] sm:$0xff] }
 0x245   : > { %3583 = vmatprep.mubr.msk.f32.mxu1 %vm7209_vm1, %v5084_v13  ;;  %3601 = vmatpush1.msk.msra.mxu1 %vm7158_vm2, %v4779_v28  ;;  %v5317_v14 = vsel %vm7213_vm13, %v5027_v29, %v5169_v47  ;;  %vm7216_vm6 = vmmov %vm7214_vm10  ;;  %v5351_v44 = vsel %vm7213_vm13, %v1519_v59, %v5263_v3 }
 0x246   : > { %1930 = vmatpush2.msra.mxu0 %v5145_v19  ;;  %1863 = vmatmul.mubr.f32.gmra.mxu1 %v5100_v40  ;;  %v5342_v29 = vsel %vm7216_vm6, %v5184_v41, %v5232_v48  ;;  %vm7218_vm10 = vmmov %vm7213_vm13  ;;  %vm7221_vm13 = vcmp.lt.s32.totalorder %v3937_v18, 127 }
 0x247   : > { %1931 = vmatprep.subr.mxu0 %v1674_v34  ;;  %1950 = vmatprep.subr.mxu1 %v5288_v33  ;;  %v5291_v58 = vpop.permute.xlu1 %1630  ;;  %v5357_v24 = vsel %vm7218_vm10, %v1515_v1, %v1519_v59 }
 0x248   : > { %1932 = vmatpush2.msra.mxu0 %v5174_v39  ;;  %3596 = vmatprep.mubr.msk.f32.mxu0 %vm7209_vm1, %v4734_v11  ;;  %v1625_v26 = vpop.permute.xlu0 %1624  ;;  %v5387_v4 = vsel %vm7221_vm13, %v1627_v23, %v5291_v58 }
 0x249   : > { %1951 = vmatpush1.msra.mxu1 %v5299_v31  ;;  %1934 = vmatmul.mubr.f32.vlgmr.msra.gmra.mxu0 %v5057_v17 }
 0x24a   : > { %1952 = vmatprep.subr.mxu1 %v5307_v45  ;;  %3612 = vmatprep.subr.msk.mxu0 %vm7162_vm9, %v4830_v56 }
 0x24b   : > { %1953 = vmatpush1.msra.mxu1 %v5317_v14  ;;  %3613 = vmatpush1.msk.msra.mxu0 %vm7163_vm12, %v4823_v43  ;;  %v5329_v20 = vpop.permute.xlu1 %1628 }
 0x24c   : > { %1954 = vmatprep.subr.mxu1 %v5327_v53  ;;  %3614 = vmatprep.subr.msk.mxu0 %vm7162_vm9, %v7215_v60  ;;  %v5361_v49 = vpop.permute.xlu0 %1524 }
 0x24d   : > { %3597 = vmatprep.mubr.msk.f32.mxu0 %vm7209_vm1, %v5084_v13  ;;  %1955 = vmatpush1.msra.mxu1 %v5269_v51  ;;  %vm7219_vm1 = vmmov %vm7218_vm10 }
 0x24e   : > { %3615 = vmatpush1.msk.msra.mxu0 %vm7163_vm12, %v7217_v46  ;;  %1956 = vmatprep.subr.mxu1 %v5342_v29  ;;  %v5368_v61 = vsel %vm7219_vm1, %v5223_v54, %v5218_v57  ;;  %vm7220_vm6 = vmmov %vm7219_vm1 }
 0x24f   : > { %1940 = vmatmul.mubr.f32.gmra.mxu0 %v5100_v40  ;;  %2027 = vmatprep.subr.mxu0 %v5351_v44  ;;  %v5359_v2 = vpop.permute.xlu1 %1632  ;;  %v5378_v50 = vsel %vm7220_vm6, %v5204_v55, %v5223_v54  ;;  %vm7222_vm10 = vmmov %vm7221_vm13  ;;  %vm7225_vm13 = vcmask 130048  }
 0x250   : > { %1957 = vmatpush1.msra.mxu1 %v1674_v34  ;;  %2028 = vmatpush1.msra.mxu0 %v5357_v24  ;;  %v1671_v47 = vsel %vm7222_vm10, %v5238_v52, %v1627_v23  ;;  %vm7223_vm1 = vmmov %vm7222_vm10  ;;  %v5411_v8 = vpop.permute.xlu0 %1634 }
 0x251   : > { %3602 = vmatprep.subr.msk.mxu1 %vm7158_vm2, %v4785_v27  ;;  %2029 = vmatprep.subr.mxu0 %v5368_v61  ;;  %v5402_v63 = vsel %vm7223_vm1, %v1625_v26, %v5329_v20  ;;  %vm7224_vm6 = vmmov %vm7223_vm1 }
 0x252   : > { %3603 = vmatpush1.msk.msra.mxu1 %vm7156_vm5, %v4766_v21  ;;  %2030 = vmatpush1.msra.mxu0 %v5378_v50  ;;  %v1670_v41 = vsel %vm7224_vm6, %v5232_v48, %v1625_v26  ;;  %vm7230_vm10 = vmmov %vm7223_vm1 }
 0x253   : > { %3604 = vmatprep.subr.msk.mxu1 %vm7158_vm2, %v4779_v28  ;;  %2031 = vmatprep.subr.mxu0 %v5387_v4  ;;  %v5409_v55 = vpop.permute.xlu1 %1528  ;;  %vm7232_vm1 = vmmov %vm7225_vm13 }
 0x254   : > { %3605 = vmatpush1.msk.msra.mxu1 %vm7156_vm5, %v4736_v12  ;;  %2032 = vmatpush1.msra.mxu0 %v1671_v47  ;;  %v1527_v48 = vpop.permute.xlu0 %1526 }
 0x255   : > { %1962 = vmatprep.subr.mxu1 %v5299_v31  ;;  %2033 = vmatprep.subr.mxu0 %v5402_v63 }
 0x256   : > { %1963 = vmatpush1.msra.mxu1 %v5109_v16  ;;  %2034 = vmatpush1.msra.mxu0 %v1670_v41 }
 0x257   : > { %1964 = vmatprep.subr.mxu1 %v5317_v14  ;;  %3616 = vmatprep.subr.msk.mxu0 %vm7163_vm12, %v4823_v43  ;;  %v5430_v54 = vpop.permute.xlu1 %1536 }
 0x258   : > { %1965 = vmatpush1.msra.mxu1 %v5140_v10  ;;  %3617 = vmatpush1.msk.msra.mxu0 %vm7160_vm4, %v4814_v5 }
 0x259   : > { %1966 = vmatprep.subr.mxu1 %v5269_v51  ;;  %3618 = vmatprep.subr.msk.mxu0 %vm7163_vm12, %v7217_v46  ;;  %v7238_v51 = vld [vmem:[#allocation24_spill] sm:$0xff] }
 0x25a   : > { %1967 = vmatpush1.msra.mxu1 %v5145_v19  ;;  %3619 = vmatpush1.msk.msra.mxu0 %vm7160_vm4, %v4792_v37  ;;  %v5453_v19 = vpop.permute.xlu0 %1532 }
 0x25b   : > { %1968 = vmatprep.subr.mxu1 %v1674_v34  ;;  %2039 = vmatprep.subr.mxu0 %v5357_v24  ;;  %v7241_v34 = vld [vmem:[#allocation23_spill] sm:$0xff] }
 0x25c   : > { %1969 = vmatpush1.msra.mxu1 %v5174_v39  ;;  %2040 = vmatpush1.msra.mxu0 %v5288_v33  ;;  %v1666_v39 = vsel %vm7224_vm6, %v5329_v20, %v5359_v2 }
 0x25d   : > { %3606 = vmatprep.subr.msk.mxu1 %vm7156_vm5, %v4766_v21  ;;  %2041 = vmatprep.subr.mxu0 %v5378_v50  ;;  %v5450_v21 = vpop.permute.xlu1 %1636 }
 0x25e   : > { %3607 = vmatpush1.msk.msra.mxu1 %vm7157_vm8, %v4759_v15  ;;  %2042 = vmatpush1.msra.mxu0 %v5307_v45  ;;  %v7226_v15 = vld [vmem:[#allocation22_spill] sm:$0xff] }
 0x25f   : > { %3608 = vmatprep.subr.msk.mxu1 %vm7156_vm5, %v4736_v12  ;;  %2043 = vmatprep.subr.mxu0 %v1671_v47 }
 0x260   : > { %3609 = vmatpush1.msk.msra.mxu1 %vm7157_vm8, %v4745_v30  ;;  %2044 = vmatpush1.msra.mxu0 %v5327_v53  ;;  %v1639_v30 = vpop.permute.xlu0 %1638 }
 0x261   : > { %1974 = vmatprep.subr.mxu1 %v5109_v16  ;;  %2045 = vmatprep.subr.mxu0 %v1670_v41  ;;  %v1531_v12 = vpop.permute.xlu1 %1530  ;;  %v7231_v16 = vld [vmem:[#allocation19_spill] sm:$0xff] }
 0x262   : > { %1975 = vmatpush1.msra.mxu1 %v5126_v9  ;;  %2046 = vmatpush1.msra.mxu0 %v5342_v29 }
 0x263   : > { %1976 = vmatprep.subr.mxu1 %v5140_v10  ;;  %3620 = vmatprep.subr.msk.mxu0 %vm7160_vm4, %v4814_v5  ;;  %v5490_v5 = vsel %vm7230_vm10, %v5291_v58, %v5411_v8  ;;  %v7233_v10 = vld [vmem:[#allocation17_spill] sm:$0xff] }
 0x264   : > { %1977 = vmatpush1.msra.mxu1 %v5152_v22  ;;  %3621 = vmatpush1.msk.msra.mxu0 %vm7158_vm2, %v4785_v27  ;;  %v7227_v27 = vld [vmem:[#allocation11_spill] sm:$0xff]  ;;  %v1535_v22 = vpop.permute.xlu0 %1534 }
 0x265   : > { %2006 = vmatprep.subr.mxu1 %v1671_v47  ;;  %3622 = vmatprep.subr.msk.mxu0 %vm7160_vm4, %v4792_v37  ;;  %v7229_v37 = vld [vmem:[#allocation10_spill] sm:$0xff]  ;;  %v5496_v9 = vpop.permute.xlu1 %1538 }
 0x266   : > { %2007 = vmatpush2.msra.mxu1 %v5327_v53  ;;  %3623 = vmatpush1.msk.msra.mxu0 %vm7158_vm2, %v4779_v28  ;;  %v7228_v28 = vld [vmem:[#allocation18_spill] sm:$0xff] }
 0x267   : > { %2008 = vmatprep.subr.mxu1 %v1670_v41  ;;  %2051 = vmatprep.subr.mxu0 %v5288_v33  ;;  %v7242_v33 = vld [vmem:[#allocation12_spill] sm:$0xff] }
 0x268   : > { %2009 = vmatpush2.msra.mxu1 %v5342_v29  ;;  %3610 = vmatprep.mubr.msk.f32.mxu1 %vm7225_vm13, %v4734_v11  ;;  %vm7234_vm13 = vcmp.lt.s32.totalorder %v3937_v18, 1 }
 0x269   : > { %2052 = vmatpush1.msra.mxu0 %v5299_v31  ;;  %2011 = vmatmul.mubr.f32.vlgmr.msra.gmra.mxu1 %v5057_v17  ;;  %v5511_v52 = vsel %vm7234_vm13, %v1527_v48, %v1531_v12  ;;  %vm7235_vm10 = vmmov %vm7234_vm13  ;;  %v5540_v23 = vpop.permute.xlu1 %1646  ;;  %v7245_v31 = vld [vmem:[#allocation20_spill] sm:$0xff] }
 0x26a   : > { %2053 = vmatprep.subr.mxu0 %v5307_v45  ;;  %3626 = vmatprep.subr.msk.mxu1 %vm7171_vm0, %v7226_v15  ;;  %v5517_v1 = vsel %vm7235_vm10, %v5263_v3, %v1527_v48  ;;  %vm7236_vm6 = vmmov %vm7235_vm10  ;;  %v7263_v48 = vld [vmem:[#allocation26_spill] sm:$0xff] }
 0x26b   : > { %2054 = vmatpush1.msra.mxu0 %v5317_v14  ;;  %3627 = vmatpush1.msk.msra.mxu1 %vm7167_vm14, %v7228_v28  ;;  %v5528_v59 = vsel %vm7236_vm6, %v5361_v49, %v5409_v55  ;;  %vm7237_vm13 = vmmov %vm7236_vm6  ;;  %vm7244_vm6 = vcmp.lt.s32.totalorder %v3937_v18, 127  ;;  %v7248_v14 = vld [vmem:[#allocation21_spill] sm:$0xff] }
 0x26c   : > { %2083 = vmatprep.subr.mxu0 %v5490_v5  ;;  %3628 = vmatprep.subr.msk.mxu1 %vm7171_vm0, %v7231_v16  ;;  %v5534_v3 = vsel %vm7237_vm13, %v5218_v57, %v5361_v49  ;;  %v5549_v58 = vsel %vm7244_vm6, %v5411_v8, %v1639_v30  ;;  %v1643_v57 = vpop.permute.xlu0 %1642  ;;  %vm7246_vm13 = vcmask 130048   ;;  %vm7247_vm4 = vmmov %vm7244_vm6  ;;  %vm7249_vm6 = vcmp.lt.s32.totalorder %v3937_v18, 1 }
 0x26d   : > { %3611 = vmatprep.mubr.msk.f32.mxu1 %vm7232_vm1, %v5084_v13  ;;  %3629 = vmatpush1.msk.msra.mxu1 %vm7167_vm14, %v7233_v10  ;;  %v5562_v45 = vsel %vm7247_vm4, %v5359_v2, %v5450_v21  ;;  %v5571_v26 = vsel %vm7249_vm6, %v1535_v22, %v5496_v9  ;;  %vm7251_vm4 = vmmov %vm7249_vm6  ;;  %v5592_v2 = vpop.permute.xlu1 %1644 }
 0x26e   : > { %2084 = vmatpush2.msra.mxu0 %v5387_v4  ;;  %2017 = vmatmul.mubr.f32.gmra.mxu1 %v5100_v40  ;;  %v5584_v20 = vsel %vm7251_vm4, %v5453_v19, %v5430_v54 }
 0x26f   : > { %2085 = vmatprep.subr.mxu0 %v1666_v39  ;;  %2104 = vmatprep.subr.mxu1 %v5511_v52 }
 0x270   : > { %2086 = vmatpush2.msra.mxu0 %v5402_v63  ;;  %3624 = vmatprep.mubr.msk.f32.mxu0 %vm7232_vm1, %v4734_v11  ;;  %v7239_v11 = vld [vmem:[#allocation13_spill] sm:$0xff]  ;;  %vm7243_vm1 = vnez %v7242_v33  ;;  %v1641_v49 = vpop.permute.xlu0 %1640 }
 0x271   : > { %2105 = vmatpush1.msra.mxu1 %v5517_v1  ;;  %2088 = vmatmul.mubr.f32.vlgmr.msra.gmra.mxu0 %v5057_v17  ;;  %vm7240_vm10 = vnez %v7239_v11 }
 0x272   : > { %2106 = vmatprep.subr.mxu1 %v5528_v59  ;;  %3640 = vmatprep.subr.msk.mxu0 %vm7240_vm10, %v7238_v51 }
 0x273   : > { %2107 = vmatpush1.msra.mxu1 %v5534_v3  ;;  %3641 = vmatpush1.msk.msra.mxu0 %vm7243_vm1, %v7241_v34 }
 0x274   : > { %2108 = vmatprep.subr.mxu1 %v5549_v58  ;;  %3642 = vmatprep.subr.msk.mxu0 %vm7240_vm10, %v7245_v31 }
 0x275   : > { %3625 = vmatprep.mubr.msk.f32.mxu0 %vm7246_vm13, %v5084_v13  ;;  %2109 = vmatpush1.msra.mxu1 %v5490_v5  ;;  %vm7250_vm13 = vmmov %vm7249_vm6 }
 0x276   : > { %3643 = vmatpush1.msk.msra.mxu0 %vm7243_vm1, %v7248_v14  ;;  %2110 = vmatprep.subr.mxu1 %v5562_v45  ;;  %v5575_v53 = vsel %vm7250_vm13, %v1531_v12, %v1535_v22  ;;  %vm7252_vm6 = vmmov %vm7251_vm4  ;;  %vm7253_vm13 = vcmp.lt.s32.totalorder %v3937_v18, 127 }
 0x277   : > { %2094 = vmatmul.mubr.f32.gmra.mxu0 %v5100_v40  ;;  %2181 = vmatprep.subr.mxu0 %v5571_v26  ;;  %v5590_v29 = vsel %vm7252_vm6, %v5409_v55, %v5453_v19  ;;  %v5605_v47 = vsel %vm7253_vm13, %v1643_v57, %v5540_v23  ;;  %vm7254_vm4 = vmmov %vm7253_vm13 }
 0x278   : > { %2111 = vmatpush1.msra.mxu1 %v1666_v39  ;;  %2182 = vmatpush1.msra.mxu0 %v5575_v53  ;;  %v1663_v41 = vsel %vm7254_vm4, %v1639_v30, %v1643_v57  ;;  %vm7255_vm6 = vmmov %vm7254_vm4 }
 0x279   : > { %3630 = vmatprep.subr.msk.mxu1 %vm7167_vm14, %v7228_v28  ;;  %2183 = vmatprep.subr.mxu0 %v5584_v20  ;;  %v5619_v55 = vsel %vm7255_vm6, %v1641_v49, %v5592_v2  ;;  %vm7256_vm13 = vmmov %vm7254_vm4  ;;  %vm7257_vm4 = vcmask 130048  }
 0x27a   : > { %3631 = vmatpush1.msk.msra.mxu1 %vm7162_vm9, %v4830_v56  ;;  %2184 = vmatpush1.msra.mxu0 %v5590_v29  ;;  %v1662_v8 = vsel %vm7256_vm13, %v5450_v21, %v1641_v49  ;;  %v7264_v21 = vld [vmem:[#allocation28_spill] sm:$0xff] }
 0x27b   : > { %3632 = vmatprep.subr.msk.mxu1 %vm7167_vm14, %v7233_v10  ;;  %2185 = vmatprep.subr.mxu0 %v5605_v47  ;;  %v7265_v19 = vunpack.i.l.bf16 %v7264_v21 }
 0x27c   : > { %3633 = vmatpush1.msk.msra.mxu1 %vm7162_vm9, %v7215_v60  ;;  %2186 = vmatpush1.msra.mxu0 %v1663_v41 }
 0x27d   : > { %2116 = vmatprep.subr.mxu1 %v5517_v1  ;;  %2187 = vmatprep.subr.mxu0 %v5619_v55 }
 0x27e   : > { %2117 = vmatpush1.msra.mxu1 %v5351_v44  ;;  %2188 = vmatpush1.msra.mxu0 %v1662_v8 }
 0x27f   : > { %2118 = vmatprep.subr.mxu1 %v5534_v3  ;;  %3644 = vmatprep.subr.msk.mxu0 %vm7243_vm1, %v7241_v34 }
 0x280   : > { %2119 = vmatpush1.msra.mxu1 %v5368_v61  ;;  %3645 = vmatpush1.msk.msra.mxu0 %vm7171_vm0, %v7226_v15 }
 0x281   : > { %2120 = vmatprep.subr.mxu1 %v5490_v5  ;;  %3646 = vmatprep.subr.msk.mxu0 %vm7243_vm1, %v7248_v14 }
 0x282   : > { %2121 = vmatpush1.msra.mxu1 %v5387_v4  ;;  %3647 = vmatpush1.msk.msra.mxu0 %vm7171_vm0, %v7231_v16 }
 0x283   : > { %2122 = vmatprep.subr.mxu1 %v1666_v39  ;;  %2193 = vmatprep.subr.mxu0 %v5575_v53 }
 0x284   : > { %2123 = vmatpush1.msra.mxu1 %v5402_v63  ;;  %2194 = vmatpush1.msra.mxu0 %v5511_v52 }
 0x285   : > { %3634 = vmatprep.subr.msk.mxu1 %vm7162_vm9, %v4830_v56  ;;  %2195 = vmatprep.subr.mxu0 %v5590_v29  ;;  %v1649_v56 = vpop.permute.xlu1 %1648 }
 0x286   : > { %3635 = vmatpush1.msk.msra.mxu1 %vm7163_vm12, %v4823_v43  ;;  %2196 = vmatpush1.msra.mxu0 %v5528_v59  ;;  %v1651_v43 = vpop.permute.xlu0 %1650 }
 0x287   : > { %3636 = vmatprep.subr.msk.mxu1 %vm7162_vm9, %v7215_v60  ;;  %2197 = vmatprep.subr.mxu0 %v1663_v41  ;;  %v3824_v60 = vld [vmem:[%s6905_s4 + $0x8] sm:$0xff] }
 0x288   : > { %3637 = vmatpush1.msk.msra.mxu1 %vm7163_vm12, %v7217_v46  ;;  %2198 = vmatpush1.msra.mxu0 %v5549_v58 }
 0x289   : > { %2128 = vmatprep.subr.mxu1 %v5351_v44  ;;  %2199 = vmatprep.subr.mxu0 %v1662_v8  ;;  %v7258_v44 = vmov 0.0   ;;  %v1541_v4 = vpop.permute.xlu1 %1540 }
 0x28a   : > { %2129 = vmatpush1.msra.mxu1 %v5357_v24  ;;  %2200 = vmatpush1.msra.mxu0 %v5562_v45  ;;  %v1543_v46 = vpop.permute.xlu0 %1542  ;;  %v7259_v24 = vld [vmem:[#allocation25_spill] sm:$0xff] }
 0x28b   : > { %2130 = vmatprep.subr.mxu1 %v5368_v61  ;;  %3648 = vmatprep.subr.msk.mxu0 %vm7171_vm0, %v7226_v15  ;;  %v7260_v61 = vld [vmem:[#allocation14_spill] sm:$0xff] }
 0x28c   : > { %2131 = vmatpush1.msra.mxu1 %v5378_v50  ;;  %3649 = vmatpush1.msk.msra.mxu0 %vm7167_vm14, %v7228_v28  ;;  %vm7261_vm6 = vnez %v7260_v61  ;;  %v1659_v50 = vsel %vm7256_vm13, %v5540_v23, %v1651_v43  ;;  %v7269_v28 = vunpack.i.h.bf16 %v7264_v21 }
 0x28d   : > { %2160 = vmatprep.subr.mxu1 %v1663_v41  ;;  %3650 = vmatprep.subr.msk.mxu0 %vm7171_vm0, %v7231_v16  ;;  %vm7262_vm0 = vmmov %vm7256_vm13  ;;  %vm7266_vm13 = vcmp.lt.s32.totalorder %v3937_v18, 1 }
 0x28e   : > { %2161 = vmatpush2.msra.mxu1 %v5549_v58  ;;  %3651 = vmatpush1.msk.msra.mxu0 %vm7167_vm14, %v7233_v10  ;;  %v1658_v63 = vsel %vm7262_vm0, %v5592_v2, %v1649_v56  ;;  %v1549_v12 = vsel %vm7266_vm13, %v1543_v46, %v7265_v19  ;;  %v1655_v15 = vpop.permute.xlu0 %1654  ;;  %vm7268_vm0 = vcmask 130048   ;;  %v1653_v10 = vpop.permute.xlu1 %1652 }
 0x28f   : > { %2162 = vmatprep.subr.mxu1 %v1662_v8  ;;  %2205 = vmatprep.subr.mxu0 %v5511_v52 }
 0x290   : > { %2163 = vmatpush2.msra.mxu1 %v5562_v45  ;;  %3638 = vmatprep.mubr.msk.f32.mxu1 %vm7257_vm4, %v3824_v60 }
 0x291   : > { %2206 = vmatpush1.msra.mxu0 %v5517_v1  ;;  %2165 = vmatmul.mubr.f32.vlgmr.msra.gmra.mxu1 %v5057_v17 }
 0x292   : > { %2207 = vmatprep.subr.mxu0 %v5528_v59  ;;  %2254 = vmatprep.subr.mxu1 %v7258_v44 }
 0x293   : > { %2208 = vmatpush1.msra.mxu0 %v5534_v3  ;;  %3654 = vmatpush1.msk.msra.mxu1 %vm7261_vm6, %v7259_v24  ;;  %v5776_v3 = vpop.permute.xlu1 %1700 }
 0x294   : > { %2237 = vmatprep.subr.mxu0 %v1659_v50  ;;  %2256 = vmatprep.subr.mxu1 %v7258_v44 }
 0x295   : > { %3639 = vmatprep.mubr.msk.f32.mxu1 %vm7257_vm4, %v5084_v13  ;;  %2238 = vmatpush2.msra.mxu0 %v5605_v47  ;;  %vm7267_vm4 = vmmov %vm7266_vm13 }
 0x296   : > { %3655 = vmatpush1.msk.msra.mxu1 %vm7261_vm6, %v7263_v48  ;;  %2239 = vmatprep.subr.mxu0 %v1658_v63  ;;  %v1551_v30 = vsel %vm7267_vm4, %v5496_v9, %v1543_v46  ;;  %vm7270_vm14 = vmmov %vm7267_vm4 }
 0x297   : > { %2171 = vmatmul.mubr.f32.gmra.mxu1 %v5100_v40  ;;  %2258 = vmatprep.subr.mxu1 %v1549_v12  ;;  %v1548_v5 = vsel %vm7270_vm14, %v1541_v4, %v7269_v28  ;;  %vm7271_vm13 = vmmov %vm7267_vm4 }
 0x298   : > { %2240 = vmatpush2.msra.mxu0 %v5619_v55  ;;  %3652 = vmatprep.mubr.msk.f32.mxu0 %vm7268_vm0, %v3824_v60  ;;  %v1550_v16 = vsel %vm7271_vm13, %v5430_v54, %v1541_v4  ;;  %vm7272_vm4 = vmmov %vm7268_vm0  ;;  %vm7273_vm0 = vcmp.lt.s32.totalorder %v3937_v18, 127  ;;  %v7276_v54 = vld [vmem:[#allocation27_spill] sm:$0xff] }
 0x299   : > { %2259 = vmatpush1.msra.mxu1 %v1551_v30  ;;  %2242 = vmatmul.mubr.f32.vlgmr.msra.gmra.mxu0 %v5057_v17  ;;  %v1657_v9 = vsel %vm7273_vm0, %v1651_v43, %v1655_v15  ;;  %vm7274_vm9 = vmmov %vm7272_vm4  ;;  %v7277_v39 = vunpack.i.l.bf16 %v7276_v54  ;;  %v7279_v1 = vunpack.i.h.bf16 %v7276_v54 }
 0x29a   : > { %2260 = vmatprep.subr.mxu1 %v1548_v5  ;;  %3653 = vmatprep.mubr.msk.f32.mxu0 %vm7272_vm4, %v5084_v13  ;;  %vm7275_vm14 = vmmov %vm7273_vm0 }
 0x29b   : > { %2261 = vmatpush1.msra.mxu1 %v1550_v16  ;;  %3664 = vmatprep.mubr.msk.f32.mxu1 %vm7274_vm9, %v3824_v60  ;;  %v1656_v22 = vsel %vm7275_vm14, %v1649_v56, %v1653_v10  ;;  %vm7278_vm9 = vmmov %vm7273_vm0 }
 0x29c   : > { %2262 = vmatprep.subr.mxu1 %v1657_v9  ;;  %v1691_v52 = vsel %vm7278_vm9, %v1655_v15, %v7277_v39  ;;  %vm7280_vm13 = vmmov %vm7273_vm0  ;;  %vm7283_vm0 = vnez %v7068_v38 }
 0x29d   : > { %2263 = vmatpush1.msra.mxu1 %v1659_v50  ;;  %2248 = vmatmul.mubr.f32.gmra.mxu0 %v5100_v40  ;;  %v1690_v59 = vsel %vm7280_vm13, %v1653_v10, %v7279_v1  ;;  %vm7285_vm14 = vmmov %vm7272_vm4  ;;  %vm7287_vm13 = vnez %v7093_v6 }
 0x29e   : > { %2264 = vmatprep.subr.mxu1 %v1656_v22  ;;  %vm7286_vm9 = vmmov %vm7272_vm4 }
 0x29f   : > { %2265 = vmatpush1.msra.mxu1 %v1658_v63 }
 0x2a0   : > { %3656 = vmatprep.subr.msk.mxu1 %vm7261_vm6, %v7259_v24 }
 0x2a1   : > { %3657 = vmatpush1.msk.msra.mxu1 %vm7240_vm10, %v7238_v51 }
 0x2a2   : > { %3658 = vmatprep.subr.msk.mxu1 %vm7261_vm6, %v7263_v48 }
 0x2a3   : > { %3659 = vmatpush1.msk.msra.mxu1 %vm7240_vm10, %v7245_v31 }
 0x2a4   : > { %2270 = vmatprep.subr.mxu1 %v1551_v30 }
 0x2a5   : > { %2271 = vmatpush1.msra.mxu1 %v5571_v26 }
 0x2a6   : > { %2272 = vmatprep.subr.mxu1 %v1550_v16 }
 0x2a7   : > { %2273 = vmatpush1.msra.mxu1 %v5584_v20 }
 0x2a8   : > { %2274 = vmatprep.subr.mxu1 %v1659_v50 }
 0x2a9   : > { %2275 = vmatpush1.msra.mxu1 %v5605_v47 }
 0x2aa   : > { %2276 = vmatprep.subr.mxu1 %v1658_v63 }
 0x2ab   : > { %2277 = vmatpush1.msra.mxu1 %v5619_v55 }
 0x2ac   : > { %3660 = vmatprep.subr.msk.mxu1 %vm7240_vm10, %v7238_v51 }
 0x2ad   : > { %3661 = vmatpush1.msk.msra.mxu1 %vm7243_vm1, %v7241_v34 }
 0x2ae   : > { %3662 = vmatprep.subr.msk.mxu1 %vm7240_vm10, %v7245_v31  ;;  %v5782_v31 = vpop.permute.xlu0 %1705 }
 0x2af   : > { %3663 = vmatpush1.msk.msra.mxu1 %vm7243_vm1, %v7248_v14 }
 0x2b0   : > { %2282 = vmatprep.subr.mxu1 %v5571_v26 }
 0x2b1   : > { %2283 = vmatpush1.msra.mxu1 %v5575_v53 }
 0x2b2   : > { %2284 = vmatprep.subr.mxu1 %v5584_v20 }
 0x2b3   : > { %2285 = vmatpush1.msra.mxu1 %v5590_v29 }
 0x2b4   : > { %2314 = vmatprep.subr.mxu1 %v1691_v52 }
 0x2b5   : > { %2315 = vmatpush2.msra.mxu1 %v1657_v9 }
 0x2b6   : > { %2316 = vmatprep.subr.mxu1 %v1690_v59 }
 0x2b7   : > { %2317 = vmatpush2.msra.mxu1 %v1656_v22 }
 0x2b8   : > { %2319 = vmatmul.mubr.f32.vlgmr.msra.gmra.mxu1 %v5057_v17 }
 0x2b9   : > { %3665 = vmatprep.mubr.msk.f32.mxu1 %vm7272_vm4, %v5084_v13  ;;  %vm7292_vm4 = vnez %v7102_v25 }
 0x2bc   : > { %2325 = vmatmul.mubr.f32.gmra.mxu1 %v5100_v40 }
 0x2e1   : > { %v1781_v51 = vpop.f32.mrf.mxu0 }
 0x2e2   : > { %v1782_v23 = vadd.f32 %v1781_v51, %v5776_v3 }
 0x2e3   : > { %v1783_v34 = vpop.f32.mrf.mxu0 }
 0x2e4   : > { %v5779_v58 = vmax.f32 %v1782_v23, 0.0  ;;  %v1784_v57 = vadd.f32 %v1783_v34, %v5776_v3 }
 0x2e6   : > { %v5784_v45 = vmax.f32 %v1784_v57, 0.0  ;;  %v1787_v17 = vpop.f32.mrf.mxu0  ;;  %v5789_v13 = vsel %vm7152_vm11, %v5779_v58, 0.0 }
 0x2e7   : > { %v1788_v40 = vadd.f32 %v1787_v17, %v5782_v31  ;;  %2471 = vrot.lane.b32.xlu1 %v5789_v13, %s3843_s28 }
 0x2e8   : > { %v1789_v26 = vpop.f32.mrf.mxu0  ;;  %v2433_v20 = vsel %vm7153_vm3, %v5784_v45, 0.0 }
 0x2e9   : > { %v5794_v53 = vmax.f32 %v1788_v40, 0.0  ;;  %v1790_v29 = vadd.f32 %v1789_v26, %v5782_v31 }
 0x2eb   : > { %v2450_v2 = vsel %vm7152_vm11, %v5794_v53, 0.0  ;;  %2475 = vrot.lane.b32.xlu1 %v2433_v20, %s3843_s28  ;;  %v5805_v49 = vmax.f32 %v1790_v29, 0.0 }
 0x2ec   : > { %2473 = vrot.lane.b32.xlu0 %v2450_v2, %s3843_s28 }
 0x2ed   : > { %v2451_v47 = vsel %vm7153_vm3, %v5805_v49, 0.0 }
 0x2ef   : > { %2583 = vrot.lane.b32.xlu1 %v2433_v20, %s3842_s27 }
 0x2f0   : > { %2581 = vrot.lane.b32.xlu0 %v2450_v2, %s3842_s27 }
 0x2f4   : > { %2477 = vrot.lane.b32.xlu0 %v2451_v47, %s3843_s28 }
 0x2f8   : > { %2585 = vrot.lane.b32.xlu0 %v2451_v47, %s3842_s27  ;;  %v5919_v47 = vld [vmem:[%s6907_s6] sm:$0x3] }
 0x302   : > { %v1858_v41 = vpop.f32.mrf.mxu1 }
 0x303   : > { %v1859_v55 = vadd.f32 %v1858_v41, %v5776_v3  ;;  %v7284_v41 = vld [vmem:[#allocation6_spill] sm:$0xff] }
 0x304   : > { %v1860_v8 = vpop.f32.mrf.mxu1  ;;  %v2692_v32 = vsub.s32 0, %v7284_v41 }
 0x305   : > { %v5815_v43 = vmax.f32 %v1859_v55, 0.0  ;;  %v1861_v56 = vadd.f32 %v1860_v8, %v5776_v3  ;;  %v2701_v55 = vsub.s32 1, %v7284_v41 }
 0x306   : > { %v1864_v60 = vpop.f32.mrf.mxu1 }
 0x307   : > { %v5818_v46 = vmax.f32 %v1861_v56, 0.0  ;;  %v1865_v24 = vadd.f32 %v1864_v60, %v5782_v31  ;;  %v2434_v50 = vsel %vm7151_vm7, %v5815_v43, 0.0  ;;  %v5925_v60 = vrot.slane %v5919_v47, %v2701_v55 }
 0x308   : > { %v1866_v4 = vpop.f32.mrf.mxu1  ;;  %2479 = vrot.lane.b32.xlu0 %v2434_v50, %s3843_s28 }
 0x309   : > { %7282 = vst [vmem:[#allocation15_spill] sm:$0xff] %v5818_v46  ;;  %v5825_v63 = vmax.f32 %v1865_v24, 0.0  ;;  %v1867_v48 = vadd.f32 %v1866_v4, %v5782_v31  ;;  %v1935_v21 = vpop.f32.mrf.mxu0  ;;  %v2435_v19 = vsel %vm7155_vm15, %v5818_v46, 0.0  ;;  %3689 = vmatprep.mubr.msk.f32.mxu1 %vm7285_vm14, %v5925_v60  ;;  %3676 = vmatprep.mubr.msk.f32.mxu0 %vm7286_vm9, %v5925_v60  ;;  %vm7293_vm14 = vnez %v7229_v37 }
 0x30a   : > { %2483 = vrot.lane.b32.xlu1 %v2435_v19, %s3843_s28  ;;  %v1936_v15 = vadd.f32 %v1935_v21, %v5776_v3  ;;  %vm7298_vm9 = vnez %v7227_v27 }
 0x30b   : > { %v5832_v12 = vmax.f32 %v1867_v48, 0.0  ;;  %v1937_v30 = vpop.f32.mrf.mxu0  ;;  %3666 = vmatprep.subr.msk.mxu0 %vm7151_vm7, %v5825_v63  ;;  %v2452_v10 = vsel %vm7151_vm7, %v5825_v63, 0.0 }
 0x30c   : > { %3667 = vmatpush1.msk.msra.mxu0 %vm7153_vm3, %v5805_v49  ;;  %2587 = vrot.lane.b32.xlu0 %v2434_v50, %s3842_s27  ;;  %v5860_v22 = vmax.f32 %v1936_v15, 0.0  ;;  %v1938_v52 = vadd.f32 %v1937_v30, %v5776_v3 }
 0x30d   : > { %3668 = vmatprep.subr.msk.mxu0 %vm7151_vm7, %v5815_v43  ;;  %v2453_v5 = vsel %vm7155_vm15, %v5832_v12, 0.0 }
 0x30e   : > { %3669 = vmatpush1.msk.msra.mxu0 %vm7153_vm3, %v5784_v45  ;;  %2591 = vrot.lane.b32.xlu1 %v2435_v19, %s3842_s27  ;;  %v2436_v54 = vsel %vm7283_vm0, %v5860_v22, 0.0  ;;  %v5891_v59 = vmax.f32 %v1938_v52, 0.0 }
 0x30f   : > { %v1941_v28 = vpop.f32.mrf.mxu0 }
 0x310   : > { %v1942_v16 = vadd.f32 %v1941_v28, %v5782_v31  ;;  %2485 = vrot.lane.b32.xlu0 %v2453_v5, %s3843_s28  ;;  %v2437_v23 = vsel %vm7157_vm8, %v5891_v59, 0.0 }
 0x311   : > { %v1943_v1 = vpop.f32.mrf.mxu0 }
 0x312   : > { %v5857_v9 = vmax.f32 %v1942_v16, 0.0  ;;  %2481 = vrot.lane.b32.xlu1 %v2452_v10, %s3843_s28  ;;  %v1944_v51 = vadd.f32 %v1943_v1, %v5782_v31 }
 0x314   : > { %3677 = vmatprep.subr.msk.mxu1 %vm7283_vm0, %v5857_v9  ;;  %2593 = vrot.lane.b32.xlu0 %v2453_v5, %s3842_s27  ;;  %v2454_v39 = vsel %vm7283_vm0, %v5857_v9, 0.0  ;;  %v5902_v34 = vmax.f32 %v1944_v51, 0.0 }
 0x315   : > { %3678 = vmatpush1.msk.msra.mxu1 %vm7155_vm15, %v5832_v12 }
 0x316   : > { %3679 = vmatprep.subr.msk.mxu1 %vm7283_vm0, %v5860_v22  ;;  %2589 = vrot.lane.b32.xlu1 %v2452_v10, %s3842_s27  ;;  %v2455_v20 = vsel %vm7157_vm8, %v5902_v34, 0.0 }
 0x317   : > { %3680 = vmatpush1.msk.msra.mxu1 %vm7155_vm15, %v5818_v46 }
 0x318   : > { %2487 = vrot.lane.b32.xlu0 %v2436_v54, %s3843_s28 }
 0x31a   : > { %2489 = vrot.lane.b32.xlu1 %v2454_v39, %s3843_s28 }
 0x31c   : > { %2595 = vrot.lane.b32.xlu0 %v2436_v54, %s3842_s27 }
 0x31e   : > { %2597 = vrot.lane.b32.xlu1 %v2454_v39, %s3842_s27 }
 0x320   : > { %3810 = vrot.lane.b32.xlu0 %v7258_v44, %s3843_s28 }
 0x322   : > { %2579 = vrot.lane.b32.xlu1 %v5789_v13, %s3842_s27 }
 0x324   : > { %3820 = vrot.lane.b32.xlu0 %v7258_v44, %s3843_s28 }
 0x326   : > { %3815 = vrot.lane.b32.xlu1 %v7258_v44, %s3842_s27 }
 0x328   : > { %2599 = vrot.lane.b32.xlu0 %v2437_v23, %s3842_s27 }
 0x329   : > { %v2012_v57 = vpop.f32.mrf.mxu1 }
 0x32a   : > { %v2013_v17 = vadd.f32 %v2012_v57, %v5776_v3  ;;  %2491 = vrot.lane.b32.xlu1 %v2437_v23, %s3843_s28 }
 0x32b   : > { %v2014_v13 = vpop.f32.mrf.mxu1 }
 0x32c   : > { %v5906_v40 = vmax.f32 %v2013_v17, 0.0  ;;  %v2015_v26 = vadd.f32 %v2014_v13, %v5776_v3 }
 0x32e   : > { %v2018_v29 = vpop.f32.mrf.mxu1  ;;  %v2438_v2 = vsel %vm7156_vm5, %v5906_v40, 0.0  ;;  %2601 = vrot.lane.b32.xlu1 %v2455_v20, %s3842_s27  ;;  %v5927_v24 = vmax.f32 %v2015_v26, 0.0 }
 0x32f   : > { %v2019_v8 = vadd.f32 %v2018_v29, %v5782_v31  ;;  %2495 = vrot.lane.b32.xlu0 %v2438_v2, %s3843_s28 }
 0x330   : > { %v2020_v56 = vpop.f32.mrf.mxu1  ;;  %v2439_v28 = vsel %vm7158_vm2, %v5927_v24, 0.0 }
 0x331   : > { %v5929_v50 = vmax.f32 %v2019_v8, 0.0  ;;  %v2021_v4 = vadd.f32 %v2020_v56, %v5782_v31  ;;  %v2089_v48 = vpop.f32.mrf.mxu0 }
 0x332   : > { %2493 = vrot.lane.b32.xlu1 %v2455_v20, %s3843_s28  ;;  %v2090_v19 = vadd.f32 %v2089_v48, %v5776_v3 }
 0x333   : > { %v5935_v21 = vmax.f32 %v2021_v4, 0.0  ;;  %v2091_v30 = vpop.f32.mrf.mxu0  ;;  %v2456_v15 = vsel %vm7156_vm5, %v5929_v50, 0.0 }
 0x334   : > { %2497 = vrot.lane.b32.xlu0 %v2456_v15, %s3843_s28  ;;  %v5948_v5 = vmax.f32 %v2090_v19, 0.0  ;;  %v2092_v51 = vadd.f32 %v2091_v30, %v5776_v3 }
 0x335   : > { %v2457_v10 = vsel %vm7158_vm2, %v5935_v21, 0.0 }
 0x336   : > { %2499 = vrot.lane.b32.xlu1 %v2439_v28, %s3843_s28  ;;  %v2440_v52 = vsel %vm7287_vm13, %v5948_v5, 0.0  ;;  %v5970_v57 = vmax.f32 %v2092_v51, 0.0 }
 0x337   : > { %v2095_v16 = vpop.f32.mrf.mxu0 }
 0x338   : > { %v2096_v54 = vadd.f32 %v2095_v16, %v5782_v31  ;;  %2609 = vrot.lane.b32.xlu0 %v2457_v10, %s3842_s27  ;;  %7288 = vst [vmem:[#allocation16_spill] sm:$0xff] %v5970_v57  ;;  %v2441_v26 = vsel %vm7163_vm12, %v5970_v57, 0.0 }
 0x339   : > { %v2097_v23 = vpop.f32.mrf.mxu0 }
 0x33a   : > { %2605 = vrot.lane.b32.xlu1 %v2456_v15, %s3842_s27  ;;  %v5956_v39 = vmax.f32 %v2096_v54, 0.0  ;;  %v2098_v17 = vadd.f32 %v2097_v23, %v5782_v31 }
 0x33c   : > { %2503 = vrot.lane.b32.xlu0 %v2440_v52, %s3843_s28  ;;  %v2458_v1 = vsel %vm7287_vm13, %v5956_v39, 0.0  ;;  %v5975_v13 = vmax.f32 %v2098_v17, 0.0 }
 0x33e   : > { %2501 = vrot.lane.b32.xlu1 %v2457_v10, %s3843_s28  ;;  %7289 = vst [vmem:[#allocation22_spill] sm:$0xff] %v5975_v13  ;;  %v2459_v20 = vsel %vm7163_vm12, %v5975_v13, 0.0 }
 0x340   : > { %2505 = vrot.lane.b32.xlu0 %v2458_v1, %s3843_s28 }
 0x342   : > { %2613 = vrot.lane.b32.xlu1 %v2458_v1, %s3842_s27 }
 0x344   : > { %2603 = vrot.lane.b32.xlu0 %v2438_v2, %s3842_s27 }
 0x346   : > { %2607 = vrot.lane.b32.xlu1 %v2439_v28, %s3842_s27 }
 0x348   : > { %2611 = vrot.lane.b32.xlu0 %v2440_v52, %s3842_s27 }
 0x34a   : > { %2507 = vrot.lane.b32.xlu1 %v2441_v26, %s3843_s28 }
 0x34c   : > { %2615 = vrot.lane.b32.xlu0 %v2441_v26, %s3842_s27 }
 0x34e   : > { %2617 = vrot.lane.b32.xlu1 %v2459_v20, %s3842_s27 }
 0x351   : > { %v2166_v29 = vpop.f32.mrf.mxu1 }
 0x352   : > { %v2167_v2 = vadd.f32 %v2166_v29, %v5776_v3  ;;  %2509 = vrot.lane.b32.xlu1 %v2459_v20, %s3843_s28 }
 0x353   : > { %v2168_v55 = vpop.f32.mrf.mxu1 }
 0x354   : > { %v5988_v8 = vmax.f32 %v2167_v2, 0.0  ;;  %v2169_v56 = vadd.f32 %v2168_v55, %v5776_v3 }
 0x356   : > { %7290 = vst [vmem:[#allocation18_spill] sm:$0xff] %v5988_v8  ;;  %v5991_v4 = vmax.f32 %v2169_v56, 0.0  ;;  %v2442_v48 = vsel %vm7292_vm4, %v5988_v8, 0.0 }
 0x357   : > { %v2172_v19 = vpop.f32.mrf.mxu1  ;;  %2511 = vrot.lane.b32.xlu0 %v2442_v48, %s3843_s28 }
 0x358   : > { %7291 = vst [vmem:[#allocation19_spill] sm:$0xff] %v5991_v4  ;;  %v2173_v30 = vadd.f32 %v2172_v19, %v5782_v31  ;;  %v2443_v15 = vsel %vm7293_vm14, %v5991_v4, 0.0 }
 0x359   : > { %v2174_v28 = vpop.f32.mrf.mxu1  ;;  %v2243_v16 = vpop.f32.mrf.mxu0  ;;  %2515 = vrot.lane.b32.xlu1 %v2443_v15, %s3843_s28 }
 0x35a   : > { %v6002_v10 = vmax.f32 %v2173_v30, 0.0  ;;  %v2175_v54 = vadd.f32 %v2174_v28, %v5782_v31  ;;  %v2244_v51 = vadd.f32 %v2243_v16, %v5776_v3 }
 0x35b   : > { %v2245_v52 = vpop.f32.mrf.mxu0 }
 0x35c   : > { %7294 = vst [vmem:[#allocation17_spill] sm:$0xff] %v6002_v10  ;;  %v6005_v1 = vmax.f32 %v2175_v54, 0.0  ;;  %v2460_v23 = vsel %vm7292_vm4, %v6002_v10, 0.0  ;;  %v6014_v20 = vmax.f32 %v2244_v51, 0.0  ;;  %v2246_v51 = vadd.f32 %v2245_v52, %v5776_v3 }
 0x35d   : > { %v2249_v17 = vpop.f32.mrf.mxu0  ;;  %2513 = vrot.lane.b32.xlu0 %v2460_v23, %s3843_s28  ;;  %2621 = vrot.lane.b32.xlu1 %v2460_v23, %s3842_s27  ;;  %v6041_v23 = vpop.permute.xlu1 %2471 }
 0x35e   : > { %7295 = vst [vmem:[#allocation24_spill] sm:$0xff] %v6005_v1  ;;  %v2250_v26 = vadd.f32 %v2249_v17, %v5782_v31  ;;  %7296 = vst [vmem:[#allocation23_spill] sm:$0xff] %v6014_v20  ;;  %v2461_v2 = vsel %vm7293_vm14, %v6005_v1, 0.0  ;;  %v2444_v19 = vsel %vm7298_vm9, %v6014_v20, 0.0  ;;  %v6027_v30 = vpop.permute.xlu0 %2473 }
 0x35f   : > { %v2251_v55 = vpop.f32.mrf.mxu0 }
 0x360   : > { %v6016_v29 = vmax.f32 %v2250_v26, 0.0  ;;  %v2252_v56 = vadd.f32 %v2251_v55, %v5782_v31  ;;  %v6048_v26 = vmax.f32 %v2246_v51, 0.0 }
 0x361   : > { %2625 = vrot.lane.b32.xlu0 %v2461_v2, %s3842_s27  ;;  %2517 = vrot.lane.b32.xlu1 %v2461_v2, %s3843_s28 }
 0x362   : > { %7297 = vst [vmem:[#allocation20_spill] sm:$0xff] %v6016_v29  ;;  %v2462_v28 = vsel %vm7298_vm9, %v6016_v29, 0.0  ;;  %v6034_v16 = vmax.f32 %v2252_v56, 0.0  ;;  %v6038_v54 = vpop.permute.xlu0 %2581  ;;  %7300 = vst [vmem:[#allocation25_spill] sm:$0xff] %v6048_v26  ;;  %v2445_v52 = vsel %vm7243_vm1, %v6048_v26, 0.0 }
 0x364   : > { %7299 = vst [vmem:[#allocation21_spill] sm:$0xff] %v6034_v16  ;;  %v2463_v17 = vsel %vm7243_vm1, %v6034_v16, 0.0  ;;  %vm7305_vm1 = vcmp.lt.s32.totalorder %v3937_v18, 1 }
 0x365   : > { %2519 = vrot.lane.b32.xlu0 %v2444_v19, %s3843_s28  ;;  %2629 = vrot.lane.b32.xlu1 %v2462_v28, %s3842_s27  ;;  %vm7306_vm14 = vmmov %vm7305_vm1 }
 0x366   : > { %v2478_v2 = vpop.permute.xlu0 %2477 }
 0x369   : > { %2521 = vrot.lane.b32.xlu0 %v2462_v28, %s3843_s28  ;;  %2623 = vrot.lane.b32.xlu1 %v2443_v15, %s3842_s27  ;;  %v2476_v15 = vpop.permute.xlu1 %2475 }
 0x36a   : > { %v2586_v55 = vpop.permute.xlu0 %2585  ;;  %v6106_v61 = vsel %vm7305_vm1, %v6041_v23, %v2476_v15 }
 0x36d   : > { %2619 = vrot.lane.b32.xlu0 %v2442_v48, %s3842_s27  ;;  %2633 = vrot.lane.b32.xlu1 %v2463_v17, %s3842_s27  ;;  %v6056_v56 = vpop.permute.xlu1 %2583 }
 0x371   : > { %2627 = vrot.lane.b32.xlu0 %v2444_v19, %s3842_s27  ;;  %2525 = vrot.lane.b32.xlu1 %v2463_v17, %s3843_s28 }
 0x375   : > { %2631 = vrot.lane.b32.xlu0 %v2445_v52, %s3842_s27 }
 0x378   : > { %v2320_v48 = vpop.f32.mrf.mxu1 }
 0x379   : > { %v2321_v28 = vadd.f32 %v2320_v48, %v5776_v3  ;;  %2523 = vrot.lane.b32.xlu0 %v2445_v52, %s3843_s28 }
 0x37a   : > { %v2322_v51 = vpop.f32.mrf.mxu1  ;;  %v2480_v16 = vpop.permute.xlu0 %2479 }
 0x37b   : > { %v6060_v19 = vmax.f32 %v2321_v28, 0.0  ;;  %v2323_v17 = vadd.f32 %v2322_v51, %v5776_v3 }
 0x37c   : > { %v2326_v4 = vpop.f32.mrf.mxu1  ;;  %v2484_v57 = vpop.permute.xlu1 %2483 }
 0x37d   : > { %7301 = vst [vmem:[#allocation26_spill] sm:$0xff] %v6060_v19  ;;  %v6063_v33 = vmax.f32 %v2323_v17, 0.0  ;;  %v2327_v26 = vadd.f32 %v2326_v4, %v5782_v31  ;;  %v2446_v20 = vsel %vm7240_vm10, %v6060_v19, 0.0 }
 0x37e   : > { %v2328_v8 = vpop.f32.mrf.mxu1  ;;  %2527 = vrot.lane.b32.xlu1 %v2446_v20, %s3843_s28  ;;  %v2588_v52 = vpop.permute.xlu0 %2587 }
 0x37f   : > { %7302 = vst [vmem:[#allocation28_spill] sm:$0xff] %v6063_v33  ;;  %v6070_v48 = vmax.f32 %v2327_v26, 0.0  ;;  %v2329_v28 = vadd.f32 %v2328_v8, %v5782_v31  ;;  %v2447_v3 = vsel %vm7261_vm6, %v6063_v33, 0.0 }
 0x380   : > { %2531 = vrot.lane.b32.xlu0 %v2447_v3, %s3843_s28  ;;  %v2592_v51 = vpop.permute.xlu1 %2591 }
 0x381   : > { %7303 = vst [vmem:[#allocation27_spill] sm:$0xff] %v6070_v48  ;;  %v6077_v4 = vmax.f32 %v2329_v28, 0.0  ;;  %v2464_v17 = vsel %vm7240_vm10, %v6070_v48, 0.0  ;;  %v6094_v28 = vsel %vm7306_vm14, %v6027_v30, %v2478_v2  ;;  %vm7307_vm10 = vmmov %vm7305_vm1  ;;  %vm7308_vm14 = vcmp.lt.s32.totalorder %v3937_v18, 127 }
 0x382   : > { %2637 = vrot.lane.b32.xlu1 %v2464_v17, %s3842_s27  ;;  %v2486_v19 = vpop.permute.xlu0 %2485 }
 0x383   : > { %7304 = vst [vmem:[#allocation7_spill] sm:$0xff] %v6077_v4  ;;  %v2465_v31 = vsel %vm7261_vm6, %v6077_v4, 0.0 }
 0x384   : > { %2529 = vrot.lane.b32.xlu0 %v2464_v17, %s3843_s28  ;;  %v2482_v26 = vpop.permute.xlu1 %2481  ;;  %v6101_v17 = vsel %vm7307_vm10, %v2476_v15, %v2480_v16  ;;  %vm7309_vm10 = vmmov %vm7308_vm14 }
 0x385   : > { %v6089_v8 = vsel %vm7305_vm1, %v2478_v2, %v2482_v26  ;;  %v2678_v11 = vsel %vm7309_vm10, %v6038_v54, %v2586_v55  ;;  %vm7310_vm1 = vmmov %vm7309_vm10 }
 0x386   : > { %2533 = vrot.lane.b32.xlu1 %v2465_v31, %s3843_s28  ;;  %v2594_v33 = vpop.permute.xlu0 %2593  ;;  %2710 = vmatprep.subr.mxu0 %v6089_v8 }
 0x387   : > { %2711 = vmatpush1.msra.mxu0 %v6094_v28 }
 0x388   : > { %2635 = vrot.lane.b32.xlu0 %v2446_v20, %s3842_s27  ;;  %2712 = vmatprep.subr.mxu0 %v6101_v17  ;;  %v2590_v2 = vpop.permute.xlu1 %2589  ;;  %v6126_v20 = vsel %vm7310_vm1, %v6056_v56, %v2588_v52 }
 0x389   : > { %2713 = vmatpush1.msra.mxu0 %v6106_v61  ;;  %v6113_v4 = vsel %vm7308_vm14, %v2586_v55, %v2590_v2  ;;  %vm7311_vm14 = vcmp.lt.s32.totalorder %v3937_v18, 1 }
 0x38a   : > { %2645 = vrot.lane.b32.xlu1 %v7258_v44, %s3842_s27  ;;  %v6120_v15 = vpop.permute.xlu0 %2487  ;;  %2714 = vmatprep.subr.mxu0 %v6113_v4  ;;  %vm7312_vm10 = vmmov %vm7311_vm14 }
 0x38b   : > { %2715 = vmatpush1.msra.mxu0 %v2678_v11  ;;  %v6140_v37 = vsel %vm7312_vm10, %v2482_v26, %v2486_v19  ;;  %vm7314_vm1 = vmmov %vm7312_vm10  ;;  %vm7317_vm10 = vcmp.lt.s32.totalorder %v3937_v18, 127 }
 0x38c   : > { %2641 = vrot.lane.b32.xlu0 %v2465_v31, %s3842_s27  ;;  %2716 = vmatprep.subr.mxu0 %v6126_v20  ;;  %v6130_v48 = vpop.permute.xlu1 %2489  ;;  %7313 = vst [vmem:[#allocation6_spill] sm:$0xff] %v6140_v37  ;;  %v2684_v31 = vld [vmem:[#allocation5] sm:$0x1]  ;;  %v6149_v7 = vsel %vm7314_vm1, %v2484_v57, %v6120_v15 }
 0x38d   : > { %v6135_v55 = vsel %vm7311_vm14, %v2486_v19, %v6130_v48  ;;  %vm7315_vm14 = vmmov %vm7314_vm1 }
 0x38e   : > { %2639 = vrot.lane.b32.xlu1 %v2447_v3, %s3842_s27  ;;  %v6142_v1 = vpop.permute.xlu0 %2595  ;;  %2781 = vmatprep.subr.mxu1 %v6135_v55  ;;  %v6153_v13 = vsel %vm7315_vm14, %v2480_v16, %v2484_v57  ;;  %vm7318_vm1 = vmmov %vm7317_vm10 }
 0x38f   : > { %2782 = vmatpush1.msra.mxu1 %v6140_v37  ;;  %7316 = vst [vmem:[#allocation29_spill] sm:$0xff] %v6153_v13  ;;  %v6168_v26 = vsel %vm7318_vm1, %v2590_v2, %v2594_v33  ;;  %vm7319_vm14 = vmmov %vm7318_vm1 }
 0x390   : > { %2643 = vrot.lane.b32.xlu0 %v7258_v44, %s3842_s27  ;;  %2783 = vmatprep.subr.mxu1 %v6149_v7  ;;  %v6158_v19 = vpop.permute.xlu1 %2597  ;;  %v6177_v16 = vsel %vm7319_vm14, %v2592_v51, %v6142_v1  ;;  %vm7320_vm6 = vmmov %vm7318_vm1 }
 0x391   : > { %2784 = vmatpush1.msra.mxu1 %v6153_v13  ;;  %v6164_v3 = vsel %vm7317_vm10, %v2594_v33, %v6158_v19  ;;  %v6181_v27 = vsel %vm7320_vm6, %v2588_v52, %v2592_v51  ;;  %vm7321_vm10 = vmmov %vm7318_vm1  ;;  %vm7322_vm6 = vcmp.lt.s32.totalorder %v3937_v18, 1 }
 0x392   : > { %2687 = vperm.xlu1 %3793, %v2684_v31   ;;  %v6170_v57 = vpop.permute.xlu0 %3810  ;;  %2785 = vmatprep.subr.mxu1 %v6164_v3  ;;  %vm7323_vm1 = vmmov %vm7322_vm6 }
 0x393   : > { %2786 = vmatpush1.msra.mxu1 %v6168_v26  ;;  %v3812_v29 = vunpack.i.l.bf16 %v6170_v57  ;;  %v3813_v52 = vunpack.i.h.bf16 %v6170_v57  ;;  %vm7325_vm14 = vmmov %vm7321_vm10  ;;  %v7347_v38 = vld [vmem:[#allocation6_spill] sm:$0xff] }
 0x394   : > { %2787 = vmatprep.subr.mxu1 %v6177_v16  ;;  %v2580_v31 = vpop.permute.xlu1 %2579 }
 0x395   : > { %v2677_v33 = vsel %vm7321_vm10, %v2580_v31, %v6056_v56  ;;  %2788 = vmatpush1.msra.mxu1 %v6181_v27  ;;  %v2572_v57 = vsel %vm7322_vm6, %v3812_v29, %v6027_v30  ;;  %v2571_v51 = vsel %vm7323_vm1, %v3813_v52, %v6041_v23 }
 0x396   : > { %v6188_v2 = vpop.permute.xlu0 %3820  ;;  %2717 = vmatpush1.msra.mxu0 %v2677_v33  ;;  %3681 = vmatprep.subr.msk.mxu1 %vm7155_vm15, %v5832_v12  ;;  %v7348_v36 = vld [vmem:[#allocation29_spill] sm:$0xff] }
 0x397   : > { %3670 = vmatprep.subr.msk.mxu0 %vm7153_vm3, %v5805_v49  ;;  %3682 = vmatpush1.msk.msra.mxu1 %vm7151_vm7, %v5825_v63 }
 0x398   : > { %3671 = vmatpush1.msk.msra.mxu0 %vm7152_vm11, %v5794_v53  ;;  %3683 = vmatprep.subr.msk.mxu1 %vm7155_vm15, %v5818_v46  ;;  %v6206_v56 = vpop.permute.xlu1 %3815 }
 0x399   : > { %3672 = vmatprep.subr.msk.mxu0 %vm7153_vm3, %v5784_v45  ;;  %3684 = vmatpush1.msk.msra.mxu1 %vm7151_vm7, %v5815_v43  ;;  %v7324_v30 = vunpack.i.l.bf16 %v6206_v56 }
 0x39a   : > { %3673 = vmatpush1.msk.msra.mxu0 %vm7152_vm11, %v5779_v58  ;;  %2793 = vmatprep.subr.mxu1 %v6140_v37  ;;  %v6220_v25 = vpop.permute.xlu0 %2599 }
 0x39b   : > { %2722 = vmatprep.subr.mxu0 %v6094_v28  ;;  %2794 = vmatpush1.msra.mxu1 %v6089_v8  ;;  %v2680_v46 = vsel %vm7325_vm14, %v7324_v30, %v6038_v54  ;;  %v3822_v54 = vunpack.i.l.bf16 %v6188_v2  ;;  %vm7331_vm14 = vmmov %vm7323_vm1 }
 0x39c   : > { %2723 = vmatpush1.msra.mxu0 %v2572_v57  ;;  %2795 = vmatprep.subr.mxu1 %v6153_v13  ;;  %v6228_v10 = vpop.permute.xlu1 %2491 }
 0x39d   : > { %2724 = vmatprep.subr.mxu0 %v6106_v61  ;;  %2796 = vmatpush1.msra.mxu1 %v6101_v17 }
 0x39e   : > { %2725 = vmatpush1.msra.mxu0 %v2571_v51  ;;  %2797 = vmatprep.subr.mxu1 %v6168_v26 }
 0x39f   : > { %2726 = vmatprep.subr.mxu0 %v2678_v11  ;;  %2798 = vmatpush1.msra.mxu1 %v6113_v4  ;;  %v7326_v11 = vunpack.i.h.bf16 %v6206_v56 }
 0x3a0   : > { %2799 = vmatprep.subr.mxu1 %v6181_v27  ;;  %v6244_v13 = vpop.permute.xlu1 %2601  ;;  %2727 = vmatpush1.msra.mxu0 %v2680_v46 }
 0x3a1   : > { %v6246_v37 = vpop.permute.xlu0 %2495  ;;  %2728 = vmatprep.subr.mxu0 %v2677_v33  ;;  %2800 = vmatpush1.msra.mxu1 %v6126_v20  ;;  %v2679_v23 = vsel %vm7321_vm10, %v7326_v11, %v2580_v31  ;;  %v3823_v31 = vunpack.i.h.bf16 %v6188_v2 }
 0x3a2   : > { %2729 = vmatpush1.msra.mxu0 %v2679_v23  ;;  %3685 = vmatprep.subr.msk.mxu1 %vm7151_vm7, %v5825_v63 }
 0x3a3   : > { %3674 = vmatprep.subr.msk.mxu0 %vm7152_vm11, %v5794_v53  ;;  %3686 = vmatpush1.msk.msra.mxu1 %vm7153_vm3, %v5805_v49 }
 0x3a4   : > { %3687 = vmatprep.subr.msk.mxu1 %vm7151_vm7, %v5815_v43  ;;  %v2494_v46 = vpop.permute.xlu1 %2493  ;;  %2731 = vmatpush1.msra.mxu0 %v7258_v44  ;;  %vm7327_vm7 = vmmov %vm7323_vm1  ;;  %v6298_v43 = vrot.slane %v5919_v47, %v2692_v32 }
 0x3a5   : > { %3675 = vmatprep.subr.msk.mxu0 %vm7152_vm11, %v5779_v58  ;;  %3688 = vmatpush1.msk.msra.mxu1 %vm7153_vm3, %v5784_v45  ;;  %v2574_v14 = vsel %vm7327_vm7, %v3822_v54, %v3812_v29  ;;  %vm7328_vm11 = vmmov %vm7323_vm1  ;;  %vm7333_vm7 = vcmask 130048  }
 0x3a6   : > { %v2498_v53 = vpop.permute.xlu0 %2497  ;;  %2733 = vmatpush1.msra.mxu0 %v7258_v44  ;;  %2805 = vmatprep.subr.mxu1 %v6089_v8  ;;  %v2573_v35 = vsel %vm7328_vm11, %v3823_v31, %v3813_v52  ;;  %vm7329_vm3 = vmmov %vm7321_vm10 }
 0x3a7   : > { %2734 = vmatprep.subr.mxu0 %v2572_v57  ;;  %2806 = vmatpush1.msra.mxu1 %v6094_v28  ;;  %v6292_v45 = vsel %vm7329_vm3, %v6158_v19, %v6244_v13  ;;  %vm7330_vm6 = vmmov %vm7329_vm3 }
 0x3a8   : > { %2807 = vmatprep.subr.mxu1 %v6101_v17  ;;  %v2500_v58 = vpop.permute.xlu1 %2499  ;;  %2735 = vmatpush1.msra.mxu0 %v2574_v14  ;;  %vm7332_vm10 = vmmov %vm7323_vm1  ;;  %v7355_v14 = vld [vmem:[#allocation22_spill] sm:$0xff] }
 0x3a9   : > { %2736 = vmatprep.subr.mxu0 %v2571_v51  ;;  %2808 = vmatpush1.msra.mxu1 %v6106_v61  ;;  %v6306_v61 = vsel %vm7330_vm6, %v6142_v1, %v6220_v25  ;;  %v6354_v8 = vsel %vm7332_vm10, %v2494_v46, %v2498_v53  ;;  %vm7334_vm11 = vmmov %vm7323_vm1 }
 0x3aa   : > { %v2610_v49 = vpop.permute.xlu0 %2609  ;;  %2737 = vmatpush1.msra.mxu0 %v2573_v35  ;;  %2837 = vmatprep.subr.mxu1 %v6292_v45  ;;  %v6361_v28 = vsel %vm7334_vm11, %v6130_v48, %v2494_v46  ;;  %vm7335_vm3 = vmmov %vm7323_vm1  ;;  %v7357_v35 = vld [vmem:[#allocation24_spill] sm:$0xff] }
 0x3ab   : > { %2766 = vmatprep.subr.mxu0 %v6168_v26  ;;  %2838 = vmatpush2.msra.mxu1 %v6164_v3  ;;  %vm7336_vm6 = vmmov %vm7323_vm1 }
 0x3ac   : > { %2839 = vmatprep.subr.mxu1 %v6306_v61  ;;  %v2606_v63 = vpop.permute.xlu1 %2605  ;;  %2767 = vmatpush2.msra.mxu0 %v6113_v4  ;;  %v6378_v48 = vsel %vm7336_vm6, %v6228_v10, %v6246_v37  ;;  %vm7339_vm10 = vmmov %vm7335_vm3 }
 0x3ad   : > { %2768 = vmatprep.subr.mxu0 %v6181_v27  ;;  %2840 = vmatpush2.msra.mxu1 %v6177_v16  ;;  %v6394_v33 = vsel %vm7339_vm10, %v6246_v37, %v2500_v58 }
 0x3ae   : > { %v6312_v47 = vpop.permute.xlu0 %2503  ;;  %2769 = vmatpush2.msra.mxu0 %v6126_v20  ;;  %2842 = vmatmul.mubr.f32.vlgmr.msra.gmra.mxu1 %v6298_v43 }
 0x3af   : > { %3703 = vmatprep.subr.msk.mxu1 %vm7287_vm13, %v5956_v39  ;;  %2771 = vmatmul.mubr.f32.vlgmr.msra.gmra.mxu0 %v6298_v43  ;;  %v6371_v20 = vsel %vm7335_vm3, %v2500_v58, %v6312_v47 }
 0x3b0   : > { %3690 = vmatprep.subr.msk.mxu0 %vm7156_vm5, %v5929_v50  ;;  %3704 = vmatpush1.msk.msra.mxu1 %vm7158_vm2, %v5935_v21  ;;  %v2502_v27 = vpop.permute.xlu1 %2501 }
 0x3b1   : > { %3705 = vmatprep.subr.msk.mxu1 %vm7287_vm13, %v5948_v5  ;;  %3691 = vmatpush1.msk.msra.mxu0 %vm7157_vm8, %v5902_v34  ;;  %v6336_v29 = vsel %vm7323_vm1, %v2498_v53, %v2502_v27  ;;  %vm7337_vm1 = vcmp.lt.s32.totalorder %v3937_v18, 127 }
 0x3b2   : > { %v6332_v1 = vpop.permute.xlu0 %2505  ;;  %3692 = vmatprep.subr.msk.mxu0 %vm7156_vm5, %v5906_v40  ;;  %3706 = vmatpush1.msk.msra.mxu1 %vm7158_vm2, %v5927_v24  ;;  %vm7341_vm11 = vmmov %vm7337_vm1 }
 0x3b3   : > { %3693 = vmatpush1.msk.msra.mxu0 %vm7157_vm8, %v5891_v59  ;;  %v6350_v4 = vsel %vm7331_vm14, %v2502_v27, %v6332_v1  ;;  %3702 = vmatprep.mubr.msk.f32.mxu0 %vm7333_vm7, %v5925_v60  ;;  %vm7338_vm14 = vmmov %vm7335_vm3 }
 0x3b4   : > { %2923 = vmatprep.subr.mxu1 %v6350_v4  ;;  %2852 = vmatprep.subr.mxu0 %v6354_v8  ;;  %v6365_v17 = vpop.permute.xlu1 %2613  ;;  %v6389_v26 = vsel %vm7338_vm14, %v6120_v15, %v6228_v10  ;;  %vm7340_vm7 = vmmov %vm7337_vm1  ;;  %v2666_v10 = vsel %vm7341_vm11, %v2606_v63, %v2610_v49 }
 0x3b5   : > { %2924 = vmatpush1.msra.mxu1 %v6336_v29  ;;  %2853 = vmatpush1.msra.mxu0 %v6361_v28  ;;  %v6383_v19 = vsel %vm7337_vm1, %v2610_v49, %v6365_v17  ;;  %v6403_v51 = vsel %vm7340_vm7, %v6244_v13, %v2606_v63  ;;  %vm7342_vm3 = vmmov %vm7337_vm1  ;;  %v7360_v49 = vld [vmem:[#allocation18_spill] sm:$0xff]  ;;  %v7362_v63 = vld [vmem:[#allocation16_spill] sm:$0xff] }
 0x3b6   : > { %v2604_v52 = vpop.permute.xlu0 %2603  ;;  %2925 = vmatprep.subr.mxu1 %v6371_v20  ;;  %2854 = vmatprep.subr.mxu0 %v6378_v48  ;;  %vm7343_vm6 = vmmov %vm7337_vm1  ;;  %vm7344_vm1 = vcmask 130048  }
 0x3b7   : > { %2926 = vmatpush1.msra.mxu1 %v6394_v33  ;;  %2855 = vmatpush1.msra.mxu0 %v6389_v26  ;;  %v6413_v15 = vsel %vm7342_vm3, %v6220_v25, %v2604_v52  ;;  %vm7345_vm14 = vmmov %vm7342_vm3 }
 0x3b8   : > { %2927 = vmatprep.subr.mxu1 %v6383_v19  ;;  %2856 = vmatprep.subr.mxu0 %v6403_v51  ;;  %v2608_v37 = vpop.permute.xlu1 %2607  ;;  %vm7366_vm7 = vmmov %vm7344_vm1 }
 0x3b9   : > { %2928 = vmatpush1.msra.mxu1 %v2666_v10  ;;  %2857 = vmatpush1.msra.mxu0 %v6292_v45  ;;  %v2665_v13 = vsel %vm7343_vm6, %v2604_v52, %v2608_v37 }
 0x3ba   : > { %v6415_v57 = vpop.permute.xlu0 %2611  ;;  %2858 = vmatprep.subr.mxu0 %v6413_v15  ;;  %3715 = vmatprep.mubr.msk.f32.mxu1 %vm7344_vm1, %v5925_v60 }
 0x3bb   : > { %2859 = vmatpush1.msra.mxu0 %v6306_v61  ;;  %v6426_v30 = vsel %vm7345_vm14, %v2608_v37, %v6415_v57 }
 0x3bc   : > { %2929 = vmatprep.subr.mxu1 %v6426_v30  ;;  %3694 = vmatprep.subr.msk.mxu0 %vm7157_vm8, %v5902_v34  ;;  %v6432_v25 = vpop.permute.xlu1 %2507 }
 0x3bd   : > { %2930 = vmatpush1.msra.mxu1 %v2665_v13  ;;  %3695 = vmatpush1.msk.msra.mxu0 %vm7283_vm0, %v5857_v9 }
 0x3be   : > { %3707 = vmatprep.subr.msk.mxu1 %vm7158_vm2, %v5935_v21  ;;  %3696 = vmatprep.subr.msk.mxu0 %vm7157_vm8, %v5891_v59  ;;  %v6465_v23 = vpop.permute.xlu0 %2615 }
 0x3bf   : > { %3708 = vmatpush1.msk.msra.mxu1 %vm7156_vm5, %v5929_v50  ;;  %3697 = vmatpush1.msk.msra.mxu0 %vm7283_vm0, %v5860_v22 }
 0x3c0   : > { %3709 = vmatprep.subr.msk.mxu1 %vm7158_vm2, %v5927_v24  ;;  %2864 = vmatprep.subr.mxu0 %v6361_v28  ;;  %v6453_v11 = vpop.permute.xlu1 %2617 }
 0x3c1   : > { %3710 = vmatpush1.msk.msra.mxu1 %vm7156_vm5, %v5906_v40  ;;  %2865 = vmatpush1.msra.mxu0 %v6135_v55 }
 0x3c2   : > { %2935 = vmatprep.subr.mxu1 %v6336_v29  ;;  %2866 = vmatprep.subr.mxu0 %v6389_v26 }
 0x3c3   : > { %2936 = vmatpush1.msra.mxu1 %v6354_v8  ;;  %2867 = vmatpush1.msra.mxu0 %v6149_v7 }
 0x3c4   : > { %2937 = vmatprep.subr.mxu1 %v6394_v33  ;;  %2868 = vmatprep.subr.mxu0 %v6292_v45  ;;  %v2510_v46 = vpop.permute.xlu1 %2509  ;;  %v7358_v45 = vld [vmem:[#allocation10_spill] sm:$0xff] }
 0x3c5   : > { %2938 = vmatpush1.msra.mxu1 %v6378_v48  ;;  %2869 = vmatpush1.msra.mxu0 %v6164_v3 }
 0x3c6   : > { %2939 = vmatprep.subr.mxu1 %v2666_v10  ;;  %2870 = vmatprep.subr.mxu0 %v6306_v61  ;;  %v7361_v61 = vld [vmem:[#allocation23_spill] sm:$0xff] }
 0x3c7   : > { %2940 = vmatpush1.msra.mxu1 %v6403_v51  ;;  %2871 = vmatpush1.msra.mxu0 %v6177_v16 }
 0x3c8   : > { %2941 = vmatprep.subr.mxu1 %v2665_v13  ;;  %3698 = vmatprep.subr.msk.mxu0 %vm7283_vm0, %v5857_v9  ;;  %v7346_v9 = vld [vmem:[#allocation15_spill] sm:$0xff] }
 0x3c9   : > { %v6475_v53 = vpop.permute.xlu0 %2511  ;;  %2942 = vmatpush1.msra.mxu1 %v6413_v15  ;;  %3699 = vmatpush1.msk.msra.mxu0 %vm7155_vm15, %v5832_v12 }
 0x3ca   : > { %3711 = vmatprep.subr.msk.mxu1 %vm7156_vm5, %v5929_v50  ;;  %3700 = vmatprep.subr.msk.mxu0 %vm7283_vm0, %v5860_v22  ;;  %v7353_v50 = vld [vmem:[#allocation20_spill] sm:$0xff]  ;;  %vm7363_vm0 = vmmov %vm7339_vm10 }
 0x3cb   : > { %v2516_v3 = vpop.permute.xlu1 %2515  ;;  %3712 = vmatpush1.msk.msra.mxu1 %vm7157_vm8, %v5902_v34  ;;  %3701 = vmatpush1.msk.msra.mxu0 %vm7155_vm15, %v7346_v9  ;;  %vm7349_vm15 = vmmov %vm7342_vm3  ;;  %v7351_v34 = vld [vmem:[#allocation17_spill] sm:$0xff] }
 0x3cc   : > { %3713 = vmatprep.subr.msk.mxu1 %vm7156_vm5, %v5906_v40  ;;  %2876 = vmatprep.subr.mxu0 %v6135_v55  ;;  %v6511_v42 = vsel %vm7349_vm15, %v6365_v17, %v6453_v11  ;;  %vm7350_vm5 = vmmov %vm7342_vm3  ;;  %v6611_v37 = vsel %vm7363_vm0, %v6475_v53, %v2516_v3 }
 0x3cd   : > { %3714 = vmatpush1.msk.msra.mxu1 %vm7157_vm8, %v5891_v59  ;;  %2877 = vmatpush1.msra.mxu0 %v7347_v38  ;;  %vm7359_vm8 = vnez %v7358_v45  ;;  %vm7365_vm10 = vmmov %vm7363_vm0 }
 0x3ce   : > { %2947 = vmatprep.subr.mxu1 %v6354_v8  ;;  %2878 = vmatprep.subr.mxu0 %v6149_v7  ;;  %v6521_v7 = vsel %vm7350_vm5, %v6415_v57, %v6465_v23  ;;  %v7364_v8 = vld [vmem:[#allocation19_spill] sm:$0xff]  ;;  %vm7367_vm11 = vmmov %vm7363_vm0 }
 0x3cf   : > { %v2514_v12 = vpop.permute.xlu0 %2513  ;;  %v2622_v22 = vpop.permute.xlu1 %2621  ;;  %2948 = vmatpush1.msra.mxu1 %v6361_v28  ;;  %2879 = vmatpush1.msra.mxu0 %v7348_v36  ;;  %v6560_v28 = vsel %vm7365_vm10, %v6332_v1, %v2510_v46  ;;  %vm7368_vm3 = vmmov %vm7344_vm1 }
 0x3d0   : > { %2949 = vmatprep.subr.mxu1 %v6378_v48  ;;  %2908 = vmatprep.subr.mxu0 %v2666_v10  ;;  %v6552_v27 = vsel %vm7363_vm0, %v2510_v46, %v2514_v12  ;;  %vm7369_vm6 = vmmov %vm7363_vm0 }
 0x3d1   : > { %2950 = vmatpush1.msra.mxu1 %v6389_v26  ;;  %2909 = vmatpush2.msra.mxu0 %v6403_v51  ;;  %v6574_v26 = vsel %vm7367_vm11, %v6432_v25, %v6475_v53  ;;  %v6582_v1 = vsel %vm7369_vm6, %v6312_v47, %v6432_v25  ;;  %vm7370_vm1 = vmmov %vm7363_vm0 }
 0x3d2   : > { %2979 = vmatprep.subr.mxu1 %v6511_v42  ;;  %2910 = vmatprep.subr.mxu0 %v2665_v13  ;;  %vm7371_vm14 = vmmov %vm7363_vm0 }
 0x3d3   : > { %v2626_v62 = vpop.permute.xlu0 %2625  ;;  %2980 = vmatpush2.msra.mxu1 %v6383_v19  ;;  %2911 = vmatpush2.msra.mxu0 %v6413_v15  ;;  %v2518_v59 = vpop.permute.xlu1 %2517  ;;  %vm7372_vm15 = vmmov %vm7350_vm5 }
 0x3d4   : > { %2981 = vmatprep.subr.mxu1 %v6521_v7  ;;  %2913 = vmatmul.mubr.f32.vlgmr.msra.gmra.mxu0 %v6298_v43  ;;  %v6592_v51 = vsel %vm7371_vm14, %v2514_v12, %v2518_v59  ;;  %v6599_v47 = vsel %vm7372_vm15, %v6453_v11, %v2622_v22  ;;  %vm7373_vm5 = vmmov %vm7363_vm0 }
 0x3d5   : > { %2982 = vmatpush2.msra.mxu1 %v6426_v30  ;;  %3716 = vmatprep.subr.msk.mxu0 %vm7292_vm4, %v7351_v34  ;;  %vm7374_vm10 = vmmov %vm7372_vm15 }
 0x3d6   : > { %2984 = vmatmul.mubr.f32.vlgmr.msra.gmra.mxu1 %v6298_v43  ;;  %3729 = vmatprep.subr.msk.mxu1 %vm7298_vm9, %v7353_v50  ;;  %vm7392_vm14 = vmmov %vm7363_vm0 }
 0x3d7   : > { %v6533_v16 = vpop.permute.xlu0 %2519  ;;  %3717 = vmatpush1.msk.msra.mxu0 %vm7163_vm12, %v7355_v14  ;;  %3730 = vmatpush1.msk.msra.mxu1 %vm7359_vm8, %v7357_v35  ;;  %v6562_v17 = vpop.permute.xlu1 %2629  ;;  %vm7393_vm15 = vmmov %vm7363_vm0 }
 0x3d8   : > { %3718 = vmatprep.subr.msk.mxu0 %vm7292_vm4, %v7360_v49  ;;  %3731 = vmatprep.subr.msk.mxu1 %vm7298_vm9, %v7361_v61  ;;  %v6605_v10 = vsel %vm7373_vm5, %v2516_v3, %v6533_v16  ;;  %v6619_v13 = vsel %vm7374_vm10, %v2626_v62, %v6562_v17  ;;  %vm7395_vm5 = vmmov %vm7363_vm0 }
 0x3d9   : > { %3719 = vmatpush1.msk.msra.mxu0 %vm7163_vm12, %v7362_v63  ;;  %3732 = vmatpush1.msk.msra.mxu1 %vm7359_vm8, %v7364_v8 }
 0x3da   : > { %2994 = vmatprep.subr.mxu0 %v6552_v27  ;;  %3728 = vmatprep.mubr.msk.f32.mxu0 %vm7366_vm7, %v5925_v60  ;;  %vm7375_vm7 = vmmov %vm7374_vm10 }
 0x3db   : > { %v6567_v48 = vpop.permute.xlu0 %2521  ;;  %2995 = vmatpush1.msra.mxu0 %v6560_v28  ;;  %3741 = vmatprep.mubr.msk.f32.mxu1 %vm7368_vm3, %v5925_v60  ;;  %v2624_v57 = vpop.permute.xlu1 %2623  ;;  %vm7376_vm11 = vmmov %vm7375_vm7 }
 0x3dc   : > { %v6587_v52 = vsel %vm7370_vm1, %v2518_v59, %v6567_v48  ;;  %2996 = vmatprep.subr.mxu0 %v6574_v26  ;;  %v2658_v11 = vsel %vm7376_vm11, %v2622_v22, %v2626_v62  ;;  %vm7377_vm3 = vmmov %vm7375_vm7  ;;  %v7388_v62 = vld [vmem:[#allocation7_spill] sm:$0xff]  ;;  %v7391_v59 = vld [vmem:[#allocation25_spill] sm:$0xff] }
 0x3dd   : > { %3065 = vmatprep.subr.mxu1 %v6587_v52  ;;  %2997 = vmatpush1.msra.mxu0 %v6582_v1  ;;  %vm7378_vm6 = vmmov %vm7377_vm3 }
 0x3de   : > { %3066 = vmatpush1.msra.mxu1 %v6592_v51  ;;  %2998 = vmatprep.subr.mxu0 %v6599_v47  ;;  %vm7396_vm10 = vmmov %vm7363_vm0 }
 0x3df   : > { %v2620_v15 = vpop.permute.xlu0 %2619  ;;  %3067 = vmatprep.subr.mxu1 %v6605_v10  ;;  %2999 = vmatpush1.msra.mxu0 %v6511_v42  ;;  %v6650_v3 = vpop.permute.xlu1 %2633  ;;  %vm7398_vm11 = vmmov %vm7363_vm0 }
 0x3e0   : > { %3068 = vmatpush1.msra.mxu1 %v6611_v37  ;;  %v6624_v25 = vsel %vm7375_vm7, %v6465_v23, %v2620_v15  ;;  %v2657_v53 = vsel %vm7378_vm6, %v2620_v15, %v2624_v57  ;;  %vm7397_vm7 = vmmov %vm7363_vm0 }
 0x3e1   : > { %3069 = vmatprep.subr.mxu1 %v6619_v13  ;;  %3000 = vmatprep.subr.mxu0 %v6624_v25  ;;  %vm7400_vm6 = vmmov %vm7363_vm0 }
 0x3e2   : > { %3070 = vmatpush1.msra.mxu1 %v2658_v11  ;;  %3001 = vmatpush1.msra.mxu0 %v6521_v7 }
 0x3e3   : > { %v6631_v46 = vpop.permute.xlu0 %2627  ;;  %3720 = vmatprep.subr.msk.mxu0 %vm7163_vm12, %v7355_v14  ;;  %v2526_v38 = vpop.permute.xlu1 %2525 }
 0x3e4   : > { %v6639_v23 = vsel %vm7377_vm3, %v2624_v57, %v6631_v46  ;;  %3721 = vmatpush1.msk.msra.mxu0 %vm7287_vm13, %v5956_v39  ;;  %v6760_v40 = vsel %vm7393_vm15, %v6567_v48, %v2526_v38 }
 0x3e5   : > { %3071 = vmatprep.subr.mxu1 %v6639_v23  ;;  %3722 = vmatprep.subr.msk.mxu0 %vm7163_vm12, %v7362_v63 }
 0x3e6   : > { %3072 = vmatpush1.msra.mxu1 %v2657_v53  ;;  %3723 = vmatpush1.msk.msra.mxu0 %vm7287_vm13, %v5948_v5 }
 0x3e7   : > { %3733 = vmatprep.subr.msk.mxu1 %vm7359_vm8, %v7357_v35  ;;  %3006 = vmatprep.subr.mxu0 %v6560_v28  ;;  %v6659_v9 = vpop.permute.xlu0 %2631 }
 0x3e8   : > { %3734 = vmatpush1.msk.msra.mxu1 %vm7292_vm4, %v7351_v34  ;;  %3007 = vmatpush1.msra.mxu0 %v6350_v4 }
 0x3e9   : > { %3735 = vmatprep.subr.msk.mxu1 %vm7359_vm8, %v7364_v8  ;;  %3008 = vmatprep.subr.mxu0 %v6582_v1 }
 0x3ea   : > { %3736 = vmatpush1.msk.msra.mxu1 %vm7292_vm4, %v7360_v49  ;;  %3009 = vmatpush1.msra.mxu0 %v6371_v20 }
 0x3eb   : > { %3077 = vmatprep.subr.mxu1 %v6592_v51  ;;  %3010 = vmatprep.subr.mxu0 %v6511_v42  ;;  %v2524_v12 = vpop.permute.xlu0 %2523 }
 0x3ec   : > { %3078 = vmatpush1.msra.mxu1 %v6552_v27  ;;  %3011 = vmatpush1.msra.mxu0 %v6383_v19 }
 0x3ed   : > { %3079 = vmatprep.subr.mxu1 %v6611_v37  ;;  %3012 = vmatprep.subr.mxu0 %v6521_v7  ;;  %v7389_v7 = vld [vmem:[#allocation14_spill] sm:$0xff] }
 0x3ee   : > { %3080 = vmatpush1.msra.mxu1 %v6574_v26  ;;  %3013 = vmatpush1.msra.mxu0 %v6426_v30  ;;  %v7387_v30 = vld [vmem:[#allocation26_spill] sm:$0xff]  ;;  %vm7390_vm1 = vnez %v7389_v7 }
 0x3ef   : > { %3081 = vmatprep.subr.mxu1 %v2658_v11  ;;  %3724 = vmatprep.subr.msk.mxu0 %vm7287_vm13, %v5956_v39 }
 0x3f0   : > { %v2528_v22 = vpop.permute.xlu1 %2527  ;;  %3082 = vmatpush1.msra.mxu1 %v6599_v47  ;;  %3725 = vmatpush1.msk.msra.mxu0 %vm7158_vm2, %v5935_v21 }
 0x3f1   : > { %3083 = vmatprep.subr.mxu1 %v2657_v53  ;;  %3726 = vmatprep.subr.msk.mxu0 %vm7287_vm13, %v5948_v5 }
 0x3f2   : > { %v2532_v19 = vpop.permute.xlu0 %2531  ;;  %3084 = vmatpush1.msra.mxu1 %v6624_v25  ;;  %3727 = vmatpush1.msk.msra.mxu0 %vm7158_vm2, %v5927_v24  ;;  %vm7379_vm2 = vmmov %vm7377_vm3 }
 0x3f3   : > { %3737 = vmatprep.subr.msk.mxu1 %vm7292_vm4, %v7351_v34  ;;  %3018 = vmatprep.subr.mxu0 %v6350_v4  ;;  %v6720_v21 = vsel %vm7379_vm2, %v6562_v17, %v6650_v3  ;;  %v7382_v4 = vld [vmem:[#allocation13_spill] sm:$0xff]  ;;  %vm7399_vm3 = vmmov %vm7379_vm2 }
 0x3f4   : > { %v2638_v39 = vpop.permute.xlu1 %2637  ;;  %3738 = vmatpush1.msk.msra.mxu1 %vm7163_vm12, %v7355_v14  ;;  %3019 = vmatpush1.msra.mxu0 %v6336_v29  ;;  %v7381_v29 = vld [vmem:[#allocation27_spill] sm:$0xff]  ;;  %vm7383_vm13 = vnez %v7382_v4  ;;  %v7394_v14 = vld [vmem:[#allocation28_spill] sm:$0xff]  ;;  %vm7403_vm15 = vmmov %vm7379_vm2 }
 0x3f5   : > { %3739 = vmatprep.subr.msk.mxu1 %vm7292_vm4, %v7360_v49  ;;  %3020 = vmatprep.subr.mxu0 %v6371_v20  ;;  %v7384_v20 = vld [vmem:[#allocation21_spill] sm:$0xff]  ;;  %v6774_v49 = vsel %vm7363_vm0, %v2524_v12, %v2528_v22 }
 0x3f6   : > { %v2530_v0 = vpop.permute.xlu0 %2529  ;;  %3740 = vmatpush1.msk.msra.mxu1 %vm7163_vm12, %v7362_v63  ;;  %3021 = vmatpush1.msra.mxu0 %v6394_v33  ;;  %vm7380_vm12 = vmmov %vm7379_vm2  ;;  %v7385_v33 = vld [vmem:[#allocation12_spill] sm:$0xff] }
 0x3f7   : > { %3089 = vmatprep.subr.mxu1 %v6552_v27  ;;  %3050 = vmatprep.subr.mxu0 %v2658_v11  ;;  %v6730_v5 = vsel %vm7380_vm12, %v6631_v46, %v6659_v9  ;;  %vm7386_vm4 = vnez %v7385_v33  ;;  %v6755_v34 = vsel %vm7392_vm14, %v2526_v38, %v2530_v0  ;;  %v2652_v27 = vsel %vm7399_vm3, %v6650_v3, %v2638_v39  ;;  %vm7401_vm12 = vmmov %vm7379_vm2  ;;  %v3275_v4 = vld [vmem:[#allocation2 + $0xc] ss:$8 sm:$0xf] }
 0x3f8   : > { %3090 = vmatpush1.msra.mxu1 %v6560_v28  ;;  %3051 = vmatpush2.msra.mxu0 %v6599_v47  ;;  %v2534_v6 = vpop.permute.xlu1 %2533  ;;  %vm7402_vm14 = vmmov %vm7379_vm2 }
 0x3f9   : > { %3091 = vmatprep.subr.mxu1 %v6574_v26  ;;  %3052 = vmatprep.subr.mxu0 %v2657_v53  ;;  %v2540_v58 = vsel %vm7395_vm5, %v2534_v6, %v3822_v54  ;;  %v2542_v63 = vsel %vm7397_vm7, %v2530_v0, %v2534_v6  ;;  %v2539_v54 = vsel %vm7398_vm11, %v2532_v19, %v3823_v31  ;;  %vm7404_vm5 = vmmov %vm7379_vm2 }
 0x3fa   : > { %v2636_v24 = vpop.permute.xlu0 %2635  ;;  %3092 = vmatpush1.msra.mxu1 %v6582_v1  ;;  %3053 = vmatpush2.msra.mxu0 %v6624_v25 }
 0x3fb   : > { %3121 = vmatprep.subr.mxu1 %v6720_v21  ;;  %3055 = vmatmul.mubr.f32.vlgmr.msra.gmra.mxu0 %v6298_v43  ;;  %v2651_v31 = vsel %vm7401_vm12, %v6659_v9, %v2636_v24 }
 0x3fc   : > { %3122 = vmatpush2.msra.mxu1 %v6619_v13  ;;  %3742 = vmatprep.subr.msk.mxu0 %vm7383_vm13, %v7381_v29  ;;  %v6745_v42 = vpop.permute.xlu1 %2645 }
 0x3fd   : > { %3123 = vmatprep.subr.mxu1 %v6730_v5  ;;  %3743 = vmatpush1.msk.msra.mxu0 %vm7386_vm4, %v7384_v20 }
 0x3fe   : > { %3124 = vmatpush2.msra.mxu1 %v6639_v23  ;;  %3744 = vmatprep.subr.msk.mxu0 %vm7383_vm13, %v7387_v30  ;;  %v2642_v36 = vpop.permute.xlu0 %2641 }
 0x3ff   : > { %3126 = vmatmul.mubr.f32.vlgmr.msra.gmra.mxu1 %v6298_v43  ;;  %3203 = vmatprep.subr.mxu1 %v7258_v44  ;;  %v2648_v2 = vsel %vm7379_vm2, %v2642_v36, %v6745_v42  ;;  %v2650_v48 = vsel %vm7402_vm14, %v2638_v39, %v2642_v36 }
 0x400   : > { %3755 = vmatpush1.msk.msra.mxu1 %vm7390_vm1, %v7388_v62  ;;  %3745 = vmatpush1.msk.msra.mxu0 %vm7386_vm4, %v7391_v59  ;;  %v2640_v17 = vpop.permute.xlu1 %2639 }
 0x401   : > { %3205 = vmatprep.subr.mxu1 %v7258_v44  ;;  %3136 = vmatprep.subr.mxu0 %v6755_v34  ;;  %v6779_v44 = vsel %vm7396_vm10, %v6533_v16, %v2524_v12  ;;  %v2541_v16 = vsel %vm7400_vm6, %v2528_v22, %v2532_v19  ;;  %v2649_v1 = vsel %vm7404_vm5, %v2636_v24, %v2640_v17 }
 0x402   : > { %3756 = vmatpush1.msk.msra.mxu1 %vm7390_vm1, %v7394_v14  ;;  %3137 = vmatpush1.msra.mxu0 %v6760_v40  ;;  %v6794_v28 = vpop.permute.xlu0 %2643 }
 0x403   : > { %3207 = vmatprep.subr.mxu1 %v2540_v58  ;;  %3138 = vmatprep.subr.mxu0 %v6774_v49  ;;  %v2647_v26 = vsel %vm7403_vm15, %v2640_v17, %v6794_v28 }
 0x404   : > { %3208 = vmatpush1.msra.mxu1 %v2542_v63  ;;  %3139 = vmatpush1.msra.mxu0 %v6779_v44 }
 0x405   : > { %3209 = vmatprep.subr.mxu1 %v2539_v54  ;;  %3140 = vmatprep.subr.mxu0 %v2652_v27 }
 0x406   : > { %3210 = vmatpush1.msra.mxu1 %v2541_v16  ;;  %3141 = vmatpush1.msra.mxu0 %v6720_v21 }
 0x407   : > { %3211 = vmatprep.subr.mxu1 %v2648_v2  ;;  %3142 = vmatprep.subr.mxu0 %v2651_v31 }
 0x408   : > { %3212 = vmatpush1.msra.mxu1 %v2650_v48  ;;  %3143 = vmatpush1.msra.mxu0 %v6730_v5 }
 0x409   : > { %3213 = vmatprep.subr.mxu1 %v2647_v26  ;;  %3746 = vmatprep.subr.msk.mxu0 %vm7386_vm4, %v7384_v20 }
 0x40a   : > { %3214 = vmatpush1.msra.mxu1 %v2649_v1  ;;  %3747 = vmatpush1.msk.msra.mxu0 %vm7298_vm9, %v7353_v50 }
 0x40b   : > { %3757 = vmatprep.subr.msk.mxu1 %vm7390_vm1, %v7388_v62  ;;  %3748 = vmatprep.subr.msk.mxu0 %vm7386_vm4, %v7391_v59 }
 0x40c   : > { %3758 = vmatpush1.msk.msra.mxu1 %vm7383_vm13, %v7381_v29  ;;  %3749 = vmatpush1.msk.msra.mxu0 %vm7298_vm9, %v7361_v61 }
 0x40d   : > { %3759 = vmatprep.subr.msk.mxu1 %vm7390_vm1, %v7394_v14  ;;  %3148 = vmatprep.subr.mxu0 %v6760_v40 }
 0x40e   : > { %3760 = vmatpush1.msk.msra.mxu1 %vm7383_vm13, %v7387_v30  ;;  %3149 = vmatpush1.msra.mxu0 %v6587_v52 }
 0x40f   : > { %3219 = vmatprep.subr.mxu1 %v2542_v63  ;;  %3150 = vmatprep.subr.mxu0 %v6779_v44 }
 0x410   : > { %3220 = vmatpush1.msra.mxu1 %v6755_v34  ;;  %3151 = vmatpush1.msra.mxu0 %v6605_v10 }
 0x411   : > { %3221 = vmatprep.subr.mxu1 %v2541_v16  ;;  %3152 = vmatprep.subr.mxu0 %v6720_v21 }
 0x412   : > { %3222 = vmatpush1.msra.mxu1 %v6774_v49  ;;  %3153 = vmatpush1.msra.mxu0 %v6619_v13 }
 0x413   : > { %3223 = vmatprep.subr.mxu1 %v2650_v48  ;;  %3154 = vmatprep.subr.mxu0 %v6730_v5  ;;  %v3283_v5 = vld [vmem:[#allocation2 + $0xd] ss:$8 sm:$0xf] }
 0x414   : > { %3224 = vmatpush1.msra.mxu1 %v2652_v27  ;;  %3155 = vmatpush1.msra.mxu0 %v6639_v23 }
 0x415   : > { %3225 = vmatprep.subr.mxu1 %v2649_v1  ;;  %3750 = vmatprep.subr.msk.mxu0 %vm7298_vm9, %v7353_v50  ;;  %v7405_v50 = vunpack.i.l.bf16 %v6206_v56 }
 0x416   : > { %3226 = vmatpush1.msra.mxu1 %v2651_v31  ;;  %3751 = vmatpush1.msk.msra.mxu0 %vm7359_vm8, %v7357_v35  ;;  %v7407_v35 = vunpack.i.h.bf16 %v6206_v56  ;;  %v3845_v56 = vmov 1966171168  }
 0x417   : > { %3761 = vmatprep.subr.msk.mxu1 %vm7383_vm13, %v7381_v29  ;;  %3752 = vmatprep.subr.msk.mxu0 %vm7298_vm9, %v7361_v61  ;;  %vm7406_vm9 = vmmov %vm7379_vm2  ;;  %v3284_v29 = vld [vmem:[#allocation2 + $0xd] ss:$8 sm:$0xf0] }
 0x418   : > { %3762 = vmatpush1.msk.msra.mxu1 %vm7386_vm4, %v7384_v20  ;;  %3753 = vmatpush1.msk.msra.mxu0 %vm7359_vm8, %v7364_v8  ;;  %v2682_v55 = vsel %vm7406_vm9, %v6745_v42, %v7405_v50  ;;  %vm7408_vm8 = vmmov %vm7379_vm2  ;;  %v3276_v20 = vld [vmem:[#allocation2 + $0xc] ss:$8 sm:$0xf0] }
 0x419   : > { %3763 = vmatprep.subr.msk.mxu1 %vm7383_vm13, %v7387_v30  ;;  %3160 = vmatprep.subr.mxu0 %v6587_v52  ;;  %v2681_v45 = vsel %vm7408_vm8, %v6794_v28, %v7407_v35  ;;  %vm7409_vm13 = vcmask 130048   ;;  %v2688_v52 = vpop.permute.xlu1 %2687  ;;  %v3285_v30 = vor.u32 %v3284_v29, %v3283_v5  ;;  %v3277_v42 = vor.u32 %v3276_v20, %v3275_v4 }
 0x41a   : > { %3764 = vmatpush1.msk.msra.mxu1 %vm7386_vm4, %v7391_v59  ;;  %3161 = vmatpush1.msra.mxu0 %v6592_v51  ;;  %vm7410_vm4 = vmmov %vm7409_vm13  ;;  %v3311_v51 = vunpack.c.l.s4 %v3845_v56  ;;  %v2693_v18 = vrot.slane %v2688_v52, %v2692_v32 }
 0x41b   : > { %3231 = vmatprep.subr.mxu1 %v6755_v34  ;;  %3162 = vmatprep.subr.mxu0 %v6605_v10 }
 0x41c   : > { %3232 = vmatpush1.msra.mxu1 %v6760_v40  ;;  %3163 = vmatpush1.msra.mxu0 %v6611_v37  ;;  %v3312_v15 = vunpack.c.0.s8 %v3311_v51  ;;  %v3287_v51 = vld [vmem:[#allocation2 + $0x4d] ss:$8 sm:$0xf] }
 0x41d   : > { %3233 = vmatprep.subr.mxu1 %v6774_v49  ;;  %3192 = vmatprep.subr.mxu0 %v2650_v48 }
 0x41e   : > { %3234 = vmatpush1.msra.mxu1 %v6779_v44  ;;  %3193 = vmatpush2.msra.mxu0 %v2652_v27 }
 0x41f   : > { %3263 = vmatprep.subr.mxu1 %v2682_v55  ;;  %3194 = vmatprep.subr.mxu0 %v2649_v1 }
 0x420   : > { %3264 = vmatpush2.msra.mxu1 %v2648_v2  ;;  %3195 = vmatpush2.msra.mxu0 %v2651_v31 }
 0x421   : > { %3754 = vmatprep.mubr.msk.f32.mxu0 %vm7409_vm13, %v5925_v60  ;;  %3265 = vmatprep.subr.mxu1 %v2681_v45 }
 0x422   : > { %3197 = vmatmul.mubr.f32.vlgmr.msra.gmra.mxu0 %v6298_v43  ;;  %3266 = vmatpush2.msra.mxu1 %v2647_v26 }
 0x423   : > { %3765 = vmatprep.mubr.msk.f32.mxu1 %vm7410_vm4, %v5925_v60  ;;  %v3315_v60 = vsub.s32 %v3312_v15, %v7284_v41  ;;  %v3280_v15 = vld [vmem:[#allocation2 + $0x4c] ss:$8 sm:$0xf0] }
 0x424   : > { %3268 = vmatmul.mubr.f32.vlgmr.msra.gmra.mxu1 %v6298_v43 }
 0x46e   : > { %v2843_v61 = vpop.f32.mrf.mxu1 }
 0x46f   : > { %v2772_v8 = vpop.f32.mrf.mxu0  ;;  %v2844_v13 = vadd.f32 %v2843_v61, %v2693_v18 }
 0x470   : > { %v2845_v47 = vpop.f32.mrf.mxu1  ;;  %v2773_v25 = vadd.f32 %v2772_v8, %v2693_v18 }
 0x471   : > { %v2774_v10 = vpop.f32.mrf.mxu0  ;;  %v2846_v37 = vadd.f32 %v2845_v47, %v2693_v18  ;;  %v3288_v47 = vld [vmem:[#allocation2 + $0x4d] ss:$8 sm:$0xf0] }
 0x472   : > { %v2775_v57 = vadd.f32 %v2774_v10, %v2693_v18 }
 0x473   : > { %v3307_v11 = vcombine.low %v2844_v13, %v2846_v37  ;;  %v3279_v37 = vld [vmem:[#allocation2 + $0x4c] ss:$8 sm:$0xf]  ;;  %v3289_v13 = vor.u32 %v3288_v47, %v3287_v51 }
 0x474   : > { %v3306_v43 = vcombine.low %v2773_v25, %v2775_v57 }
 0x475   : > { %v3323_v38 = vrot.slane %v3307_v11, %v3315_v60  ;;  %v3281_v11 = vor.u32 %v3280_v15, %v3279_v37 }
 0x476   : > { %v3316_v22 = vrot.slane %v3306_v43, %v3315_v60 }
 0x478   : > { %v3338_v24 = vcombine.low %v3316_v22, %v3323_v38 }
 0x47a   : > { %v3346_v33 = vrot.slane %v3338_v24, %v3315_v60 }
 0x494   : > { %v2914_v46 = vpop.f32.mrf.mxu0 }
 0x495   : > { %v2915_v3 = vadd.f32 %v2914_v46, %v2693_v18 }
 0x496   : > { %v2985_v23 = vpop.f32.mrf.mxu1  ;;  %v2916_v53 = vpop.f32.mrf.mxu0 }
 0x497   : > { %v2917_v9 = vadd.f32 %v2916_v53, %v2693_v18  ;;  %v2986_v19 = vadd.f32 %v2985_v23, %v2693_v18 }
 0x498   : > { %v2987_v12 = vpop.f32.mrf.mxu1 }
 0x499   : > { %v3308_v32 = vcombine.low %v2915_v3, %v2917_v9  ;;  %v2988_v39 = vadd.f32 %v2987_v12, %v2693_v18 }
 0x49b   : > { %v3330_v0 = vrot.slane %v3308_v32, %v3315_v60  ;;  %v3309_v6 = vcombine.low %v2986_v19, %v2988_v39 }
 0x49d   : > { %v3337_v21 = vrot.slane %v3309_v6, %v3315_v60 }
 0x49f   : > { %v3339_v41 = vcombine.low %v3330_v0, %v3337_v21 }
 0x4a1   : > { %v3353_v36 = vrot.slane %v3339_v41, %v3315_v60 }
 0x4a3   : > { %v3354_v62 = vcombine.low %v3346_v33, %v3353_v36 }
 0x4a5   : > { %v3406_v7 = vmul.f32 %v3354_v62, %v3285_v30 }
 0x4a7   : > { %v3408_v59 = vadd.f32 %v3406_v7, %v3277_v42 }
 0x4a9   : > { %3410 = vst [vmem:[%s3905_s12] sm:$0xff] %v3408_v59 }
 0x4bb   : > { %v3056_v34 = vpop.f32.mrf.mxu0 }
 0x4bc   : > { %v3057_v63 = vadd.f32 %v3056_v34, %v2693_v18 }
 0x4bd   : > { %v3058_v14 = vpop.f32.mrf.mxu0 }
 0x4be   : > { %v3059_v49 = vadd.f32 %v3058_v14, %v2693_v18 }
 0x4bf   : > { %v3127_v40 = vpop.f32.mrf.mxu1 }
 0x4c0   : > { %v3128_v54 = vadd.f32 %v3127_v40, %v2693_v18  ;;  %v3355_v27 = vcombine.low %v3057_v63, %v3059_v49 }
 0x4c1   : > { %v3129_v58 = vpop.f32.mrf.mxu1 }
 0x4c2   : > { %v3130_v44 = vadd.f32 %v3129_v58, %v2693_v18  ;;  %v3365_v26 = vrot.slane %v3355_v27, %v3315_v60 }
 0x4c4   : > { %v3356_v28 = vcombine.low %v3128_v54, %v3130_v44 }
 0x4c6   : > { %v3372_v50 = vrot.slane %v3356_v28, %v3315_v60 }
 0x4c8   : > { %v3387_v52 = vcombine.low %v3365_v26, %v3372_v50 }
 0x4ca   : > { %v3395_v57 = vrot.slane %v3387_v52, %v3315_v60 }
 0x4e2   : > { %v3198_v16 = vpop.f32.mrf.mxu0 }
 0x4e3   : > { %v3199_v31 = vadd.f32 %v3198_v16, %v2693_v18 }
 0x4e4   : > { %v3269_v17 = vpop.f32.mrf.mxu1  ;;  %v3200_v2 = vpop.f32.mrf.mxu0 }
 0x4e5   : > { %v3201_v48 = vadd.f32 %v3200_v2, %v2693_v18  ;;  %v3270_v55 = vadd.f32 %v3269_v17, %v2693_v18 }
 0x4e6   : > { %v3271_v1 = vpop.f32.mrf.mxu1 }
 0x4e7   : > { %v3357_v35 = vcombine.low %v3199_v31, %v3201_v48  ;;  %v3272_v45 = vadd.f32 %v3271_v1, %v2693_v18 }
 0x4e9   : > { %v3379_v61 = vrot.slane %v3357_v35, %v3315_v60  ;;  %v3358_v8 = vcombine.low %v3270_v55, %v3272_v45 }
 0x4eb   : > { %v3386_v56 = vrot.slane %v3358_v8, %v3315_v60 }
 0x4ed   : > { %v3388_v10 = vcombine.low %v3379_v61, %v3386_v56 }
 0x4ef   : > { %v3402_v25 = vrot.slane %v3388_v10, %v3315_v60 }
 0x4f1   : > { %v3403_v46 = vcombine.low %v3395_v57, %v3402_v25 }
 0x4f3   : > { %v3407_v43 = vmul.f32 %v3403_v46, %v3289_v13 }
 0x4f5   : > { %v3409_v23 = vadd.f32 %v3407_v43, %v3281_v11 }
 0x4f7   : > { %3411 = vst [vmem:[%s3905_s12 + $0x8] sm:$0xff] %v3409_v23 }
 0x4f8 PF: > { %s20_s29 = sadd.s32 1, %s3835_s29  }
 0x4f9   : > { %p17_p5 = scmp.ge.s32.totalorder %s20_s29, 4  }
 0x4fb   :  { %19 = sbr.rel (!%p17_p5) target bundleno = 3 (0x3), region = 110 }

</bundles_post_ra>
